<compile_context>
chip_gen: v6e
topology: v6e:2x2x1
jax: 0.10.0
libtpu: 0.0.40
codegen_flags: <defaults>
</compile_context>

<pallas_src>
import functools
import math

import jax
import jax.numpy as jnp
from jax.experimental import pallas as pl
from jax.experimental.pallas import tpu as pltpu

_LANES = 128   # lane width / minor-dim granularity
_CHUNK = 128   # lanes processed per inner compute step


def _round_up(x, m):
    return -(-x // m) * m


def _sdpa_kernel(q_ref, k_ref, v_ref, o_ref, *, l2, dk, scale):
    """One grid step: R independent (L2, dk) attention rows, rows = lanes.

    q_ref, v_ref, o_ref : (L2, dk, R)
    k_ref               : (dk, L2, R)
    """
    r_block = q_ref.shape[-1]
    f32 = jnp.float32

    # Process the block in 128-lane chunks: the DMA tile stays big, but live
    # f32 values per chunk are only a handful of vregs.
    for c in range(r_block // _CHUNK):
        lo, hi = c * _CHUNK, (c + 1) * _CHUNK

        # ---- scores[i, j, r] = sum_d Q[i, d, r] * K[j, d, r]  (f32, VPU) ----
        scores = jnp.zeros((l2, l2, _CHUNK), f32)
        for d in range(dk):
            q_d = q_ref[:, d:d + 1, lo:hi].astype(f32)        # (L2, 1, C)
            k_d = k_ref[d, :, lo:hi].astype(f32)              # (L2, C)
            scores = scores + q_d * k_d[None, :, :]           # (L2, L2, C)
        # Fold 1/sqrt(dk) into the f32 scores (fewer elements than scaling Q).
        scores = scores * jnp.float32(scale)

        # ---- numerically stable softmax over j (f32 statistics) ----
        m = scores[:, 0:1, :]
        for j in range(1, l2):
            m = jnp.maximum(m, scores[:, j:j + 1, :])
        e = jnp.exp(scores - m)                               # EUP
        s = e[:, 0:1, :]
        for j in range(1, l2):
            s = s + e[:, j:j + 1, :]
        attn = e / s            # exact divide; approx reciprocal saves nothing

        # ---- context[i, d, r] = sum_j attn[i, j, r] * V[j, d, r] ----
        v_c = v_ref[:, :, lo:hi].astype(f32)                  # (L2, dk, C)
        for i in range(l2):
            acc = jnp.zeros((dk, _CHUNK), f32)
            for j in range(l2):
                acc = acc + attn[i, j:j + 1, :] * v_c[j]      # (dk, C)
            o_ref[i, :, lo:hi] = acc.astype(o_ref.dtype)      # lane-dense store


def _padded_tile_bytes(shape, itemsize):
    """Real VMEM footprint of a tile: minor dim rounds up to 128 lanes,
    2nd-minor to the dtype sublane multiple (8 for 4B, 16 for 2B, 32 for 1B)."""
    *lead, s2, s1 = shape
    sublane = 8 * max(1, 4 // itemsize)
    return (math.prod(lead) * _round_up(s2, sublane) * _round_up(s1, _LANES)
            * itemsize)


def _pick_row_block(n, l2, dk, itemsize, vmem_budget_bytes):
    """Rows per grid step (minor/lane dim of every tile), a multiple of 128."""
    total = _round_up(n, _LANES)
    r = min(512, total)                      # 512 rows ~ good DMA amortization
    while r > _LANES:
        io = 2 * (2 * _padded_tile_bytes((l2, dk, r), itemsize)     # q, v
                  + _padded_tile_bytes((dk, l2, r), itemsize)       # k
                  + _padded_tile_bytes((l2, dk, r), itemsize))      # out
        temps = (3 * l2 * l2 + 2 * l2 * dk + 4 * dk) * _CHUNK * 4   # f32 values
        if io + temps <= vmem_budget_bytes:
            break
        r -= _LANES
    # Keep >=2 blocks on the single "parallel" grid axis whenever possible so
    # both of v7x's TensorCores get row blocks (no-op on single-TC v5e/v6e).
    if total >= 2 * _LANES:
        r = min(r, max(_LANES, (total // (2 * _LANES)) * _LANES))
    return max(_LANES, r)


def _vmem_limits():
    """Scoped-VMEM limit + tile budget derived from the actual chip."""
    try:
        cap = int(pltpu.get_tpu_info().vmem_capacity_bytes)
    except Exception:
        cap = 64 * 1024 * 1024               # conservative (v7x-sized) fallback
    limit = min(96 * 1024 * 1024, (cap * 3) // 4)   # 96 MiB v5e/v6e, 48 MiB v7x
    return limit, limit // 2


def scaled_dot_product_attention(Q, K, V):
    """Q, K, V: [B, n_heads, len1, len2, d_k] -> context of the same shape."""
    B, H, L1, L2, dk = Q.shape
    assert K.shape == Q.shape and V.shape == Q.shape
    n = B * H * L1
    scale = 1.0 / math.sqrt(dk)

    vmem_limit, vmem_budget = _vmem_limits()
    R = _pick_row_block(n, L2, dk, Q.dtype.itemsize, vmem_budget)
    n_pad = _round_up(n, R)
    n_blocks = n_pad // R

    def to_r_minor(x, perm):
        x = x.reshape(n, L2, dk)             # contiguous reshape (free bitcast)
        x = jnp.transpose(x, perm)           # one relayout pass (fused w/ pad)
        if n_pad != n:
            # Zero rows -> uniform softmax, no NaNs; sliced off after the call.
            x = jnp.pad(x, ((0, 0), (0, 0), (0, n_pad - n)))
        return x

    qT = to_r_minor(Q, (1, 2, 0))            # (L2, dk, n_pad)
    kT = to_r_minor(K, (2, 1, 0))            # (dk, L2, n_pad)
    vT = to_r_minor(V, (1, 2, 0))            # (L2, dk, n_pad)

    kernel = functools.partial(_sdpa_kernel, l2=L2, dk=dk, scale=scale)
    qv_spec = pl.BlockSpec((L2, dk, R), lambda i: (0, 0, i))
    k_spec = pl.BlockSpec((dk, L2, R), lambda i: (0, 0, i))
    # If a profile ever shows exposed DMA at block boundaries, add
    # pipeline_mode=pl.Buffered(3) to the input specs before shrinking R.

    out = pl.pallas_call(
        kernel,
        out_shape=jax.ShapeDtypeStruct((L2, dk, n_pad), Q.dtype),
        grid_spec=pltpu.PrefetchScalarGridSpec(
            num_scalar_prefetch=0,
            grid=(n_blocks,),
            in_specs=[qv_spec, k_spec, qv_spec],
            out_specs=qv_spec,
        ),
        compiler_params=pltpu.CompilerParams(
            dimension_semantics=("parallel",),   # independent rows -> megacore
            vmem_limit_bytes=vmem_limit,
        ),
    )(qT, kT, vT)

    out = out[:, :, :n]                          # drop padded rows
    return jnp.transpose(out, (2, 0, 1)).reshape(B, H, L1, L2, dk)


def _reference(Q, K, V):
    dk = Q.shape[-1]
    scores = jnp.einsum("bhlqd,bhlkd->bhlqk", Q, K,
                        precision=jax.lax.Precision.HIGHEST)
    scores = scores / jnp.sqrt(jnp.float32(dk))
    attn = jax.nn.softmax(scores, axis=-1)
    return jnp.einsum("bhlqk,bhlkd->bhlqd", attn, V,
                      precision=jax.lax.Precision.HIGHEST)


if __name__ == "__main__":
    key = jax.random.PRNGKey(0)
    kq, kk, kv = jax.random.split(key, 3)

    B, H, L1, L2, dk = 2, 2, 4, 8, 32
    Q = jax.random.normal(kq, (B, H, L1, L2, dk), dtype=jnp.float32)
    K = jax.random.normal(kk, (B, H, L1, L2, dk), dtype=jnp.float32)
    V = jax.random.normal(kv, (B, H, L1, L2, dk), dtype=jnp.float32)

    out = jax.block_until_ready(scaled_dot_product_attention(Q, K, V))

    ref = _reference(Q, K, V)
    assert out.shape == (B, H, L1, L2, dk)
    assert jnp.allclose(out, ref, atol=1e-3, rtol=1e-3), "mismatch vs reference"

    print("KERNEL_OK")
</pallas_src>

<mosaic_0001>
module attributes {stable_mosaic.version = 11 : i64} {
  func.func @_sdpa_kernel(%arg0: i32, %arg1: memref<8x32x128xf32, #tpu.memory_space<vmem>>, %arg2: memref<32x8x128xf32, #tpu.memory_space<vmem>>, %arg3: memref<8x32x128xf32, #tpu.memory_space<vmem>>, %arg4: memref<8x32x128xf32, #tpu.memory_space<vmem>>) attributes {dimension_semantics = [#tpu.dimension_semantics<parallel>], iteration_bounds = array<i64: 1>, scalar_prefetch = 0 : i64, scratch_operands = 0 : i64, tpu.core_type = #tpu.core_type<tc>, window_params = [{transform_indices = @transform_0, window_bounds = array<i64: 8, 32, 128>}, {transform_indices = @transform_1, window_bounds = array<i64: 32, 8, 128>}, {transform_indices = @transform_2, window_bounds = array<i64: 8, 32, 128>}, {transform_indices = @transform_3, window_bounds = array<i64: 8, 32, 128>}]} {
    %cst = arith.constant 0.000000e+00 : f32
    %0 = vector.broadcast %cst : f32 to vector<8x8x128xf32>
    %c0 = arith.constant 0 : index
    %c0_0 = arith.constant 0 : index
    %c0_1 = arith.constant 0 : index
    %1 = vector.load %arg1[%c0, %c0_0, %c0_1] : memref<8x32x128xf32, #tpu.memory_space<vmem>>, vector<8x1x128xf32>
    %c0_2 = arith.constant 0 : index
    %c0_3 = arith.constant 0 : index
    %c0_4 = arith.constant 0 : index
    %2 = vector.load %arg2[%c0_2, %c0_3, %c0_4] : memref<32x8x128xf32, #tpu.memory_space<vmem>>, vector<1x8x128xf32>
    %3 = vector.shape_cast %2 : vector<1x8x128xf32> to vector<8x128xf32>
    %4 = vector.shape_cast %3 : vector<8x128xf32> to vector<1x8x128xf32>
    %5 = vector.broadcast %1 : vector<8x1x128xf32> to vector<8x8x128xf32>
    %6 = vector.broadcast %4 : vector<1x8x128xf32> to vector<8x8x128xf32>
    %7 = arith.mulf %5, %6 : vector<8x8x128xf32>
    %8 = arith.addf %0, %7 : vector<8x8x128xf32>
    %c0_5 = arith.constant 0 : index
    %c1 = arith.constant 1 : index
    %c0_6 = arith.constant 0 : index
    %9 = vector.load %arg1[%c0_5, %c1, %c0_6] : memref<8x32x128xf32, #tpu.memory_space<vmem>>, vector<8x1x128xf32>
    %c1_7 = arith.constant 1 : index
    %c0_8 = arith.constant 0 : index
    %c0_9 = arith.constant 0 : index
    %10 = vector.load %arg2[%c1_7, %c0_8, %c0_9] : memref<32x8x128xf32, #tpu.memory_space<vmem>>, vector<1x8x128xf32>
    %11 = vector.shape_cast %10 : vector<1x8x128xf32> to vector<8x128xf32>
    %12 = vector.shape_cast %11 : vector<8x128xf32> to vector<1x8x128xf32>
    %13 = vector.broadcast %9 : vector<8x1x128xf32> to vector<8x8x128xf32>
    %14 = vector.broadcast %12 : vector<1x8x128xf32> to vector<8x8x128xf32>
    %15 = arith.mulf %13, %14 : vector<8x8x128xf32>
    %16 = arith.addf %8, %15 : vector<8x8x128xf32>
    %c0_10 = arith.constant 0 : index
    %c2 = arith.constant 2 : index
    %c0_11 = arith.constant 0 : index
    %17 = vector.load %arg1[%c0_10, %c2, %c0_11] : memref<8x32x128xf32, #tpu.memory_space<vmem>>, vector<8x1x128xf32>
    %c2_12 = arith.constant 2 : index
    %c0_13 = arith.constant 0 : index
    %c0_14 = arith.constant 0 : index
    %18 = vector.load %arg2[%c2_12, %c0_13, %c0_14] : memref<32x8x128xf32, #tpu.memory_space<vmem>>, vector<1x8x128xf32>
    %19 = vector.shape_cast %18 : vector<1x8x128xf32> to vector<8x128xf32>
    %20 = vector.shape_cast %19 : vector<8x128xf32> to vector<1x8x128xf32>
    %21 = vector.broadcast %17 : vector<8x1x128xf32> to vector<8x8x128xf32>
    %22 = vector.broadcast %20 : vector<1x8x128xf32> to vector<8x8x128xf32>
    %23 = arith.mulf %21, %22 : vector<8x8x128xf32>
    %24 = arith.addf %16, %23 : vector<8x8x128xf32>
    %c0_15 = arith.constant 0 : index
    %c3 = arith.constant 3 : index
    %c0_16 = arith.constant 0 : index
    %25 = vector.load %arg1[%c0_15, %c3, %c0_16] : memref<8x32x128xf32, #tpu.memory_space<vmem>>, vector<8x1x128xf32>
    %c3_17 = arith.constant 3 : index
    %c0_18 = arith.constant 0 : index
    %c0_19 = arith.constant 0 : index
    %26 = vector.load %arg2[%c3_17, %c0_18, %c0_19] : memref<32x8x128xf32, #tpu.memory_space<vmem>>, vector<1x8x128xf32>
    %27 = vector.shape_cast %26 : vector<1x8x128xf32> to vector<8x128xf32>
    %28 = vector.shape_cast %27 : vector<8x128xf32> to vector<1x8x128xf32>
    %29 = vector.broadcast %25 : vector<8x1x128xf32> to vector<8x8x128xf32>
    %30 = vector.broadcast %28 : vector<1x8x128xf32> to vector<8x8x128xf32>
    %31 = arith.mulf %29, %30 : vector<8x8x128xf32>
    %32 = arith.addf %24, %31 : vector<8x8x128xf32>
    %c0_20 = arith.constant 0 : index
    %c4 = arith.constant 4 : index
    %c0_21 = arith.constant 0 : index
    %33 = vector.load %arg1[%c0_20, %c4, %c0_21] : memref<8x32x128xf32, #tpu.memory_space<vmem>>, vector<8x1x128xf32>
    %c4_22 = arith.constant 4 : index
    %c0_23 = arith.constant 0 : index
    %c0_24 = arith.constant 0 : index
    %34 = vector.load %arg2[%c4_22, %c0_23, %c0_24] : memref<32x8x128xf32, #tpu.memory_space<vmem>>, vector<1x8x128xf32>
    %35 = vector.shape_cast %34 : vector<1x8x128xf32> to vector<8x128xf32>
    %36 = vector.shape_cast %35 : vector<8x128xf32> to vector<1x8x128xf32>
    %37 = vector.broadcast %33 : vector<8x1x128xf32> to vector<8x8x128xf32>
    %38 = vector.broadcast %36 : vector<1x8x128xf32> to vector<8x8x128xf32>
    %39 = arith.mulf %37, %38 : vector<8x8x128xf32>
    %40 = arith.addf %32, %39 : vector<8x8x128xf32>
    %c0_25 = arith.constant 0 : index
    %c5 = arith.constant 5 : index
    %c0_26 = arith.constant 0 : index
    %41 = vector.load %arg1[%c0_25, %c5, %c0_26] : memref<8x32x128xf32, #tpu.memory_space<vmem>>, vector<8x1x128xf32>
    %c5_27 = arith.constant 5 : index
    %c0_28 = arith.constant 0 : index
    %c0_29 = arith.constant 0 : index
    %42 = vector.load %arg2[%c5_27, %c0_28, %c0_29] : memref<32x8x128xf32, #tpu.memory_space<vmem>>, vector<1x8x128xf32>
    %43 = vector.shape_cast %42 : vector<1x8x128xf32> to vector<8x128xf32>
    %44 = vector.shape_cast %43 : vector<8x128xf32> to vector<1x8x128xf32>
    %45 = vector.broadcast %41 : vector<8x1x128xf32> to vector<8x8x128xf32>
    %46 = vector.broadcast %44 : vector<1x8x128xf32> to vector<8x8x128xf32>
    %47 = arith.mulf %45, %46 : vector<8x8x128xf32>
    %48 = arith.addf %40, %47 : vector<8x8x128xf32>
    %c0_30 = arith.constant 0 : index
    %c6 = arith.constant 6 : index
    %c0_31 = arith.constant 0 : index
    %49 = vector.load %arg1[%c0_30, %c6, %c0_31] : memref<8x32x128xf32, #tpu.memory_space<vmem>>, vector<8x1x128xf32>
    %c6_32 = arith.constant 6 : index
    %c0_33 = arith.constant 0 : index
    %c0_34 = arith.constant 0 : index
    %50 = vector.load %arg2[%c6_32, %c0_33, %c0_34] : memref<32x8x128xf32, #tpu.memory_space<vmem>>, vector<1x8x128xf32>
    %51 = vector.shape_cast %50 : vector<1x8x128xf32> to vector<8x128xf32>
    %52 = vector.shape_cast %51 : vector<8x128xf32> to vector<1x8x128xf32>
    %53 = vector.broadcast %49 : vector<8x1x128xf32> to vector<8x8x128xf32>
    %54 = vector.broadcast %52 : vector<1x8x128xf32> to vector<8x8x128xf32>
    %55 = arith.mulf %53, %54 : vector<8x8x128xf32>
    %56 = arith.addf %48, %55 : vector<8x8x128xf32>
    %c0_35 = arith.constant 0 : index
    %c7 = arith.constant 7 : index
    %c0_36 = arith.constant 0 : index
    %57 = vector.load %arg1[%c0_35, %c7, %c0_36] : memref<8x32x128xf32, #tpu.memory_space<vmem>>, vector<8x1x128xf32>
    %c7_37 = arith.constant 7 : index
    %c0_38 = arith.constant 0 : index
    %c0_39 = arith.constant 0 : index
    %58 = vector.load %arg2[%c7_37, %c0_38, %c0_39] : memref<32x8x128xf32, #tpu.memory_space<vmem>>, vector<1x8x128xf32>
    %59 = vector.shape_cast %58 : vector<1x8x128xf32> to vector<8x128xf32>
    %60 = vector.shape_cast %59 : vector<8x128xf32> to vector<1x8x128xf32>
    %61 = vector.broadcast %57 : vector<8x1x128xf32> to vector<8x8x128xf32>
    %62 = vector.broadcast %60 : vector<1x8x128xf32> to vector<8x8x128xf32>
    %63 = arith.mulf %61, %62 : vector<8x8x128xf32>
    %64 = arith.addf %56, %63 : vector<8x8x128xf32>
    %c0_40 = arith.constant 0 : index
    %c8 = arith.constant 8 : index
    %c0_41 = arith.constant 0 : index
    %65 = vector.load %arg1[%c0_40, %c8, %c0_41] : memref<8x32x128xf32, #tpu.memory_space<vmem>>, vector<8x1x128xf32>
    %c8_42 = arith.constant 8 : index
    %c0_43 = arith.constant 0 : index
    %c0_44 = arith.constant 0 : index
    %66 = vector.load %arg2[%c8_42, %c0_43, %c0_44] : memref<32x8x128xf32, #tpu.memory_space<vmem>>, vector<1x8x128xf32>
    %67 = vector.shape_cast %66 : vector<1x8x128xf32> to vector<8x128xf32>
    %68 = vector.shape_cast %67 : vector<8x128xf32> to vector<1x8x128xf32>
    %69 = vector.broadcast %65 : vector<8x1x128xf32> to vector<8x8x128xf32>
    %70 = vector.broadcast %68 : vector<1x8x128xf32> to vector<8x8x128xf32>
    %71 = arith.mulf %69, %70 : vector<8x8x128xf32>
    %72 = arith.addf %64, %71 : vector<8x8x128xf32>
    %c0_45 = arith.constant 0 : index
    %c9 = arith.constant 9 : index
    %c0_46 = arith.constant 0 : index
    %73 = vector.load %arg1[%c0_45, %c9, %c0_46] : memref<8x32x128xf32, #tpu.memory_space<vmem>>, vector<8x1x128xf32>
    %c9_47 = arith.constant 9 : index
    %c0_48 = arith.constant 0 : index
    %c0_49 = arith.constant 0 : index
    %74 = vector.load %arg2[%c9_47, %c0_48, %c0_49] : memref<32x8x128xf32, #tpu.memory_space<vmem>>, vector<1x8x128xf32>
    %75 = vector.shape_cast %74 : vector<1x8x128xf32> to vector<8x128xf32>
    %76 = vector.shape_cast %75 : vector<8x128xf32> to vector<1x8x128xf32>
    %77 = vector.broadcast %73 : vector<8x1x128xf32> to vector<8x8x128xf32>
    %78 = vector.broadcast %76 : vector<1x8x128xf32> to vector<8x8x128xf32>
    %79 = arith.mulf %77, %78 : vector<8x8x128xf32>
    %80 = arith.addf %72, %79 : vector<8x8x128xf32>
    %c0_50 = arith.constant 0 : index
    %c10 = arith.constant 10 : index
    %c0_51 = arith.constant 0 : index
    %81 = vector.load %arg1[%c0_50, %c10, %c0_51] : memref<8x32x128xf32, #tpu.memory_space<vmem>>, vector<8x1x128xf32>
    %c10_52 = arith.constant 10 : index
    %c0_53 = arith.constant 0 : index
    %c0_54 = arith.constant 0 : index
    %82 = vector.load %arg2[%c10_52, %c0_53, %c0_54] : memref<32x8x128xf32, #tpu.memory_space<vmem>>, vector<1x8x128xf32>
    %83 = vector.shape_cast %82 : vector<1x8x128xf32> to vector<8x128xf32>
    %84 = vector.shape_cast %83 : vector<8x128xf32> to vector<1x8x128xf32>
    %85 = vector.broadcast %81 : vector<8x1x128xf32> to vector<8x8x128xf32>
    %86 = vector.broadcast %84 : vector<1x8x128xf32> to vector<8x8x128xf32>
    %87 = arith.mulf %85, %86 : vector<8x8x128xf32>
    %88 = arith.addf %80, %87 : vector<8x8x128xf32>
    %c0_55 = arith.constant 0 : index
    %c11 = arith.constant 11 : index
    %c0_56 = arith.constant 0 : index
    %89 = vector.load %arg1[%c0_55, %c11, %c0_56] : memref<8x32x128xf32, #tpu.memory_space<vmem>>, vector<8x1x128xf32>
    %c11_57 = arith.constant 11 : index
    %c0_58 = arith.constant 0 : index
    %c0_59 = arith.constant 0 : index
    %90 = vector.load %arg2[%c11_57, %c0_58, %c0_59] : memref<32x8x128xf32, #tpu.memory_space<vmem>>, vector<1x8x128xf32>
    %91 = vector.shape_cast %90 : vector<1x8x128xf32> to vector<8x128xf32>
    %92 = vector.shape_cast %91 : vector<8x128xf32> to vector<1x8x128xf32>
    %93 = vector.broadcast %89 : vector<8x1x128xf32> to vector<8x8x128xf32>
    %94 = vector.broadcast %92 : vector<1x8x128xf32> to vector<8x8x128xf32>
    %95 = arith.mulf %93, %94 : vector<8x8x128xf32>
    %96 = arith.addf %88, %95 : vector<8x8x128xf32>
    %c0_60 = arith.constant 0 : index
    %c12 = arith.constant 12 : index
    %c0_61 = arith.constant 0 : index
    %97 = vector.load %arg1[%c0_60, %c12, %c0_61] : memref<8x32x128xf32, #tpu.memory_space<vmem>>, vector<8x1x128xf32>
    %c12_62 = arith.constant 12 : index
    %c0_63 = arith.constant 0 : index
    %c0_64 = arith.constant 0 : index
    %98 = vector.load %arg2[%c12_62, %c0_63, %c0_64] : memref<32x8x128xf32, #tpu.memory_space<vmem>>, vector<1x8x128xf32>
    %99 = vector.shape_cast %98 : vector<1x8x128xf32> to vector<8x128xf32>
    %100 = vector.shape_cast %99 : vector<8x128xf32> to vector<1x8x128xf32>
    %101 = vector.broadcast %97 : vector<8x1x128xf32> to vector<8x8x128xf32>
    %102 = vector.broadcast %100 : vector<1x8x128xf32> to vector<8x8x128xf32>
    %103 = arith.mulf %101, %102 : vector<8x8x128xf32>
    %104 = arith.addf %96, %103 : vector<8x8x128xf32>
    %c0_65 = arith.constant 0 : index
    %c13 = arith.constant 13 : index
    %c0_66 = arith.constant 0 : index
    %105 = vector.load %arg1[%c0_65, %c13, %c0_66] : memref<8x32x128xf32, #tpu.memory_space<vmem>>, vector<8x1x128xf32>
    %c13_67 = arith.constant 13 : index
    %c0_68 = arith.constant 0 : index
    %c0_69 = arith.constant 0 : index
    %106 = vector.load %arg2[%c13_67, %c0_68, %c0_69] : memref<32x8x128xf32, #tpu.memory_space<vmem>>, vector<1x8x128xf32>
    %107 = vector.shape_cast %106 : vector<1x8x128xf32> to vector<8x128xf32>
    %108 = vector.shape_cast %107 : vector<8x128xf32> to vector<1x8x128xf32>
    %109 = vector.broadcast %105 : vector<8x1x128xf32> to vector<8x8x128xf32>
    %110 = vector.broadcast %108 : vector<1x8x128xf32> to vector<8x8x128xf32>
    %111 = arith.mulf %109, %110 : vector<8x8x128xf32>
    %112 = arith.addf %104, %111 : vector<8x8x128xf32>
    %c0_70 = arith.constant 0 : index
    %c14 = arith.constant 14 : index
    %c0_71 = arith.constant 0 : index
    %113 = vector.load %arg1[%c0_70, %c14, %c0_71] : memref<8x32x128xf32, #tpu.memory_space<vmem>>, vector<8x1x128xf32>
    %c14_72 = arith.constant 14 : index
    %c0_73 = arith.constant 0 : index
    %c0_74 = arith.constant 0 : index
    %114 = vector.load %arg2[%c14_72, %c0_73, %c0_74] : memref<32x8x128xf32, #tpu.memory_space<vmem>>, vector<1x8x128xf32>
    %115 = vector.shape_cast %114 : vector<1x8x128xf32> to vector<8x128xf32>
    %116 = vector.shape_cast %115 : vector<8x128xf32> to vector<1x8x128xf32>
    %117 = vector.broadcast %113 : vector<8x1x128xf32> to vector<8x8x128xf32>
    %118 = vector.broadcast %116 : vector<1x8x128xf32> to vector<8x8x128xf32>
    %119 = arith.mulf %117, %118 : vector<8x8x128xf32>
    %120 = arith.addf %112, %119 : vector<8x8x128xf32>
    %c0_75 = arith.constant 0 : index
    %c15 = arith.constant 15 : index
    %c0_76 = arith.constant 0 : index
    %121 = vector.load %arg1[%c0_75, %c15, %c0_76] : memref<8x32x128xf32, #tpu.memory_space<vmem>>, vector<8x1x128xf32>
    %c15_77 = arith.constant 15 : index
    %c0_78 = arith.constant 0 : index
    %c0_79 = arith.constant 0 : index
    %122 = vector.load %arg2[%c15_77, %c0_78, %c0_79] : memref<32x8x128xf32, #tpu.memory_space<vmem>>, vector<1x8x128xf32>
    %123 = vector.shape_cast %122 : vector<1x8x128xf32> to vector<8x128xf32>
    %124 = vector.shape_cast %123 : vector<8x128xf32> to vector<1x8x128xf32>
    %125 = vector.broadcast %121 : vector<8x1x128xf32> to vector<8x8x128xf32>
    %126 = vector.broadcast %124 : vector<1x8x128xf32> to vector<8x8x128xf32>
    %127 = arith.mulf %125, %126 : vector<8x8x128xf32>
    %128 = arith.addf %120, %127 : vector<8x8x128xf32>
    %c0_80 = arith.constant 0 : index
    %c16 = arith.constant 16 : index
    %c0_81 = arith.constant 0 : index
    %129 = vector.load %arg1[%c0_80, %c16, %c0_81] : memref<8x32x128xf32, #tpu.memory_space<vmem>>, vector<8x1x128xf32>
    %c16_82 = arith.constant 16 : index
    %c0_83 = arith.constant 0 : index
    %c0_84 = arith.constant 0 : index
    %130 = vector.load %arg2[%c16_82, %c0_83, %c0_84] : memref<32x8x128xf32, #tpu.memory_space<vmem>>, vector<1x8x128xf32>
    %131 = vector.shape_cast %130 : vector<1x8x128xf32> to vector<8x128xf32>
    %132 = vector.shape_cast %131 : vector<8x128xf32> to vector<1x8x128xf32>
    %133 = vector.broadcast %129 : vector<8x1x128xf32> to vector<8x8x128xf32>
    %134 = vector.broadcast %132 : vector<1x8x128xf32> to vector<8x8x128xf32>
    %135 = arith.mulf %133, %134 : vector<8x8x128xf32>
    %136 = arith.addf %128, %135 : vector<8x8x128xf32>
    %c0_85 = arith.constant 0 : index
    %c17 = arith.constant 17 : index
    %c0_86 = arith.constant 0 : index
    %137 = vector.load %arg1[%c0_85, %c17, %c0_86] : memref<8x32x128xf32, #tpu.memory_space<vmem>>, vector<8x1x128xf32>
    %c17_87 = arith.constant 17 : index
    %c0_88 = arith.constant 0 : index
    %c0_89 = arith.constant 0 : index
    %138 = vector.load %arg2[%c17_87, %c0_88, %c0_89] : memref<32x8x128xf32, #tpu.memory_space<vmem>>, vector<1x8x128xf32>
    %139 = vector.shape_cast %138 : vector<1x8x128xf32> to vector<8x128xf32>
    %140 = vector.shape_cast %139 : vector<8x128xf32> to vector<1x8x128xf32>
    %141 = vector.broadcast %137 : vector<8x1x128xf32> to vector<8x8x128xf32>
    %142 = vector.broadcast %140 : vector<1x8x128xf32> to vector<8x8x128xf32>
    %143 = arith.mulf %141, %142 : vector<8x8x128xf32>
    %144 = arith.addf %136, %143 : vector<8x8x128xf32>
    %c0_90 = arith.constant 0 : index
    %c18 = arith.constant 18 : index
    %c0_91 = arith.constant 0 : index
    %145 = vector.load %arg1[%c0_90, %c18, %c0_91] : memref<8x32x128xf32, #tpu.memory_space<vmem>>, vector<8x1x128xf32>
    %c18_92 = arith.constant 18 : index
    %c0_93 = arith.constant 0 : index
    %c0_94 = arith.constant 0 : index
    %146 = vector.load %arg2[%c18_92, %c0_93, %c0_94] : memref<32x8x128xf32, #tpu.memory_space<vmem>>, vector<1x8x128xf32>
    %147 = vector.shape_cast %146 : vector<1x8x128xf32> to vector<8x128xf32>
    %148 = vector.shape_cast %147 : vector<8x128xf32> to vector<1x8x128xf32>
    %149 = vector.broadcast %145 : vector<8x1x128xf32> to vector<8x8x128xf32>
    %150 = vector.broadcast %148 : vector<1x8x128xf32> to vector<8x8x128xf32>
    %151 = arith.mulf %149, %150 : vector<8x8x128xf32>
    %152 = arith.addf %144, %151 : vector<8x8x128xf32>
    %c0_95 = arith.constant 0 : index
    %c19 = arith.constant 19 : index
    %c0_96 = arith.constant 0 : index
    %153 = vector.load %arg1[%c0_95, %c19, %c0_96] : memref<8x32x128xf32, #tpu.memory_space<vmem>>, vector<8x1x128xf32>
    %c19_97 = arith.constant 19 : index
    %c0_98 = arith.constant 0 : index
    %c0_99 = arith.constant 0 : index
    %154 = vector.load %arg2[%c19_97, %c0_98, %c0_99] : memref<32x8x128xf32, #tpu.memory_space<vmem>>, vector<1x8x128xf32>
    %155 = vector.shape_cast %154 : vector<1x8x128xf32> to vector<8x128xf32>
    %156 = vector.shape_cast %155 : vector<8x128xf32> to vector<1x8x128xf32>
    %157 = vector.broadcast %153 : vector<8x1x128xf32> to vector<8x8x128xf32>
    %158 = vector.broadcast %156 : vector<1x8x128xf32> to vector<8x8x128xf32>
    %159 = arith.mulf %157, %158 : vector<8x8x128xf32>
    %160 = arith.addf %152, %159 : vector<8x8x128xf32>
    %c0_100 = arith.constant 0 : index
    %c20 = arith.constant 20 : index
    %c0_101 = arith.constant 0 : index
    %161 = vector.load %arg1[%c0_100, %c20, %c0_101] : memref<8x32x128xf32, #tpu.memory_space<vmem>>, vector<8x1x128xf32>
    %c20_102 = arith.constant 20 : index
    %c0_103 = arith.constant 0 : index
    %c0_104 = arith.constant 0 : index
    %162 = vector.load %arg2[%c20_102, %c0_103, %c0_104] : memref<32x8x128xf32, #tpu.memory_space<vmem>>, vector<1x8x128xf32>
    %163 = vector.shape_cast %162 : vector<1x8x128xf32> to vector<8x128xf32>
    %164 = vector.shape_cast %163 : vector<8x128xf32> to vector<1x8x128xf32>
    %165 = vector.broadcast %161 : vector<8x1x128xf32> to vector<8x8x128xf32>
    %166 = vector.broadcast %164 : vector<1x8x128xf32> to vector<8x8x128xf32>
    %167 = arith.mulf %165, %166 : vector<8x8x128xf32>
    %168 = arith.addf %160, %167 : vector<8x8x128xf32>
    %c0_105 = arith.constant 0 : index
    %c21 = arith.constant 21 : index
    %c0_106 = arith.constant 0 : index
    %169 = vector.load %arg1[%c0_105, %c21, %c0_106] : memref<8x32x128xf32, #tpu.memory_space<vmem>>, vector<8x1x128xf32>
    %c21_107 = arith.constant 21 : index
    %c0_108 = arith.constant 0 : index
    %c0_109 = arith.constant 0 : index
    %170 = vector.load %arg2[%c21_107, %c0_108, %c0_109] : memref<32x8x128xf32, #tpu.memory_space<vmem>>, vector<1x8x128xf32>
    %171 = vector.shape_cast %170 : vector<1x8x128xf32> to vector<8x128xf32>
    %172 = vector.shape_cast %171 : vector<8x128xf32> to vector<1x8x128xf32>
    %173 = vector.broadcast %169 : vector<8x1x128xf32> to vector<8x8x128xf32>
    %174 = vector.broadcast %172 : vector<1x8x128xf32> to vector<8x8x128xf32>
    %175 = arith.mulf %173, %174 : vector<8x8x128xf32>
    %176 = arith.addf %168, %175 : vector<8x8x128xf32>
    %c0_110 = arith.constant 0 : index
    %c22 = arith.constant 22 : index
    %c0_111 = arith.constant 0 : index
    %177 = vector.load %arg1[%c0_110, %c22, %c0_111] : memref<8x32x128xf32, #tpu.memory_space<vmem>>, vector<8x1x128xf32>
    %c22_112 = arith.constant 22 : index
    %c0_113 = arith.constant 0 : index
    %c0_114 = arith.constant 0 : index
    %178 = vector.load %arg2[%c22_112, %c0_113, %c0_114] : memref<32x8x128xf32, #tpu.memory_space<vmem>>, vector<1x8x128xf32>
    %179 = vector.shape_cast %178 : vector<1x8x128xf32> to vector<8x128xf32>
    %180 = vector.shape_cast %179 : vector<8x128xf32> to vector<1x8x128xf32>
    %181 = vector.broadcast %177 : vector<8x1x128xf32> to vector<8x8x128xf32>
    %182 = vector.broadcast %180 : vector<1x8x128xf32> to vector<8x8x128xf32>
    %183 = arith.mulf %181, %182 : vector<8x8x128xf32>
    %184 = arith.addf %176, %183 : vector<8x8x128xf32>
    %c0_115 = arith.constant 0 : index
    %c23 = arith.constant 23 : index
    %c0_116 = arith.constant 0 : index
    %185 = vector.load %arg1[%c0_115, %c23, %c0_116] : memref<8x32x128xf32, #tpu.memory_space<vmem>>, vector<8x1x128xf32>
    %c23_117 = arith.constant 23 : index
    %c0_118 = arith.constant 0 : index
    %c0_119 = arith.constant 0 : index
    %186 = vector.load %arg2[%c23_117, %c0_118, %c0_119] : memref<32x8x128xf32, #tpu.memory_space<vmem>>, vector<1x8x128xf32>
    %187 = vector.shape_cast %186 : vector<1x8x128xf32> to vector<8x128xf32>
    %188 = vector.shape_cast %187 : vector<8x128xf32> to vector<1x8x128xf32>
    %189 = vector.broadcast %185 : vector<8x1x128xf32> to vector<8x8x128xf32>
    %190 = vector.broadcast %188 : vector<1x8x128xf32> to vector<8x8x128xf32>
    %191 = arith.mulf %189, %190 : vector<8x8x128xf32>
    %192 = arith.addf %184, %191 : vector<8x8x128xf32>
    %c0_120 = arith.constant 0 : index
    %c24 = arith.constant 24 : index
    %c0_121 = arith.constant 0 : index
    %193 = vector.load %arg1[%c0_120, %c24, %c0_121] : memref<8x32x128xf32, #tpu.memory_space<vmem>>, vector<8x1x128xf32>
    %c24_122 = arith.constant 24 : index
    %c0_123 = arith.constant 0 : index
    %c0_124 = arith.constant 0 : index
    %194 = vector.load %arg2[%c24_122, %c0_123, %c0_124] : memref<32x8x128xf32, #tpu.memory_space<vmem>>, vector<1x8x128xf32>
    %195 = vector.shape_cast %194 : vector<1x8x128xf32> to vector<8x128xf32>
    %196 = vector.shape_cast %195 : vector<8x128xf32> to vector<1x8x128xf32>
    %197 = vector.broadcast %193 : vector<8x1x128xf32> to vector<8x8x128xf32>
    %198 = vector.broadcast %196 : vector<1x8x128xf32> to vector<8x8x128xf32>
    %199 = arith.mulf %197, %198 : vector<8x8x128xf32>
    %200 = arith.addf %192, %199 : vector<8x8x128xf32>
    %c0_125 = arith.constant 0 : index
    %c25 = arith.constant 25 : index
    %c0_126 = arith.constant 0 : index
    %201 = vector.load %arg1[%c0_125, %c25, %c0_126] : memref<8x32x128xf32, #tpu.memory_space<vmem>>, vector<8x1x128xf32>
    %c25_127 = arith.constant 25 : index
    %c0_128 = arith.constant 0 : index
    %c0_129 = arith.constant 0 : index
    %202 = vector.load %arg2[%c25_127, %c0_128, %c0_129] : memref<32x8x128xf32, #tpu.memory_space<vmem>>, vector<1x8x128xf32>
    %203 = vector.shape_cast %202 : vector<1x8x128xf32> to vector<8x128xf32>
    %204 = vector.shape_cast %203 : vector<8x128xf32> to vector<1x8x128xf32>
    %205 = vector.broadcast %201 : vector<8x1x128xf32> to vector<8x8x128xf32>
    %206 = vector.broadcast %204 : vector<1x8x128xf32> to vector<8x8x128xf32>
    %207 = arith.mulf %205, %206 : vector<8x8x128xf32>
    %208 = arith.addf %200, %207 : vector<8x8x128xf32>
    %c0_130 = arith.constant 0 : index
    %c26 = arith.constant 26 : index
    %c0_131 = arith.constant 0 : index
    %209 = vector.load %arg1[%c0_130, %c26, %c0_131] : memref<8x32x128xf32, #tpu.memory_space<vmem>>, vector<8x1x128xf32>
    %c26_132 = arith.constant 26 : index
    %c0_133 = arith.constant 0 : index
    %c0_134 = arith.constant 0 : index
    %210 = vector.load %arg2[%c26_132, %c0_133, %c0_134] : memref<32x8x128xf32, #tpu.memory_space<vmem>>, vector<1x8x128xf32>
    %211 = vector.shape_cast %210 : vector<1x8x128xf32> to vector<8x128xf32>
    %212 = vector.shape_cast %211 : vector<8x128xf32> to vector<1x8x128xf32>
    %213 = vector.broadcast %209 : vector<8x1x128xf32> to vector<8x8x128xf32>
    %214 = vector.broadcast %212 : vector<1x8x128xf32> to vector<8x8x128xf32>
    %215 = arith.mulf %213, %214 : vector<8x8x128xf32>
    %216 = arith.addf %208, %215 : vector<8x8x128xf32>
    %c0_135 = arith.constant 0 : index
    %c27 = arith.constant 27 : index
    %c0_136 = arith.constant 0 : index
    %217 = vector.load %arg1[%c0_135, %c27, %c0_136] : memref<8x32x128xf32, #tpu.memory_space<vmem>>, vector<8x1x128xf32>
    %c27_137 = arith.constant 27 : index
    %c0_138 = arith.constant 0 : index
    %c0_139 = arith.constant 0 : index
    %218 = vector.load %arg2[%c27_137, %c0_138, %c0_139] : memref<32x8x128xf32, #tpu.memory_space<vmem>>, vector<1x8x128xf32>
    %219 = vector.shape_cast %218 : vector<1x8x128xf32> to vector<8x128xf32>
    %220 = vector.shape_cast %219 : vector<8x128xf32> to vector<1x8x128xf32>
    %221 = vector.broadcast %217 : vector<8x1x128xf32> to vector<8x8x128xf32>
    %222 = vector.broadcast %220 : vector<1x8x128xf32> to vector<8x8x128xf32>
    %223 = arith.mulf %221, %222 : vector<8x8x128xf32>
    %224 = arith.addf %216, %223 : vector<8x8x128xf32>
    %c0_140 = arith.constant 0 : index
    %c28 = arith.constant 28 : index
    %c0_141 = arith.constant 0 : index
    %225 = vector.load %arg1[%c0_140, %c28, %c0_141] : memref<8x32x128xf32, #tpu.memory_space<vmem>>, vector<8x1x128xf32>
    %c28_142 = arith.constant 28 : index
    %c0_143 = arith.constant 0 : index
    %c0_144 = arith.constant 0 : index
    %226 = vector.load %arg2[%c28_142, %c0_143, %c0_144] : memref<32x8x128xf32, #tpu.memory_space<vmem>>, vector<1x8x128xf32>
    %227 = vector.shape_cast %226 : vector<1x8x128xf32> to vector<8x128xf32>
    %228 = vector.shape_cast %227 : vector<8x128xf32> to vector<1x8x128xf32>
    %229 = vector.broadcast %225 : vector<8x1x128xf32> to vector<8x8x128xf32>
    %230 = vector.broadcast %228 : vector<1x8x128xf32> to vector<8x8x128xf32>
    %231 = arith.mulf %229, %230 : vector<8x8x128xf32>
    %232 = arith.addf %224, %231 : vector<8x8x128xf32>
    %c0_145 = arith.constant 0 : index
    %c29 = arith.constant 29 : index
    %c0_146 = arith.constant 0 : index
    %233 = vector.load %arg1[%c0_145, %c29, %c0_146] : memref<8x32x128xf32, #tpu.memory_space<vmem>>, vector<8x1x128xf32>
    %c29_147 = arith.constant 29 : index
    %c0_148 = arith.constant 0 : index
    %c0_149 = arith.constant 0 : index
    %234 = vector.load %arg2[%c29_147, %c0_148, %c0_149] : memref<32x8x128xf32, #tpu.memory_space<vmem>>, vector<1x8x128xf32>
    %235 = vector.shape_cast %234 : vector<1x8x128xf32> to vector<8x128xf32>
    %236 = vector.shape_cast %235 : vector<8x128xf32> to vector<1x8x128xf32>
    %237 = vector.broadcast %233 : vector<8x1x128xf32> to vector<8x8x128xf32>
    %238 = vector.broadcast %236 : vector<1x8x128xf32> to vector<8x8x128xf32>
    %239 = arith.mulf %237, %238 : vector<8x8x128xf32>
    %240 = arith.addf %232, %239 : vector<8x8x128xf32>
    %c0_150 = arith.constant 0 : index
    %c30 = arith.constant 30 : index
    %c0_151 = arith.constant 0 : index
    %241 = vector.load %arg1[%c0_150, %c30, %c0_151] : memref<8x32x128xf32, #tpu.memory_space<vmem>>, vector<8x1x128xf32>
    %c30_152 = arith.constant 30 : index
    %c0_153 = arith.constant 0 : index
    %c0_154 = arith.constant 0 : index
    %242 = vector.load %arg2[%c30_152, %c0_153, %c0_154] : memref<32x8x128xf32, #tpu.memory_space<vmem>>, vector<1x8x128xf32>
    %243 = vector.shape_cast %242 : vector<1x8x128xf32> to vector<8x128xf32>
    %244 = vector.shape_cast %243 : vector<8x128xf32> to vector<1x8x128xf32>
    %245 = vector.broadcast %241 : vector<8x1x128xf32> to vector<8x8x128xf32>
    %246 = vector.broadcast %244 : vector<1x8x128xf32> to vector<8x8x128xf32>
    %247 = arith.mulf %245, %246 : vector<8x8x128xf32>
    %248 = arith.addf %240, %247 : vector<8x8x128xf32>
    %c0_155 = arith.constant 0 : index
    %c31 = arith.constant 31 : index
    %c0_156 = arith.constant 0 : index
    %249 = vector.load %arg1[%c0_155, %c31, %c0_156] : memref<8x32x128xf32, #tpu.memory_space<vmem>>, vector<8x1x128xf32>
    %c31_157 = arith.constant 31 : index
    %c0_158 = arith.constant 0 : index
    %c0_159 = arith.constant 0 : index
    %250 = vector.load %arg2[%c31_157, %c0_158, %c0_159] : memref<32x8x128xf32, #tpu.memory_space<vmem>>, vector<1x8x128xf32>
    %251 = vector.shape_cast %250 : vector<1x8x128xf32> to vector<8x128xf32>
    %252 = vector.shape_cast %251 : vector<8x128xf32> to vector<1x8x128xf32>
    %253 = vector.broadcast %249 : vector<8x1x128xf32> to vector<8x8x128xf32>
    %254 = vector.broadcast %252 : vector<1x8x128xf32> to vector<8x8x128xf32>
    %255 = arith.mulf %253, %254 : vector<8x8x128xf32>
    %256 = arith.addf %248, %255 : vector<8x8x128xf32>
    %cst_160 = arith.constant 0.176776692 : f32
    %257 = vector.broadcast %cst_160 : f32 to vector<8x8x128xf32>
    %258 = arith.mulf %256, %257 : vector<8x8x128xf32>
    %259 = vector.extract_strided_slice %258 {offsets = [0, 0, 0], sizes = [8, 1, 128], strides = [1, 1, 1]} : vector<8x8x128xf32> to vector<8x1x128xf32>
    %260 = vector.extract_strided_slice %258 {offsets = [0, 1, 0], sizes = [8, 1, 128], strides = [1, 1, 1]} : vector<8x8x128xf32> to vector<8x1x128xf32>
    %261 = arith.maximumf %259, %260 : vector<8x1x128xf32>
    %262 = vector.extract_strided_slice %258 {offsets = [0, 2, 0], sizes = [8, 1, 128], strides = [1, 1, 1]} : vector<8x8x128xf32> to vector<8x1x128xf32>
    %263 = arith.maximumf %261, %262 : vector<8x1x128xf32>
    %264 = vector.extract_strided_slice %258 {offsets = [0, 3, 0], sizes = [8, 1, 128], strides = [1, 1, 1]} : vector<8x8x128xf32> to vector<8x1x128xf32>
    %265 = arith.maximumf %263, %264 : vector<8x1x128xf32>
    %266 = vector.extract_strided_slice %258 {offsets = [0, 4, 0], sizes = [8, 1, 128], strides = [1, 1, 1]} : vector<8x8x128xf32> to vector<8x1x128xf32>
    %267 = arith.maximumf %265, %266 : vector<8x1x128xf32>
    %268 = vector.extract_strided_slice %258 {offsets = [0, 5, 0], sizes = [8, 1, 128], strides = [1, 1, 1]} : vector<8x8x128xf32> to vector<8x1x128xf32>
    %269 = arith.maximumf %267, %268 : vector<8x1x128xf32>
    %270 = vector.extract_strided_slice %258 {offsets = [0, 6, 0], sizes = [8, 1, 128], strides = [1, 1, 1]} : vector<8x8x128xf32> to vector<8x1x128xf32>
    %271 = arith.maximumf %269, %270 : vector<8x1x128xf32>
    %272 = vector.extract_strided_slice %258 {offsets = [0, 7, 0], sizes = [8, 1, 128], strides = [1, 1, 1]} : vector<8x8x128xf32> to vector<8x1x128xf32>
    %273 = arith.maximumf %271, %272 : vector<8x1x128xf32>
    %274 = vector.broadcast %273 : vector<8x1x128xf32> to vector<8x8x128xf32>
    %275 = arith.subf %258, %274 : vector<8x8x128xf32>
    %276 = math.exp %275 : vector<8x8x128xf32>
    %277 = vector.extract_strided_slice %276 {offsets = [0, 0, 0], sizes = [8, 1, 128], strides = [1, 1, 1]} : vector<8x8x128xf32> to vector<8x1x128xf32>
    %278 = vector.extract_strided_slice %276 {offsets = [0, 1, 0], sizes = [8, 1, 128], strides = [1, 1, 1]} : vector<8x8x128xf32> to vector<8x1x128xf32>
    %279 = arith.addf %277, %278 : vector<8x1x128xf32>
    %280 = vector.extract_strided_slice %276 {offsets = [0, 2, 0], sizes = [8, 1, 128], strides = [1, 1, 1]} : vector<8x8x128xf32> to vector<8x1x128xf32>
    %281 = arith.addf %279, %280 : vector<8x1x128xf32>
    %282 = vector.extract_strided_slice %276 {offsets = [0, 3, 0], sizes = [8, 1, 128], strides = [1, 1, 1]} : vector<8x8x128xf32> to vector<8x1x128xf32>
    %283 = arith.addf %281, %282 : vector<8x1x128xf32>
    %284 = vector.extract_strided_slice %276 {offsets = [0, 4, 0], sizes = [8, 1, 128], strides = [1, 1, 1]} : vector<8x8x128xf32> to vector<8x1x128xf32>
    %285 = arith.addf %283, %284 : vector<8x1x128xf32>
    %286 = vector.extract_strided_slice %276 {offsets = [0, 5, 0], sizes = [8, 1, 128], strides = [1, 1, 1]} : vector<8x8x128xf32> to vector<8x1x128xf32>
    %287 = arith.addf %285, %286 : vector<8x1x128xf32>
    %288 = vector.extract_strided_slice %276 {offsets = [0, 6, 0], sizes = [8, 1, 128], strides = [1, 1, 1]} : vector<8x8x128xf32> to vector<8x1x128xf32>
    %289 = arith.addf %287, %288 : vector<8x1x128xf32>
    %290 = vector.extract_strided_slice %276 {offsets = [0, 7, 0], sizes = [8, 1, 128], strides = [1, 1, 1]} : vector<8x8x128xf32> to vector<8x1x128xf32>
    %291 = arith.addf %289, %290 : vector<8x1x128xf32>
    %292 = vector.broadcast %291 : vector<8x1x128xf32> to vector<8x8x128xf32>
    %293 = arith.divf %276, %292 : vector<8x8x128xf32>
    %c0_161 = arith.constant 0 : index
    %c0_162 = arith.constant 0 : index
    %c0_163 = arith.constant 0 : index
    %294 = vector.load %arg3[%c0_161, %c0_162, %c0_163] : memref<8x32x128xf32, #tpu.memory_space<vmem>>, vector<8x32x128xf32>
    %cst_164 = arith.constant 0.000000e+00 : f32
    %295 = vector.broadcast %cst_164 : f32 to vector<32x128xf32>
    %296 = vector.extract_strided_slice %293 {offsets = [0, 0, 0], sizes = [1, 1, 128], strides = [1, 1, 1]} : vector<8x8x128xf32> to vector<1x1x128xf32>
    %297 = vector.shape_cast %296 : vector<1x1x128xf32> to vector<1x128xf32>
    %298 = vector.extract_strided_slice %294 {offsets = [0, 0, 0], sizes = [1, 32, 128], strides = [1, 1, 1]} : vector<8x32x128xf32> to vector<1x32x128xf32>
    %299 = vector.shape_cast %298 : vector<1x32x128xf32> to vector<32x128xf32>
    %300 = vector.broadcast %297 : vector<1x128xf32> to vector<32x128xf32>
    %301 = arith.mulf %300, %299 : vector<32x128xf32>
    %302 = arith.addf %295, %301 : vector<32x128xf32>
    %303 = vector.extract_strided_slice %293 {offsets = [0, 1, 0], sizes = [1, 1, 128], strides = [1, 1, 1]} : vector<8x8x128xf32> to vector<1x1x128xf32>
    %304 = vector.shape_cast %303 : vector<1x1x128xf32> to vector<1x128xf32>
    %305 = vector.extract_strided_slice %294 {offsets = [1, 0, 0], sizes = [1, 32, 128], strides = [1, 1, 1]} : vector<8x32x128xf32> to vector<1x32x128xf32>
    %306 = vector.shape_cast %305 : vector<1x32x128xf32> to vector<32x128xf32>
    %307 = vector.broadcast %304 : vector<1x128xf32> to vector<32x128xf32>
    %308 = arith.mulf %307, %306 : vector<32x128xf32>
    %309 = arith.addf %302, %308 : vector<32x128xf32>
    %310 = vector.extract_strided_slice %293 {offsets = [0, 2, 0], sizes = [1, 1, 128], strides = [1, 1, 1]} : vector<8x8x128xf32> to vector<1x1x128xf32>
    %311 = vector.shape_cast %310 : vector<1x1x128xf32> to vector<1x128xf32>
    %312 = vector.extract_strided_slice %294 {offsets = [2, 0, 0], sizes = [1, 32, 128], strides = [1, 1, 1]} : vector<8x32x128xf32> to vector<1x32x128xf32>
    %313 = vector.shape_cast %312 : vector<1x32x128xf32> to vector<32x128xf32>
    %314 = vector.broadcast %311 : vector<1x128xf32> to vector<32x128xf32>
    %315 = arith.mulf %314, %313 : vector<32x128xf32>
    %316 = arith.addf %309, %315 : vector<32x128xf32>
    %317 = vector.extract_strided_slice %293 {offsets = [0, 3, 0], sizes = [1, 1, 128], strides = [1, 1, 1]} : vector<8x8x128xf32> to vector<1x1x128xf32>
    %318 = vector.shape_cast %317 : vector<1x1x128xf32> to vector<1x128xf32>
    %319 = vector.extract_strided_slice %294 {offsets = [3, 0, 0], sizes = [1, 32, 128], strides = [1, 1, 1]} : vector<8x32x128xf32> to vector<1x32x128xf32>
    %320 = vector.shape_cast %319 : vector<1x32x128xf32> to vector<32x128xf32>
    %321 = vector.broadcast %318 : vector<1x128xf32> to vector<32x128xf32>
    %322 = arith.mulf %321, %320 : vector<32x128xf32>
    %323 = arith.addf %316, %322 : vector<32x128xf32>
    %324 = vector.extract_strided_slice %293 {offsets = [0, 4, 0], sizes = [1, 1, 128], strides = [1, 1, 1]} : vector<8x8x128xf32> to vector<1x1x128xf32>
    %325 = vector.shape_cast %324 : vector<1x1x128xf32> to vector<1x128xf32>
    %326 = vector.extract_strided_slice %294 {offsets = [4, 0, 0], sizes = [1, 32, 128], strides = [1, 1, 1]} : vector<8x32x128xf32> to vector<1x32x128xf32>
    %327 = vector.shape_cast %326 : vector<1x32x128xf32> to vector<32x128xf32>
    %328 = vector.broadcast %325 : vector<1x128xf32> to vector<32x128xf32>
    %329 = arith.mulf %328, %327 : vector<32x128xf32>
    %330 = arith.addf %323, %329 : vector<32x128xf32>
    %331 = vector.extract_strided_slice %293 {offsets = [0, 5, 0], sizes = [1, 1, 128], strides = [1, 1, 1]} : vector<8x8x128xf32> to vector<1x1x128xf32>
    %332 = vector.shape_cast %331 : vector<1x1x128xf32> to vector<1x128xf32>
    %333 = vector.extract_strided_slice %294 {offsets = [5, 0, 0], sizes = [1, 32, 128], strides = [1, 1, 1]} : vector<8x32x128xf32> to vector<1x32x128xf32>
    %334 = vector.shape_cast %333 : vector<1x32x128xf32> to vector<32x128xf32>
    %335 = vector.broadcast %332 : vector<1x128xf32> to vector<32x128xf32>
    %336 = arith.mulf %335, %334 : vector<32x128xf32>
    %337 = arith.addf %330, %336 : vector<32x128xf32>
    %338 = vector.extract_strided_slice %293 {offsets = [0, 6, 0], sizes = [1, 1, 128], strides = [1, 1, 1]} : vector<8x8x128xf32> to vector<1x1x128xf32>
    %339 = vector.shape_cast %338 : vector<1x1x128xf32> to vector<1x128xf32>
    %340 = vector.extract_strided_slice %294 {offsets = [6, 0, 0], sizes = [1, 32, 128], strides = [1, 1, 1]} : vector<8x32x128xf32> to vector<1x32x128xf32>
    %341 = vector.shape_cast %340 : vector<1x32x128xf32> to vector<32x128xf32>
    %342 = vector.broadcast %339 : vector<1x128xf32> to vector<32x128xf32>
    %343 = arith.mulf %342, %341 : vector<32x128xf32>
    %344 = arith.addf %337, %343 : vector<32x128xf32>
    %345 = vector.extract_strided_slice %293 {offsets = [0, 7, 0], sizes = [1, 1, 128], strides = [1, 1, 1]} : vector<8x8x128xf32> to vector<1x1x128xf32>
    %346 = vector.shape_cast %345 : vector<1x1x128xf32> to vector<1x128xf32>
    %347 = vector.extract_strided_slice %294 {offsets = [7, 0, 0], sizes = [1, 32, 128], strides = [1, 1, 1]} : vector<8x32x128xf32> to vector<1x32x128xf32>
    %348 = vector.shape_cast %347 : vector<1x32x128xf32> to vector<32x128xf32>
    %349 = vector.broadcast %346 : vector<1x128xf32> to vector<32x128xf32>
    %350 = arith.mulf %349, %348 : vector<32x128xf32>
    %351 = arith.addf %344, %350 : vector<32x128xf32>
    %c0_165 = arith.constant 0 : index
    %c0_166 = arith.constant 0 : index
    %c0_167 = arith.constant 0 : index
    %352 = vector.load %arg4[%c0_165, %c0_166, %c0_167] : memref<8x32x128xf32, #tpu.memory_space<vmem>>, vector<1x32x128xf32>
    %353 = vector.shape_cast %352 : vector<1x32x128xf32> to vector<32x128xf32>
    %354 = vector.shape_cast %351 : vector<32x128xf32> to vector<1x32x128xf32>
    tpu.vector_store %arg4[%c0_165, %c0_166, %c0_167], %354 {strides = array<i32>} : memref<8x32x128xf32, #tpu.memory_space<vmem>>, vector<1x32x128xf32>,
    %cst_168 = arith.constant 0.000000e+00 : f32
    %355 = vector.broadcast %cst_168 : f32 to vector<32x128xf32>
    %356 = vector.extract_strided_slice %293 {offsets = [1, 0, 0], sizes = [1, 1, 128], strides = [1, 1, 1]} : vector<8x8x128xf32> to vector<1x1x128xf32>
    %357 = vector.shape_cast %356 : vector<1x1x128xf32> to vector<1x128xf32>
    %358 = vector.extract_strided_slice %294 {offsets = [0, 0, 0], sizes = [1, 32, 128], strides = [1, 1, 1]} : vector<8x32x128xf32> to vector<1x32x128xf32>
    %359 = vector.shape_cast %358 : vector<1x32x128xf32> to vector<32x128xf32>
    %360 = vector.broadcast %357 : vector<1x128xf32> to vector<32x128xf32>
    %361 = arith.mulf %360, %359 : vector<32x128xf32>
    %362 = arith.addf %355, %361 : vector<32x128xf32>
    %363 = vector.extract_strided_slice %293 {offsets = [1, 1, 0], sizes = [1, 1, 128], strides = [1, 1, 1]} : vector<8x8x128xf32> to vector<1x1x128xf32>
    %364 = vector.shape_cast %363 : vector<1x1x128xf32> to vector<1x128xf32>
    %365 = vector.extract_strided_slice %294 {offsets = [1, 0, 0], sizes = [1, 32, 128], strides = [1, 1, 1]} : vector<8x32x128xf32> to vector<1x32x128xf32>
    %366 = vector.shape_cast %365 : vector<1x32x128xf32> to vector<32x128xf32>
    %367 = vector.broadcast %364 : vector<1x128xf32> to vector<32x128xf32>
    %368 = arith.mulf %367, %366 : vector<32x128xf32>
    %369 = arith.addf %362, %368 : vector<32x128xf32>
    %370 = vector.extract_strided_slice %293 {offsets = [1, 2, 0], sizes = [1, 1, 128], strides = [1, 1, 1]} : vector<8x8x128xf32> to vector<1x1x128xf32>
    %371 = vector.shape_cast %370 : vector<1x1x128xf32> to vector<1x128xf32>
    %372 = vector.extract_strided_slice %294 {offsets = [2, 0, 0], sizes = [1, 32, 128], strides = [1, 1, 1]} : vector<8x32x128xf32> to vector<1x32x128xf32>
    %373 = vector.shape_cast %372 : vector<1x32x128xf32> to vector<32x128xf32>
    %374 = vector.broadcast %371 : vector<1x128xf32> to vector<32x128xf32>
    %375 = arith.mulf %374, %373 : vector<32x128xf32>
    %376 = arith.addf %369, %375 : vector<32x128xf32>
    %377 = vector.extract_strided_slice %293 {offsets = [1, 3, 0], sizes = [1, 1, 128], strides = [1, 1, 1]} : vector<8x8x128xf32> to vector<1x1x128xf32>
    %378 = vector.shape_cast %377 : vector<1x1x128xf32> to vector<1x128xf32>
    %379 = vector.extract_strided_slice %294 {offsets = [3, 0, 0], sizes = [1, 32, 128], strides = [1, 1, 1]} : vector<8x32x128xf32> to vector<1x32x128xf32>
    %380 = vector.shape_cast %379 : vector<1x32x128xf32> to vector<32x128xf32>
    %381 = vector.broadcast %378 : vector<1x128xf32> to vector<32x128xf32>
    %382 = arith.mulf %381, %380 : vector<32x128xf32>
    %383 = arith.addf %376, %382 : vector<32x128xf32>
    %384 = vector.extract_strided_slice %293 {offsets = [1, 4, 0], sizes = [1, 1, 128], strides = [1, 1, 1]} : vector<8x8x128xf32> to vector<1x1x128xf32>
    %385 = vector.shape_cast %384 : vector<1x1x128xf32> to vector<1x128xf32>
    %386 = vector.extract_strided_slice %294 {offsets = [4, 0, 0], sizes = [1, 32, 128], strides = [1, 1, 1]} : vector<8x32x128xf32> to vector<1x32x128xf32>
    %387 = vector.shape_cast %386 : vector<1x32x128xf32> to vector<32x128xf32>
    %388 = vector.broadcast %385 : vector<1x128xf32> to vector<32x128xf32>
    %389 = arith.mulf %388, %387 : vector<32x128xf32>
    %390 = arith.addf %383, %389 : vector<32x128xf32>
    %391 = vector.extract_strided_slice %293 {offsets = [1, 5, 0], sizes = [1, 1, 128], strides = [1, 1, 1]} : vector<8x8x128xf32> to vector<1x1x128xf32>
    %392 = vector.shape_cast %391 : vector<1x1x128xf32> to vector<1x128xf32>
    %393 = vector.extract_strided_slice %294 {offsets = [5, 0, 0], sizes = [1, 32, 128], strides = [1, 1, 1]} : vector<8x32x128xf32> to vector<1x32x128xf32>
    %394 = vector.shape_cast %393 : vector<1x32x128xf32> to vector<32x128xf32>
    %395 = vector.broadcast %392 : vector<1x128xf32> to vector<32x128xf32>
    %396 = arith.mulf %395, %394 : vector<32x128xf32>
    %397 = arith.addf %390, %396 : vector<32x128xf32>
    %398 = vector.extract_strided_slice %293 {offsets = [1, 6, 0], sizes = [1, 1, 128], strides = [1, 1, 1]} : vector<8x8x128xf32> to vector<1x1x128xf32>
    %399 = vector.shape_cast %398 : vector<1x1x128xf32> to vector<1x128xf32>
    %400 = vector.extract_strided_slice %294 {offsets = [6, 0, 0], sizes = [1, 32, 128], strides = [1, 1, 1]} : vector<8x32x128xf32> to vector<1x32x128xf32>
    %401 = vector.shape_cast %400 : vector<1x32x128xf32> to vector<32x128xf32>
    %402 = vector.broadcast %399 : vector<1x128xf32> to vector<32x128xf32>
    %403 = arith.mulf %402, %401 : vector<32x128xf32>
    %404 = arith.addf %397, %403 : vector<32x128xf32>
    %405 = vector.extract_strided_slice %293 {offsets = [1, 7, 0], sizes = [1, 1, 128], strides = [1, 1, 1]} : vector<8x8x128xf32> to vector<1x1x128xf32>
    %406 = vector.shape_cast %405 : vector<1x1x128xf32> to vector<1x128xf32>
    %407 = vector.extract_strided_slice %294 {offsets = [7, 0, 0], sizes = [1, 32, 128], strides = [1, 1, 1]} : vector<8x32x128xf32> to vector<1x32x128xf32>
    %408 = vector.shape_cast %407 : vector<1x32x128xf32> to vector<32x128xf32>
    %409 = vector.broadcast %406 : vector<1x128xf32> to vector<32x128xf32>
    %410 = arith.mulf %409, %408 : vector<32x128xf32>
    %411 = arith.addf %404, %410 : vector<32x128xf32>
    %c1_169 = arith.constant 1 : index
    %c0_170 = arith.constant 0 : index
    %c0_171 = arith.constant 0 : index
    %412 = vector.load %arg4[%c1_169, %c0_170, %c0_171] : memref<8x32x128xf32, #tpu.memory_space<vmem>>, vector<1x32x128xf32>
    %413 = vector.shape_cast %412 : vector<1x32x128xf32> to vector<32x128xf32>
    %414 = vector.shape_cast %411 : vector<32x128xf32> to vector<1x32x128xf32>
    tpu.vector_store %arg4[%c1_169, %c0_170, %c0_171], %414 {strides = array<i32>} : memref<8x32x128xf32, #tpu.memory_space<vmem>>, vector<1x32x128xf32>,
    %cst_172 = arith.constant 0.000000e+00 : f32
    %415 = vector.broadcast %cst_172 : f32 to vector<32x128xf32>
    %416 = vector.extract_strided_slice %293 {offsets = [2, 0, 0], sizes = [1, 1, 128], strides = [1, 1, 1]} : vector<8x8x128xf32> to vector<1x1x128xf32>
    %417 = vector.shape_cast %416 : vector<1x1x128xf32> to vector<1x128xf32>
    %418 = vector.extract_strided_slice %294 {offsets = [0, 0, 0], sizes = [1, 32, 128], strides = [1, 1, 1]} : vector<8x32x128xf32> to vector<1x32x128xf32>
    %419 = vector.shape_cast %418 : vector<1x32x128xf32> to vector<32x128xf32>
    %420 = vector.broadcast %417 : vector<1x128xf32> to vector<32x128xf32>
    %421 = arith.mulf %420, %419 : vector<32x128xf32>
    %422 = arith.addf %415, %421 : vector<32x128xf32>
    %423 = vector.extract_strided_slice %293 {offsets = [2, 1, 0], sizes = [1, 1, 128], strides = [1, 1, 1]} : vector<8x8x128xf32> to vector<1x1x128xf32>
    %424 = vector.shape_cast %423 : vector<1x1x128xf32> to vector<1x128xf32>
    %425 = vector.extract_strided_slice %294 {offsets = [1, 0, 0], sizes = [1, 32, 128], strides = [1, 1, 1]} : vector<8x32x128xf32> to vector<1x32x128xf32>
    %426 = vector.shape_cast %425 : vector<1x32x128xf32> to vector<32x128xf32>
    %427 = vector.broadcast %424 : vector<1x128xf32> to vector<32x128xf32>
    %428 = arith.mulf %427, %426 : vector<32x128xf32>
    %429 = arith.addf %422, %428 : vector<32x128xf32>
    %430 = vector.extract_strided_slice %293 {offsets = [2, 2, 0], sizes = [1, 1, 128], strides = [1, 1, 1]} : vector<8x8x128xf32> to vector<1x1x128xf32>
    %431 = vector.shape_cast %430 : vector<1x1x128xf32> to vector<1x128xf32>
    %432 = vector.extract_strided_slice %294 {offsets = [2, 0, 0], sizes = [1, 32, 128], strides = [1, 1, 1]} : vector<8x32x128xf32> to vector<1x32x128xf32>
    %433 = vector.shape_cast %432 : vector<1x32x128xf32> to vector<32x128xf32>
    %434 = vector.broadcast %431 : vector<1x128xf32> to vector<32x128xf32>
    %435 = arith.mulf %434, %433 : vector<32x128xf32>
    %436 = arith.addf %429, %435 : vector<32x128xf32>
    %437 = vector.extract_strided_slice %293 {offsets = [2, 3, 0], sizes = [1, 1, 128], strides = [1, 1, 1]} : vector<8x8x128xf32> to vector<1x1x128xf32>
    %438 = vector.shape_cast %437 : vector<1x1x128xf32> to vector<1x128xf32>
    %439 = vector.extract_strided_slice %294 {offsets = [3, 0, 0], sizes = [1, 32, 128], strides = [1, 1, 1]} : vector<8x32x128xf32> to vector<1x32x128xf32>
    %440 = vector.shape_cast %439 : vector<1x32x128xf32> to vector<32x128xf32>
    %441 = vector.broadcast %438 : vector<1x128xf32> to vector<32x128xf32>
    %442 = arith.mulf %441, %440 : vector<32x128xf32>
    %443 = arith.addf %436, %442 : vector<32x128xf32>
    %444 = vector.extract_strided_slice %293 {offsets = [2, 4, 0], sizes = [1, 1, 128], strides = [1, 1, 1]} : vector<8x8x128xf32> to vector<1x1x128xf32>
    %445 = vector.shape_cast %444 : vector<1x1x128xf32> to vector<1x128xf32>
    %446 = vector.extract_strided_slice %294 {offsets = [4, 0, 0], sizes = [1, 32, 128], strides = [1, 1, 1]} : vector<8x32x128xf32> to vector<1x32x128xf32>
    %447 = vector.shape_cast %446 : vector<1x32x128xf32> to vector<32x128xf32>
    %448 = vector.broadcast %445 : vector<1x128xf32> to vector<32x128xf32>
    %449 = arith.mulf %448, %447 : vector<32x128xf32>
    %450 = arith.addf %443, %449 : vector<32x128xf32>
    %451 = vector.extract_strided_slice %293 {offsets = [2, 5, 0], sizes = [1, 1, 128], strides = [1, 1, 1]} : vector<8x8x128xf32> to vector<1x1x128xf32>
    %452 = vector.shape_cast %451 : vector<1x1x128xf32> to vector<1x128xf32>
    %453 = vector.extract_strided_slice %294 {offsets = [5, 0, 0], sizes = [1, 32, 128], strides = [1, 1, 1]} : vector<8x32x128xf32> to vector<1x32x128xf32>
    %454 = vector.shape_cast %453 : vector<1x32x128xf32> to vector<32x128xf32>
    %455 = vector.broadcast %452 : vector<1x128xf32> to vector<32x128xf32>
    %456 = arith.mulf %455, %454 : vector<32x128xf32>
    %457 = arith.addf %450, %456 : vector<32x128xf32>
    %458 = vector.extract_strided_slice %293 {offsets = [2, 6, 0], sizes = [1, 1, 128], strides = [1, 1, 1]} : vector<8x8x128xf32> to vector<1x1x128xf32>
    %459 = vector.shape_cast %458 : vector<1x1x128xf32> to vector<1x128xf32>
    %460 = vector.extract_strided_slice %294 {offsets = [6, 0, 0], sizes = [1, 32, 128], strides = [1, 1, 1]} : vector<8x32x128xf32> to vector<1x32x128xf32>
    %461 = vector.shape_cast %460 : vector<1x32x128xf32> to vector<32x128xf32>
    %462 = vector.broadcast %459 : vector<1x128xf32> to vector<32x128xf32>
    %463 = arith.mulf %462, %461 : vector<32x128xf32>
    %464 = arith.addf %457, %463 : vector<32x128xf32>
    %465 = vector.extract_strided_slice %293 {offsets = [2, 7, 0], sizes = [1, 1, 128], strides = [1, 1, 1]} : vector<8x8x128xf32> to vector<1x1x128xf32>
    %466 = vector.shape_cast %465 : vector<1x1x128xf32> to vector<1x128xf32>
    %467 = vector.extract_strided_slice %294 {offsets = [7, 0, 0], sizes = [1, 32, 128], strides = [1, 1, 1]} : vector<8x32x128xf32> to vector<1x32x128xf32>
    %468 = vector.shape_cast %467 : vector<1x32x128xf32> to vector<32x128xf32>
    %469 = vector.broadcast %466 : vector<1x128xf32> to vector<32x128xf32>
    %470 = arith.mulf %469, %468 : vector<32x128xf32>
    %471 = arith.addf %464, %470 : vector<32x128xf32>
    %c2_173 = arith.constant 2 : index
    %c0_174 = arith.constant 0 : index
    %c0_175 = arith.constant 0 : index
    %472 = vector.load %arg4[%c2_173, %c0_174, %c0_175] : memref<8x32x128xf32, #tpu.memory_space<vmem>>, vector<1x32x128xf32>
    %473 = vector.shape_cast %472 : vector<1x32x128xf32> to vector<32x128xf32>
    %474 = vector.shape_cast %471 : vector<32x128xf32> to vector<1x32x128xf32>
    tpu.vector_store %arg4[%c2_173, %c0_174, %c0_175], %474 {strides = array<i32>} : memref<8x32x128xf32, #tpu.memory_space<vmem>>, vector<1x32x128xf32>,
    %cst_176 = arith.constant 0.000000e+00 : f32
    %475 = vector.broadcast %cst_176 : f32 to vector<32x128xf32>
    %476 = vector.extract_strided_slice %293 {offsets = [3, 0, 0], sizes = [1, 1, 128], strides = [1, 1, 1]} : vector<8x8x128xf32> to vector<1x1x128xf32>
    %477 = vector.shape_cast %476 : vector<1x1x128xf32> to vector<1x128xf32>
    %478 = vector.extract_strided_slice %294 {offsets = [0, 0, 0], sizes = [1, 32, 128], strides = [1, 1, 1]} : vector<8x32x128xf32> to vector<1x32x128xf32>
    %479 = vector.shape_cast %478 : vector<1x32x128xf32> to vector<32x128xf32>
    %480 = vector.broadcast %477 : vector<1x128xf32> to vector<32x128xf32>
    %481 = arith.mulf %480, %479 : vector<32x128xf32>
    %482 = arith.addf %475, %481 : vector<32x128xf32>
    %483 = vector.extract_strided_slice %293 {offsets = [3, 1, 0], sizes = [1, 1, 128], strides = [1, 1, 1]} : vector<8x8x128xf32> to vector<1x1x128xf32>
    %484 = vector.shape_cast %483 : vector<1x1x128xf32> to vector<1x128xf32>
    %485 = vector.extract_strided_slice %294 {offsets = [1, 0, 0], sizes = [1, 32, 128], strides = [1, 1, 1]} : vector<8x32x128xf32> to vector<1x32x128xf32>
    %486 = vector.shape_cast %485 : vector<1x32x128xf32> to vector<32x128xf32>
    %487 = vector.broadcast %484 : vector<1x128xf32> to vector<32x128xf32>
    %488 = arith.mulf %487, %486 : vector<32x128xf32>
    %489 = arith.addf %482, %488 : vector<32x128xf32>
    %490 = vector.extract_strided_slice %293 {offsets = [3, 2, 0], sizes = [1, 1, 128], strides = [1, 1, 1]} : vector<8x8x128xf32> to vector<1x1x128xf32>
    %491 = vector.shape_cast %490 : vector<1x1x128xf32> to vector<1x128xf32>
    %492 = vector.extract_strided_slice %294 {offsets = [2, 0, 0], sizes = [1, 32, 128], strides = [1, 1, 1]} : vector<8x32x128xf32> to vector<1x32x128xf32>
    %493 = vector.shape_cast %492 : vector<1x32x128xf32> to vector<32x128xf32>
    %494 = vector.broadcast %491 : vector<1x128xf32> to vector<32x128xf32>
    %495 = arith.mulf %494, %493 : vector<32x128xf32>
    %496 = arith.addf %489, %495 : vector<32x128xf32>
    %497 = vector.extract_strided_slice %293 {offsets = [3, 3, 0], sizes = [1, 1, 128], strides = [1, 1, 1]} : vector<8x8x128xf32> to vector<1x1x128xf32>
    %498 = vector.shape_cast %497 : vector<1x1x128xf32> to vector<1x128xf32>
    %499 = vector.extract_strided_slice %294 {offsets = [3, 0, 0], sizes = [1, 32, 128], strides = [1, 1, 1]} : vector<8x32x128xf32> to vector<1x32x128xf32>
    %500 = vector.shape_cast %499 : vector<1x32x128xf32> to vector<32x128xf32>
    %501 = vector.broadcast %498 : vector<1x128xf32> to vector<32x128xf32>
    %502 = arith.mulf %501, %500 : vector<32x128xf32>
    %503 = arith.addf %496, %502 : vector<32x128xf32>
    %504 = vector.extract_strided_slice %293 {offsets = [3, 4, 0], sizes = [1, 1, 128], strides = [1, 1, 1]} : vector<8x8x128xf32> to vector<1x1x128xf32>
    %505 = vector.shape_cast %504 : vector<1x1x128xf32> to vector<1x128xf32>
    %506 = vector.extract_strided_slice %294 {offsets = [4, 0, 0], sizes = [1, 32, 128], strides = [1, 1, 1]} : vector<8x32x128xf32> to vector<1x32x128xf32>
    %507 = vector.shape_cast %506 : vector<1x32x128xf32> to vector<32x128xf32>
    %508 = vector.broadcast %505 : vector<1x128xf32> to vector<32x128xf32>
    %509 = arith.mulf %508, %507 : vector<32x128xf32>
    %510 = arith.addf %503, %509 : vector<32x128xf32>
    %511 = vector.extract_strided_slice %293 {offsets = [3, 5, 0], sizes = [1, 1, 128], strides = [1, 1, 1]} : vector<8x8x128xf32> to vector<1x1x128xf32>
    %512 = vector.shape_cast %511 : vector<1x1x128xf32> to vector<1x128xf32>
    %513 = vector.extract_strided_slice %294 {offsets = [5, 0, 0], sizes = [1, 32, 128], strides = [1, 1, 1]} : vector<8x32x128xf32> to vector<1x32x128xf32>
    %514 = vector.shape_cast %513 : vector<1x32x128xf32> to vector<32x128xf32>
    %515 = vector.broadcast %512 : vector<1x128xf32> to vector<32x128xf32>
    %516 = arith.mulf %515, %514 : vector<32x128xf32>
    %517 = arith.addf %510, %516 : vector<32x128xf32>
    %518 = vector.extract_strided_slice %293 {offsets = [3, 6, 0], sizes = [1, 1, 128], strides = [1, 1, 1]} : vector<8x8x128xf32> to vector<1x1x128xf32>
    %519 = vector.shape_cast %518 : vector<1x1x128xf32> to vector<1x128xf32>
    %520 = vector.extract_strided_slice %294 {offsets = [6, 0, 0], sizes = [1, 32, 128], strides = [1, 1, 1]} : vector<8x32x128xf32> to vector<1x32x128xf32>
    %521 = vector.shape_cast %520 : vector<1x32x128xf32> to vector<32x128xf32>
    %522 = vector.broadcast %519 : vector<1x128xf32> to vector<32x128xf32>
    %523 = arith.mulf %522, %521 : vector<32x128xf32>
    %524 = arith.addf %517, %523 : vector<32x128xf32>
    %525 = vector.extract_strided_slice %293 {offsets = [3, 7, 0], sizes = [1, 1, 128], strides = [1, 1, 1]} : vector<8x8x128xf32> to vector<1x1x128xf32>
    %526 = vector.shape_cast %525 : vector<1x1x128xf32> to vector<1x128xf32>
    %527 = vector.extract_strided_slice %294 {offsets = [7, 0, 0], sizes = [1, 32, 128], strides = [1, 1, 1]} : vector<8x32x128xf32> to vector<1x32x128xf32>
    %528 = vector.shape_cast %527 : vector<1x32x128xf32> to vector<32x128xf32>
    %529 = vector.broadcast %526 : vector<1x128xf32> to vector<32x128xf32>
    %530 = arith.mulf %529, %528 : vector<32x128xf32>
    %531 = arith.addf %524, %530 : vector<32x128xf32>
    %c3_177 = arith.constant 3 : index
    %c0_178 = arith.constant 0 : index
    %c0_179 = arith.constant 0 : index
    %532 = vector.load %arg4[%c3_177, %c0_178, %c0_179] : memref<8x32x128xf32, #tpu.memory_space<vmem>>, vector<1x32x128xf32>
    %533 = vector.shape_cast %532 : vector<1x32x128xf32> to vector<32x128xf32>
    %534 = vector.shape_cast %531 : vector<32x128xf32> to vector<1x32x128xf32>
    tpu.vector_store %arg4[%c3_177, %c0_178, %c0_179], %534 {strides = array<i32>} : memref<8x32x128xf32, #tpu.memory_space<vmem>>, vector<1x32x128xf32>,
    %cst_180 = arith.constant 0.000000e+00 : f32
    %535 = vector.broadcast %cst_180 : f32 to vector<32x128xf32>
    %536 = vector.extract_strided_slice %293 {offsets = [4, 0, 0], sizes = [1, 1, 128], strides = [1, 1, 1]} : vector<8x8x128xf32> to vector<1x1x128xf32>
    %537 = vector.shape_cast %536 : vector<1x1x128xf32> to vector<1x128xf32>
    %538 = vector.extract_strided_slice %294 {offsets = [0, 0, 0], sizes = [1, 32, 128], strides = [1, 1, 1]} : vector<8x32x128xf32> to vector<1x32x128xf32>
    %539 = vector.shape_cast %538 : vector<1x32x128xf32> to vector<32x128xf32>
    %540 = vector.broadcast %537 : vector<1x128xf32> to vector<32x128xf32>
    %541 = arith.mulf %540, %539 : vector<32x128xf32>
    %542 = arith.addf %535, %541 : vector<32x128xf32>
    %543 = vector.extract_strided_slice %293 {offsets = [4, 1, 0], sizes = [1, 1, 128], strides = [1, 1, 1]} : vector<8x8x128xf32> to vector<1x1x128xf32>
    %544 = vector.shape_cast %543 : vector<1x1x128xf32> to vector<1x128xf32>
    %545 = vector.extract_strided_slice %294 {offsets = [1, 0, 0], sizes = [1, 32, 128], strides = [1, 1, 1]} : vector<8x32x128xf32> to vector<1x32x128xf32>
    %546 = vector.shape_cast %545 : vector<1x32x128xf32> to vector<32x128xf32>
    %547 = vector.broadcast %544 : vector<1x128xf32> to vector<32x128xf32>
    %548 = arith.mulf %547, %546 : vector<32x128xf32>
    %549 = arith.addf %542, %548 : vector<32x128xf32>
    %550 = vector.extract_strided_slice %293 {offsets = [4, 2, 0], sizes = [1, 1, 128], strides = [1, 1, 1]} : vector<8x8x128xf32> to vector<1x1x128xf32>
    %551 = vector.shape_cast %550 : vector<1x1x128xf32> to vector<1x128xf32>
    %552 = vector.extract_strided_slice %294 {offsets = [2, 0, 0], sizes = [1, 32, 128], strides = [1, 1, 1]} : vector<8x32x128xf32> to vector<1x32x128xf32>
    %553 = vector.shape_cast %552 : vector<1x32x128xf32> to vector<32x128xf32>
    %554 = vector.broadcast %551 : vector<1x128xf32> to vector<32x128xf32>
    %555 = arith.mulf %554, %553 : vector<32x128xf32>
    %556 = arith.addf %549, %555 : vector<32x128xf32>
    %557 = vector.extract_strided_slice %293 {offsets = [4, 3, 0], sizes = [1, 1, 128], strides = [1, 1, 1]} : vector<8x8x128xf32> to vector<1x1x128xf32>
    %558 = vector.shape_cast %557 : vector<1x1x128xf32> to vector<1x128xf32>
    %559 = vector.extract_strided_slice %294 {offsets = [3, 0, 0], sizes = [1, 32, 128], strides = [1, 1, 1]} : vector<8x32x128xf32> to vector<1x32x128xf32>
    %560 = vector.shape_cast %559 : vector<1x32x128xf32> to vector<32x128xf32>
    %561 = vector.broadcast %558 : vector<1x128xf32> to vector<32x128xf32>
    %562 = arith.mulf %561, %560 : vector<32x128xf32>
    %563 = arith.addf %556, %562 : vector<32x128xf32>
    %564 = vector.extract_strided_slice %293 {offsets = [4, 4, 0], sizes = [1, 1, 128], strides = [1, 1, 1]} : vector<8x8x128xf32> to vector<1x1x128xf32>
    %565 = vector.shape_cast %564 : vector<1x1x128xf32> to vector<1x128xf32>
    %566 = vector.extract_strided_slice %294 {offsets = [4, 0, 0], sizes = [1, 32, 128], strides = [1, 1, 1]} : vector<8x32x128xf32> to vector<1x32x128xf32>
    %567 = vector.shape_cast %566 : vector<1x32x128xf32> to vector<32x128xf32>
    %568 = vector.broadcast %565 : vector<1x128xf32> to vector<32x128xf32>
    %569 = arith.mulf %568, %567 : vector<32x128xf32>
    %570 = arith.addf %563, %569 : vector<32x128xf32>
    %571 = vector.extract_strided_slice %293 {offsets = [4, 5, 0], sizes = [1, 1, 128], strides = [1, 1, 1]} : vector<8x8x128xf32> to vector<1x1x128xf32>
    %572 = vector.shape_cast %571 : vector<1x1x128xf32> to vector<1x128xf32>
    %573 = vector.extract_strided_slice %294 {offsets = [5, 0, 0], sizes = [1, 32, 128], strides = [1, 1, 1]} : vector<8x32x128xf32> to vector<1x32x128xf32>
    %574 = vector.shape_cast %573 : vector<1x32x128xf32> to vector<32x128xf32>
    %575 = vector.broadcast %572 : vector<1x128xf32> to vector<32x128xf32>
    %576 = arith.mulf %575, %574 : vector<32x128xf32>
    %577 = arith.addf %570, %576 : vector<32x128xf32>
    %578 = vector.extract_strided_slice %293 {offsets = [4, 6, 0], sizes = [1, 1, 128], strides = [1, 1, 1]} : vector<8x8x128xf32> to vector<1x1x128xf32>
    %579 = vector.shape_cast %578 : vector<1x1x128xf32> to vector<1x128xf32>
    %580 = vector.extract_strided_slice %294 {offsets = [6, 0, 0], sizes = [1, 32, 128], strides = [1, 1, 1]} : vector<8x32x128xf32> to vector<1x32x128xf32>
    %581 = vector.shape_cast %580 : vector<1x32x128xf32> to vector<32x128xf32>
    %582 = vector.broadcast %579 : vector<1x128xf32> to vector<32x128xf32>
    %583 = arith.mulf %582, %581 : vector<32x128xf32>
    %584 = arith.addf %577, %583 : vector<32x128xf32>
    %585 = vector.extract_strided_slice %293 {offsets = [4, 7, 0], sizes = [1, 1, 128], strides = [1, 1, 1]} : vector<8x8x128xf32> to vector<1x1x128xf32>
    %586 = vector.shape_cast %585 : vector<1x1x128xf32> to vector<1x128xf32>
    %587 = vector.extract_strided_slice %294 {offsets = [7, 0, 0], sizes = [1, 32, 128], strides = [1, 1, 1]} : vector<8x32x128xf32> to vector<1x32x128xf32>
    %588 = vector.shape_cast %587 : vector<1x32x128xf32> to vector<32x128xf32>
    %589 = vector.broadcast %586 : vector<1x128xf32> to vector<32x128xf32>
    %590 = arith.mulf %589, %588 : vector<32x128xf32>
    %591 = arith.addf %584, %590 : vector<32x128xf32>
    %c4_181 = arith.constant 4 : index
    %c0_182 = arith.constant 0 : index
    %c0_183 = arith.constant 0 : index
    %592 = vector.load %arg4[%c4_181, %c0_182, %c0_183] : memref<8x32x128xf32, #tpu.memory_space<vmem>>, vector<1x32x128xf32>
    %593 = vector.shape_cast %592 : vector<1x32x128xf32> to vector<32x128xf32>
    %594 = vector.shape_cast %591 : vector<32x128xf32> to vector<1x32x128xf32>
    tpu.vector_store %arg4[%c4_181, %c0_182, %c0_183], %594 {strides = array<i32>} : memref<8x32x128xf32, #tpu.memory_space<vmem>>, vector<1x32x128xf32>,
    %cst_184 = arith.constant 0.000000e+00 : f32
    %595 = vector.broadcast %cst_184 : f32 to vector<32x128xf32>
    %596 = vector.extract_strided_slice %293 {offsets = [5, 0, 0], sizes = [1, 1, 128], strides = [1, 1, 1]} : vector<8x8x128xf32> to vector<1x1x128xf32>
    %597 = vector.shape_cast %596 : vector<1x1x128xf32> to vector<1x128xf32>
    %598 = vector.extract_strided_slice %294 {offsets = [0, 0, 0], sizes = [1, 32, 128], strides = [1, 1, 1]} : vector<8x32x128xf32> to vector<1x32x128xf32>
    %599 = vector.shape_cast %598 : vector<1x32x128xf32> to vector<32x128xf32>
    %600 = vector.broadcast %597 : vector<1x128xf32> to vector<32x128xf32>
    %601 = arith.mulf %600, %599 : vector<32x128xf32>
    %602 = arith.addf %595, %601 : vector<32x128xf32>
    %603 = vector.extract_strided_slice %293 {offsets = [5, 1, 0], sizes = [1, 1, 128], strides = [1, 1, 1]} : vector<8x8x128xf32> to vector<1x1x128xf32>
    %604 = vector.shape_cast %603 : vector<1x1x128xf32> to vector<1x128xf32>
    %605 = vector.extract_strided_slice %294 {offsets = [1, 0, 0], sizes = [1, 32, 128], strides = [1, 1, 1]} : vector<8x32x128xf32> to vector<1x32x128xf32>
    %606 = vector.shape_cast %605 : vector<1x32x128xf32> to vector<32x128xf32>
    %607 = vector.broadcast %604 : vector<1x128xf32> to vector<32x128xf32>
    %608 = arith.mulf %607, %606 : vector<32x128xf32>
    %609 = arith.addf %602, %608 : vector<32x128xf32>
    %610 = vector.extract_strided_slice %293 {offsets = [5, 2, 0], sizes = [1, 1, 128], strides = [1, 1, 1]} : vector<8x8x128xf32> to vector<1x1x128xf32>
    %611 = vector.shape_cast %610 : vector<1x1x128xf32> to vector<1x128xf32>
    %612 = vector.extract_strided_slice %294 {offsets = [2, 0, 0], sizes = [1, 32, 128], strides = [1, 1, 1]} : vector<8x32x128xf32> to vector<1x32x128xf32>
    %613 = vector.shape_cast %612 : vector<1x32x128xf32> to vector<32x128xf32>
    %614 = vector.broadcast %611 : vector<1x128xf32> to vector<32x128xf32>
    %615 = arith.mulf %614, %613 : vector<32x128xf32>
    %616 = arith.addf %609, %615 : vector<32x128xf32>
    %617 = vector.extract_strided_slice %293 {offsets = [5, 3, 0], sizes = [1, 1, 128], strides = [1, 1, 1]} : vector<8x8x128xf32> to vector<1x1x128xf32>
    %618 = vector.shape_cast %617 : vector<1x1x128xf32> to vector<1x128xf32>
    %619 = vector.extract_strided_slice %294 {offsets = [3, 0, 0], sizes = [1, 32, 128], strides = [1, 1, 1]} : vector<8x32x128xf32> to vector<1x32x128xf32>
    %620 = vector.shape_cast %619 : vector<1x32x128xf32> to vector<32x128xf32>
    %621 = vector.broadcast %618 : vector<1x128xf32> to vector<32x128xf32>
    %622 = arith.mulf %621, %620 : vector<32x128xf32>
    %623 = arith.addf %616, %622 : vector<32x128xf32>
    %624 = vector.extract_strided_slice %293 {offsets = [5, 4, 0], sizes = [1, 1, 128], strides = [1, 1, 1]} : vector<8x8x128xf32> to vector<1x1x128xf32>
    %625 = vector.shape_cast %624 : vector<1x1x128xf32> to vector<1x128xf32>
    %626 = vector.extract_strided_slice %294 {offsets = [4, 0, 0], sizes = [1, 32, 128], strides = [1, 1, 1]} : vector<8x32x128xf32> to vector<1x32x128xf32>
    %627 = vector.shape_cast %626 : vector<1x32x128xf32> to vector<32x128xf32>
    %628 = vector.broadcast %625 : vector<1x128xf32> to vector<32x128xf32>
    %629 = arith.mulf %628, %627 : vector<32x128xf32>
    %630 = arith.addf %623, %629 : vector<32x128xf32>
    %631 = vector.extract_strided_slice %293 {offsets = [5, 5, 0], sizes = [1, 1, 128], strides = [1, 1, 1]} : vector<8x8x128xf32> to vector<1x1x128xf32>
    %632 = vector.shape_cast %631 : vector<1x1x128xf32> to vector<1x128xf32>
    %633 = vector.extract_strided_slice %294 {offsets = [5, 0, 0], sizes = [1, 32, 128], strides = [1, 1, 1]} : vector<8x32x128xf32> to vector<1x32x128xf32>
    %634 = vector.shape_cast %633 : vector<1x32x128xf32> to vector<32x128xf32>
    %635 = vector.broadcast %632 : vector<1x128xf32> to vector<32x128xf32>
    %636 = arith.mulf %635, %634 : vector<32x128xf32>
    %637 = arith.addf %630, %636 : vector<32x128xf32>
    %638 = vector.extract_strided_slice %293 {offsets = [5, 6, 0], sizes = [1, 1, 128], strides = [1, 1, 1]} : vector<8x8x128xf32> to vector<1x1x128xf32>
    %639 = vector.shape_cast %638 : vector<1x1x128xf32> to vector<1x128xf32>
    %640 = vector.extract_strided_slice %294 {offsets = [6, 0, 0], sizes = [1, 32, 128], strides = [1, 1, 1]} : vector<8x32x128xf32> to vector<1x32x128xf32>
    %641 = vector.shape_cast %640 : vector<1x32x128xf32> to vector<32x128xf32>
    %642 = vector.broadcast %639 : vector<1x128xf32> to vector<32x128xf32>
    %643 = arith.mulf %642, %641 : vector<32x128xf32>
    %644 = arith.addf %637, %643 : vector<32x128xf32>
    %645 = vector.extract_strided_slice %293 {offsets = [5, 7, 0], sizes = [1, 1, 128], strides = [1, 1, 1]} : vector<8x8x128xf32> to vector<1x1x128xf32>
    %646 = vector.shape_cast %645 : vector<1x1x128xf32> to vector<1x128xf32>
    %647 = vector.extract_strided_slice %294 {offsets = [7, 0, 0], sizes = [1, 32, 128], strides = [1, 1, 1]} : vector<8x32x128xf32> to vector<1x32x128xf32>
    %648 = vector.shape_cast %647 : vector<1x32x128xf32> to vector<32x128xf32>
    %649 = vector.broadcast %646 : vector<1x128xf32> to vector<32x128xf32>
    %650 = arith.mulf %649, %648 : vector<32x128xf32>
    %651 = arith.addf %644, %650 : vector<32x128xf32>
    %c5_185 = arith.constant 5 : index
    %c0_186 = arith.constant 0 : index
    %c0_187 = arith.constant 0 : index
    %652 = vector.load %arg4[%c5_185, %c0_186, %c0_187] : memref<8x32x128xf32, #tpu.memory_space<vmem>>, vector<1x32x128xf32>
    %653 = vector.shape_cast %652 : vector<1x32x128xf32> to vector<32x128xf32>
    %654 = vector.shape_cast %651 : vector<32x128xf32> to vector<1x32x128xf32>
    tpu.vector_store %arg4[%c5_185, %c0_186, %c0_187], %654 {strides = array<i32>} : memref<8x32x128xf32, #tpu.memory_space<vmem>>, vector<1x32x128xf32>,
    %cst_188 = arith.constant 0.000000e+00 : f32
    %655 = vector.broadcast %cst_188 : f32 to vector<32x128xf32>
    %656 = vector.extract_strided_slice %293 {offsets = [6, 0, 0], sizes = [1, 1, 128], strides = [1, 1, 1]} : vector<8x8x128xf32> to vector<1x1x128xf32>
    %657 = vector.shape_cast %656 : vector<1x1x128xf32> to vector<1x128xf32>
    %658 = vector.extract_strided_slice %294 {offsets = [0, 0, 0], sizes = [1, 32, 128], strides = [1, 1, 1]} : vector<8x32x128xf32> to vector<1x32x128xf32>
    %659 = vector.shape_cast %658 : vector<1x32x128xf32> to vector<32x128xf32>
    %660 = vector.broadcast %657 : vector<1x128xf32> to vector<32x128xf32>
    %661 = arith.mulf %660, %659 : vector<32x128xf32>
    %662 = arith.addf %655, %661 : vector<32x128xf32>
    %663 = vector.extract_strided_slice %293 {offsets = [6, 1, 0], sizes = [1, 1, 128], strides = [1, 1, 1]} : vector<8x8x128xf32> to vector<1x1x128xf32>
    %664 = vector.shape_cast %663 : vector<1x1x128xf32> to vector<1x128xf32>
    %665 = vector.extract_strided_slice %294 {offsets = [1, 0, 0], sizes = [1, 32, 128], strides = [1, 1, 1]} : vector<8x32x128xf32> to vector<1x32x128xf32>
    %666 = vector.shape_cast %665 : vector<1x32x128xf32> to vector<32x128xf32>
    %667 = vector.broadcast %664 : vector<1x128xf32> to vector<32x128xf32>
    %668 = arith.mulf %667, %666 : vector<32x128xf32>
    %669 = arith.addf %662, %668 : vector<32x128xf32>
    %670 = vector.extract_strided_slice %293 {offsets = [6, 2, 0], sizes = [1, 1, 128], strides = [1, 1, 1]} : vector<8x8x128xf32> to vector<1x1x128xf32>
    %671 = vector.shape_cast %670 : vector<1x1x128xf32> to vector<1x128xf32>
    %672 = vector.extract_strided_slice %294 {offsets = [2, 0, 0], sizes = [1, 32, 128], strides = [1, 1, 1]} : vector<8x32x128xf32> to vector<1x32x128xf32>
    %673 = vector.shape_cast %672 : vector<1x32x128xf32> to vector<32x128xf32>
    %674 = vector.broadcast %671 : vector<1x128xf32> to vector<32x128xf32>
    %675 = arith.mulf %674, %673 : vector<32x128xf32>
    %676 = arith.addf %669, %675 : vector<32x128xf32>
    %677 = vector.extract_strided_slice %293 {offsets = [6, 3, 0], sizes = [1, 1, 128], strides = [1, 1, 1]} : vector<8x8x128xf32> to vector<1x1x128xf32>
    %678 = vector.shape_cast %677 : vector<1x1x128xf32> to vector<1x128xf32>
    %679 = vector.extract_strided_slice %294 {offsets = [3, 0, 0], sizes = [1, 32, 128], strides = [1, 1, 1]} : vector<8x32x128xf32> to vector<1x32x128xf32>
    %680 = vector.shape_cast %679 : vector<1x32x128xf32> to vector<32x128xf32>
    %681 = vector.broadcast %678 : vector<1x128xf32> to vector<32x128xf32>
    %682 = arith.mulf %681, %680 : vector<32x128xf32>
    %683 = arith.addf %676, %682 : vector<32x128xf32>
    %684 = vector.extract_strided_slice %293 {offsets = [6, 4, 0], sizes = [1, 1, 128], strides = [1, 1, 1]} : vector<8x8x128xf32> to vector<1x1x128xf32>
    %685 = vector.shape_cast %684 : vector<1x1x128xf32> to vector<1x128xf32>
    %686 = vector.extract_strided_slice %294 {offsets = [4, 0, 0], sizes = [1, 32, 128], strides = [1, 1, 1]} : vector<8x32x128xf32> to vector<1x32x128xf32>
    %687 = vector.shape_cast %686 : vector<1x32x128xf32> to vector<32x128xf32>
    %688 = vector.broadcast %685 : vector<1x128xf32> to vector<32x128xf32>
    %689 = arith.mulf %688, %687 : vector<32x128xf32>
    %690 = arith.addf %683, %689 : vector<32x128xf32>
    %691 = vector.extract_strided_slice %293 {offsets = [6, 5, 0], sizes = [1, 1, 128], strides = [1, 1, 1]} : vector<8x8x128xf32> to vector<1x1x128xf32>
    %692 = vector.shape_cast %691 : vector<1x1x128xf32> to vector<1x128xf32>
    %693 = vector.extract_strided_slice %294 {offsets = [5, 0, 0], sizes = [1, 32, 128], strides = [1, 1, 1]} : vector<8x32x128xf32> to vector<1x32x128xf32>
    %694 = vector.shape_cast %693 : vector<1x32x128xf32> to vector<32x128xf32>
    %695 = vector.broadcast %692 : vector<1x128xf32> to vector<32x128xf32>
    %696 = arith.mulf %695, %694 : vector<32x128xf32>
    %697 = arith.addf %690, %696 : vector<32x128xf32>
    %698 = vector.extract_strided_slice %293 {offsets = [6, 6, 0], sizes = [1, 1, 128], strides = [1, 1, 1]} : vector<8x8x128xf32> to vector<1x1x128xf32>
    %699 = vector.shape_cast %698 : vector<1x1x128xf32> to vector<1x128xf32>
    %700 = vector.extract_strided_slice %294 {offsets = [6, 0, 0], sizes = [1, 32, 128], strides = [1, 1, 1]} : vector<8x32x128xf32> to vector<1x32x128xf32>
    %701 = vector.shape_cast %700 : vector<1x32x128xf32> to vector<32x128xf32>
    %702 = vector.broadcast %699 : vector<1x128xf32> to vector<32x128xf32>
    %703 = arith.mulf %702, %701 : vector<32x128xf32>
    %704 = arith.addf %697, %703 : vector<32x128xf32>
    %705 = vector.extract_strided_slice %293 {offsets = [6, 7, 0], sizes = [1, 1, 128], strides = [1, 1, 1]} : vector<8x8x128xf32> to vector<1x1x128xf32>
    %706 = vector.shape_cast %705 : vector<1x1x128xf32> to vector<1x128xf32>
    %707 = vector.extract_strided_slice %294 {offsets = [7, 0, 0], sizes = [1, 32, 128], strides = [1, 1, 1]} : vector<8x32x128xf32> to vector<1x32x128xf32>
    %708 = vector.shape_cast %707 : vector<1x32x128xf32> to vector<32x128xf32>
    %709 = vector.broadcast %706 : vector<1x128xf32> to vector<32x128xf32>
    %710 = arith.mulf %709, %708 : vector<32x128xf32>
    %711 = arith.addf %704, %710 : vector<32x128xf32>
    %c6_189 = arith.constant 6 : index
    %c0_190 = arith.constant 0 : index
    %c0_191 = arith.constant 0 : index
    %712 = vector.load %arg4[%c6_189, %c0_190, %c0_191] : memref<8x32x128xf32, #tpu.memory_space<vmem>>, vector<1x32x128xf32>
    %713 = vector.shape_cast %712 : vector<1x32x128xf32> to vector<32x128xf32>
    %714 = vector.shape_cast %711 : vector<32x128xf32> to vector<1x32x128xf32>
    tpu.vector_store %arg4[%c6_189, %c0_190, %c0_191], %714 {strides = array<i32>} : memref<8x32x128xf32, #tpu.memory_space<vmem>>, vector<1x32x128xf32>,
    %cst_192 = arith.constant 0.000000e+00 : f32
    %715 = vector.broadcast %cst_192 : f32 to vector<32x128xf32>
    %716 = vector.extract_strided_slice %293 {offsets = [7, 0, 0], sizes = [1, 1, 128], strides = [1, 1, 1]} : vector<8x8x128xf32> to vector<1x1x128xf32>
    %717 = vector.shape_cast %716 : vector<1x1x128xf32> to vector<1x128xf32>
    %718 = vector.extract_strided_slice %294 {offsets = [0, 0, 0], sizes = [1, 32, 128], strides = [1, 1, 1]} : vector<8x32x128xf32> to vector<1x32x128xf32>
    %719 = vector.shape_cast %718 : vector<1x32x128xf32> to vector<32x128xf32>
    %720 = vector.broadcast %717 : vector<1x128xf32> to vector<32x128xf32>
    %721 = arith.mulf %720, %719 : vector<32x128xf32>
    %722 = arith.addf %715, %721 : vector<32x128xf32>
    %723 = vector.extract_strided_slice %293 {offsets = [7, 1, 0], sizes = [1, 1, 128], strides = [1, 1, 1]} : vector<8x8x128xf32> to vector<1x1x128xf32>
    %724 = vector.shape_cast %723 : vector<1x1x128xf32> to vector<1x128xf32>
    %725 = vector.extract_strided_slice %294 {offsets = [1, 0, 0], sizes = [1, 32, 128], strides = [1, 1, 1]} : vector<8x32x128xf32> to vector<1x32x128xf32>
    %726 = vector.shape_cast %725 : vector<1x32x128xf32> to vector<32x128xf32>
    %727 = vector.broadcast %724 : vector<1x128xf32> to vector<32x128xf32>
    %728 = arith.mulf %727, %726 : vector<32x128xf32>
    %729 = arith.addf %722, %728 : vector<32x128xf32>
    %730 = vector.extract_strided_slice %293 {offsets = [7, 2, 0], sizes = [1, 1, 128], strides = [1, 1, 1]} : vector<8x8x128xf32> to vector<1x1x128xf32>
    %731 = vector.shape_cast %730 : vector<1x1x128xf32> to vector<1x128xf32>
    %732 = vector.extract_strided_slice %294 {offsets = [2, 0, 0], sizes = [1, 32, 128], strides = [1, 1, 1]} : vector<8x32x128xf32> to vector<1x32x128xf32>
    %733 = vector.shape_cast %732 : vector<1x32x128xf32> to vector<32x128xf32>
    %734 = vector.broadcast %731 : vector<1x128xf32> to vector<32x128xf32>
    %735 = arith.mulf %734, %733 : vector<32x128xf32>
    %736 = arith.addf %729, %735 : vector<32x128xf32>
    %737 = vector.extract_strided_slice %293 {offsets = [7, 3, 0], sizes = [1, 1, 128], strides = [1, 1, 1]} : vector<8x8x128xf32> to vector<1x1x128xf32>
    %738 = vector.shape_cast %737 : vector<1x1x128xf32> to vector<1x128xf32>
    %739 = vector.extract_strided_slice %294 {offsets = [3, 0, 0], sizes = [1, 32, 128], strides = [1, 1, 1]} : vector<8x32x128xf32> to vector<1x32x128xf32>
    %740 = vector.shape_cast %739 : vector<1x32x128xf32> to vector<32x128xf32>
    %741 = vector.broadcast %738 : vector<1x128xf32> to vector<32x128xf32>
    %742 = arith.mulf %741, %740 : vector<32x128xf32>
    %743 = arith.addf %736, %742 : vector<32x128xf32>
    %744 = vector.extract_strided_slice %293 {offsets = [7, 4, 0], sizes = [1, 1, 128], strides = [1, 1, 1]} : vector<8x8x128xf32> to vector<1x1x128xf32>
    %745 = vector.shape_cast %744 : vector<1x1x128xf32> to vector<1x128xf32>
    %746 = vector.extract_strided_slice %294 {offsets = [4, 0, 0], sizes = [1, 32, 128], strides = [1, 1, 1]} : vector<8x32x128xf32> to vector<1x32x128xf32>
    %747 = vector.shape_cast %746 : vector<1x32x128xf32> to vector<32x128xf32>
    %748 = vector.broadcast %745 : vector<1x128xf32> to vector<32x128xf32>
    %749 = arith.mulf %748, %747 : vector<32x128xf32>
    %750 = arith.addf %743, %749 : vector<32x128xf32>
    %751 = vector.extract_strided_slice %293 {offsets = [7, 5, 0], sizes = [1, 1, 128], strides = [1, 1, 1]} : vector<8x8x128xf32> to vector<1x1x128xf32>
    %752 = vector.shape_cast %751 : vector<1x1x128xf32> to vector<1x128xf32>
    %753 = vector.extract_strided_slice %294 {offsets = [5, 0, 0], sizes = [1, 32, 128], strides = [1, 1, 1]} : vector<8x32x128xf32> to vector<1x32x128xf32>
    %754 = vector.shape_cast %753 : vector<1x32x128xf32> to vector<32x128xf32>
    %755 = vector.broadcast %752 : vector<1x128xf32> to vector<32x128xf32>
    %756 = arith.mulf %755, %754 : vector<32x128xf32>
    %757 = arith.addf %750, %756 : vector<32x128xf32>
    %758 = vector.extract_strided_slice %293 {offsets = [7, 6, 0], sizes = [1, 1, 128], strides = [1, 1, 1]} : vector<8x8x128xf32> to vector<1x1x128xf32>
    %759 = vector.shape_cast %758 : vector<1x1x128xf32> to vector<1x128xf32>
    %760 = vector.extract_strided_slice %294 {offsets = [6, 0, 0], sizes = [1, 32, 128], strides = [1, 1, 1]} : vector<8x32x128xf32> to vector<1x32x128xf32>
    %761 = vector.shape_cast %760 : vector<1x32x128xf32> to vector<32x128xf32>
    %762 = vector.broadcast %759 : vector<1x128xf32> to vector<32x128xf32>
    %763 = arith.mulf %762, %761 : vector<32x128xf32>
    %764 = arith.addf %757, %763 : vector<32x128xf32>
    %765 = vector.extract_strided_slice %293 {offsets = [7, 7, 0], sizes = [1, 1, 128], strides = [1, 1, 1]} : vector<8x8x128xf32> to vector<1x1x128xf32>
    %766 = vector.shape_cast %765 : vector<1x1x128xf32> to vector<1x128xf32>
    %767 = vector.extract_strided_slice %294 {offsets = [7, 0, 0], sizes = [1, 32, 128], strides = [1, 1, 1]} : vector<8x32x128xf32> to vector<1x32x128xf32>
    %768 = vector.shape_cast %767 : vector<1x32x128xf32> to vector<32x128xf32>
    %769 = vector.broadcast %766 : vector<1x128xf32> to vector<32x128xf32>
    %770 = arith.mulf %769, %768 : vector<32x128xf32>
    %771 = arith.addf %764, %770 : vector<32x128xf32>
    %c7_193 = arith.constant 7 : index
    %c0_194 = arith.constant 0 : index
    %c0_195 = arith.constant 0 : index
    %772 = vector.load %arg4[%c7_193, %c0_194, %c0_195] : memref<8x32x128xf32, #tpu.memory_space<vmem>>, vector<1x32x128xf32>
    %773 = vector.shape_cast %772 : vector<1x32x128xf32> to vector<32x128xf32>
    %774 = vector.shape_cast %771 : vector<32x128xf32> to vector<1x32x128xf32>
    tpu.vector_store %arg4[%c7_193, %c0_194, %c0_195], %774 {strides = array<i32>} : memref<8x32x128xf32, #tpu.memory_space<vmem>>, vector<1x32x128xf32>,
    return
  }
  func.func @transform_0(%arg0: i32) -> (i32, i32, i32) {
    %c0_i32 = arith.constant 0 : i32
    %c0_i32_0 = arith.constant 0 : i32
    %c0_i32_1 = arith.constant 0 : i32
    return %c0_i32, %c0_i32_0, %arg0 : i32, i32, i32
  }
  func.func @transform_1(%arg0: i32) -> (i32, i32, i32) {
    %c0_i32 = arith.constant 0 : i32
    %c0_i32_0 = arith.constant 0 : i32
    %c0_i32_1 = arith.constant 0 : i32
    return %c0_i32, %c0_i32_0, %arg0 : i32, i32, i32
  }
  func.func @transform_2(%arg0: i32) -> (i32, i32, i32) {
    %c0_i32 = arith.constant 0 : i32
    %c0_i32_0 = arith.constant 0 : i32
    %c0_i32_1 = arith.constant 0 : i32
    return %c0_i32, %c0_i32_0, %arg0 : i32, i32, i32
  }
  func.func @transform_3(%arg0: i32) -> (i32, i32, i32) {
    %c0_i32 = arith.constant 0 : i32
    %c0_i32_0 = arith.constant 0 : i32
    %c0_i32_1 = arith.constant 0 : i32
    return %c0_i32, %c0_i32_0, %arg0 : i32, i32, i32
  }
}

</mosaic_0001>

<bundles_post_ra>
// kernel: tpu_custom_call.1
= control target key start
LH: loop header
LB: loop body
LE: loop exit
PB: predicated region body
PF: predicated region fallthrough
CT: control target
= control target key end

     0   :  { %8 = vsyncpa [#allocation3], 0  ;;  %s5293_s0 = inlined_call_operand.hbm [shape: f32[8,32,128], index: 0, kind: input, shape index: {}]   ;;  %s5294_s1 = inlined_call_operand.hbm [shape: f32[32,8,128], index: 1, kind: input, shape index: {}]   ;;  %s5295_s2 = inlined_call_operand.hbm [shape: f32[8,32,128], index: 2, kind: input, shape index: {}]   ;;  %s5296_s3 = inlined_call_operand.hbm [shape: f32[8,32,128], index: 3, kind: output, shape index: {}]  }
   0x1   :  { %9 = vsyncpa [#allocation6], 0 }
   0x2   :  { %10 = vsyncpa [#allocation4], 0  ;;  %s3693_s12 = smov [#allocation5]   ;;  %s3694_s14 = smov [#allocation2]  }
   0x3   :  { %s28_s13 = sshll.u32 %s3693_s12, 4  ;;  %s16_s15 = sshll.u32 %s3694_s14, 4  ;;  %s29_s13 = int_to_ptr.vmem [resolvable:$true] %s28_s13  ;;  %s17_s15 = int_to_ptr.vmem [resolvable:$true] %s16_s15 }
   0x4   :  { %s3615_s16 = scalar_lea.vmem %s29_s13, 4096  ;;  %p3620_p1 = scmp.lt.s32.totalorder %s29_s13, %s29_s13 }
   0x5   :  { %p3616_p0 = scmp.ne.s32.totalorder %s29_s13, %s3615_s16  ;;  %p3621_p2 = scmp.lt.s32.totalorder %s3615_s16, %s3615_s16 }
   0x7   :  { %p3622_p3 = por %p3621_p2, %p3620_p1 }
   0x9   :  { %p3623_p4 = pnand %p3622_p3, %p3616_p0 }
   0xb   :  { %3626 = shalt.err (!%p3623_p4)
}
   0xc   :  { %s3695_s17 = smov 128   ;;  %s3696_s18 = smov 8  }
   0xd   :  { %34 = dma.hbm_to_vmem [thread:$0]  %s5294_s1, 4096, %s29_s13, [#allocation6], %s3695_s17, %s3695_s17, %s3696_s18  }
   0xe   :  { %s3635_s21 = scalar_lea.vmem %s17_s15, 4096  ;;  %p3640_p6 = scmp.lt.s32.totalorder %s17_s15, %s17_s15 }
   0xf   :  { %p3636_p5 = scmp.ne.s32.totalorder %s17_s15, %s3635_s21  ;;  %p3641_p7 = scmp.lt.s32.totalorder %s3635_s21, %s3635_s21 }
  0x11   :  { %p3642_p8 = por %p3641_p7, %p3640_p6 }
  0x13   :  { %p3643_p9 = pnand %p3642_p8, %p3636_p5 }
  0x15   :  { %3646 = shalt.err (!%p3643_p9)
}
  0x16   :  { %22 = dma.hbm_to_vmem [thread:$0]  %s5293_s0, 4096, %s17_s15, [#allocation3], %s3695_s17, %s3695_s17, %s3696_s18  }
  0x17   :  { %s3697_s24 = smov [#allocation7]  }
  0x18   :  { %s40_s25 = sshll.u32 %s3697_s24, 4  ;;  %s41_s25 = int_to_ptr.vmem [resolvable:$true] %s40_s25 }
  0x19   :  { %s3655_s26 = scalar_lea.vmem %s41_s25, 4096  ;;  %p3660_p11 = scmp.lt.s32.totalorder %s41_s25, %s41_s25 }
  0x1a   :  { %p3656_p10 = scmp.ne.s32.totalorder %s41_s25, %s3655_s26  ;;  %p3661_p12 = scmp.lt.s32.totalorder %s3655_s26, %s3655_s26 }
  0x1c   :  { %p3662_p13 = por %p3661_p12, %p3660_p11 }
  0x1e   :  { %p3663_p0 = pnand %p3662_p13, %p3656_p10 }
  0x20   :  { %3666 = shalt.err (!%p3663_p0)
}
  0x21   :  { %46 = dma.hbm_to_vmem [thread:$0]  %s5295_s2, 4096, %s41_s25, [#allocation6], %s3695_s17, %s3695_s17, %s3696_s18  }
  0x22   :  { %3687 = dma.done.wait [#allocation3], 4096  }
  0x23   :  { %3688 = vsyncadd [#allocation3], 4294963200 }
  0x24   :  { %3689 = dma.done.wait [#allocation6], 8192  }
  0x25   :  { %3690 = vsyncadd [#allocation6], 4294959104  ;;  %v3232_v0 = vld [vmem:[#allocation2] ss:$0 sm:$0xff]  ;;  %v3240_v2 = vld [vmem:[#allocation2 + $0x1] ss:$0 sm:$0xff]  ;;  %v2095_v51 = vlaneseq }
  0x26   :  { %v3737_v1 = vld [vmem:[#allocation5] sm:$0xff]  ;;  %v3740_v4 = vld [vmem:[#allocation5 + $0x8] sm:$0xff]  ;;  %v3742_v6 = vld [vmem:[#allocation5 + $0x10] sm:$0xff]  ;;  %s3698_s0 = smov [#allocation8]  }
  0x27   :  { %v97_v3 = vmul.f32 %v3232_v0, %v3737_v1  ;;  %5478 = vst [vmem:[#allocation12_spill] sm:$0xff] %v3740_v4  ;;  %v3248_v5 = vld [vmem:[#allocation2 + $0x2] ss:$0 sm:$0xff]  ;;  %v155_v7 = vmul.f32 %v3240_v2, %v3740_v4  ;;  %v3256_v9 = vld [vmem:[#allocation2 + $0x3] ss:$0 sm:$0xff]  ;;  %v3746_v10 = vld [vmem:[#allocation5 + $0x18] sm:$0xff] }
  0x28   :  { %v213_v8 = vmul.f32 %v3248_v5, %v3742_v6  ;;  %v3264_v11 = vld [vmem:[#allocation2 + $0x4] ss:$0 sm:$0xff]  ;;  %v271_v14 = vmul.f32 %v3256_v9, %v3746_v10  ;;  %v3272_v15 = vld [vmem:[#allocation2 + $0x5] ss:$0 sm:$0xff]  ;;  %v3751_v16 = vld [vmem:[#allocation5 + $0x28] sm:$0xff]  ;;  %v2096_v0 = vshrl.u32 %v2095_v51, 7 }
  0x29   :  { %v3748_v12 = vld [vmem:[#allocation5 + $0x20] sm:$0xff]  ;;  %v163_v13 = vadd.f32 %v155_v7, %v97_v3  ;;  %v3754_v20 = vld [vmem:[#allocation5 + $0x30] sm:$0xff]  ;;  %v387_v22 = vmul.f32 %v3272_v15, %v3751_v16  ;;  %v3757_v24 = vld [vmem:[#allocation5 + $0x38] sm:$0xff]  ;;  %s3219_s2 = sshll.u32 %s3698_s0, 4  ;;  %s3220_s2 = int_to_ptr.vmem [resolvable:$true] %s3219_s2 }
  0x2a   :  { %v329_v18 = vmul.f32 %v3264_v11, %v3748_v12  ;;  %v3280_v19 = vld [vmem:[#allocation2 + $0x6] ss:$0 sm:$0xff]  ;;  %v3288_v23 = vld [vmem:[#allocation2 + $0x7] ss:$0 sm:$0xff]  ;;  %v3296_v27 = vld [vmem:[#allocation2 + $0x8] ss:$0 sm:$0xff]  ;;  %p3672_p2 = scmp.lt.s32.totalorder %s3220_s2, %s3220_s2 }
  0x2b   :  { %v221_v17 = vadd.f32 %v213_v8, %v163_v13  ;;  %v445_v26 = vmul.f32 %v3280_v19, %v3754_v20  ;;  %v3760_v28 = vld [vmem:[#allocation5 + $0x40] sm:$0xff]  ;;  %v503_v30 = vmul.f32 %v3288_v23, %v3757_v24  ;;  %v3304_v31 = vld [vmem:[#allocation2 + $0x9] ss:$0 sm:$0xff]  ;;  %v3312_v35 = vld [vmem:[#allocation2 + $0xa] ss:$0 sm:$0xff]  ;;  %s3667_s28 = scalar_lea.vmem %s3220_s2, 4096 }
  0x2c   :  { %v3763_v32 = vld [vmem:[#allocation5 + $0x48] sm:$0xff]  ;;  %v561_v34 = vmul.f32 %v3296_v27, %v3760_v28  ;;  %v3766_v36 = vld [vmem:[#allocation5 + $0x50] sm:$0xff]  ;;  %v3769_v40 = vld [vmem:[#allocation5 + $0x58] sm:$0xff]  ;;  %p3668_p1 = scmp.ne.s32.totalorder %s3220_s2, %s3667_s28  ;;  %p3673_p3 = scmp.lt.s32.totalorder %s3667_s28, %s3667_s28 }
  0x2d   :  { %v279_v21 = vadd.f32 %v271_v14, %v221_v17  ;;  %v619_v38 = vmul.f32 %v3304_v31, %v3763_v32  ;;  %v3320_v39 = vld [vmem:[#allocation2 + $0xb] ss:$0 sm:$0xff]  ;;  %v677_v42 = vmul.f32 %v3312_v35, %v3766_v36  ;;  %v3328_v43 = vld [vmem:[#allocation2 + $0xc] ss:$0 sm:$0xff]  ;;  %v3772_v44 = vld [vmem:[#allocation5 + $0x60] sm:$0xff]  ;;  %v3813_v35 = vsub.s32 3, %v2096_v0 }
  0x2e   :  { %5479 = vst [vmem:[#allocation13_spill] sm:$0xff] %v3772_v44  ;;  %v735_v46 = vmul.f32 %v3320_v39, %v3769_v40  ;;  %v3336_v47 = vld [vmem:[#allocation2 + $0xd] ss:$0 sm:$0xff]  ;;  %v793_v50 = vmul.f32 %v3328_v43, %v3772_v44  ;;  %v3344_v52 = vld [vmem:[#allocation2 + $0xe] ss:$0 sm:$0xff]  ;;  %v3778_v53 = vld [vmem:[#allocation5 + $0x70] sm:$0xff]  ;;  %p3674_p4 = por %p3673_p3, %p3672_p2 }
  0x2f   :  { %v337_v25 = vadd.f32 %v329_v18, %v279_v21  ;;  %v3775_v48 = vld [vmem:[#allocation5 + $0x68] sm:$0xff]  ;;  %5481 = vst [vmem:[#allocation15_spill] sm:$0xff] %v3778_v53  ;;  %v3781_v57 = vld [vmem:[#allocation5 + $0x78] sm:$0xff]  ;;  %v3360_v58 = vld [vmem:[#allocation2 + $0x10] ss:$0 sm:$0xff]  ;;  %v909_v60 = vmul.f32 %v3344_v52, %v3778_v53 }
  0x30   :  { %5480 = vst [vmem:[#allocation14_spill] sm:$0xff] %v3775_v48  ;;  %v851_v55 = vmul.f32 %v3336_v47, %v3775_v48  ;;  %v3352_v56 = vld [vmem:[#allocation2 + $0xf] ss:$0 sm:$0xff]  ;;  %5482 = vst [vmem:[#allocation16_spill] sm:$0xff] %v3781_v57  ;;  %v3784_v61 = vld [vmem:[#allocation5 + $0x80] sm:$0xff]  ;;  %p3675_p5 = pnand %p3674_p4, %p3668_p1 }
  0x31   :  { %v395_v29 = vadd.f32 %v387_v22, %v337_v25  ;;  %5483 = vst [vmem:[#allocation17_spill] sm:$0xff] %v3784_v61  ;;  %v3368_v62 = vld [vmem:[#allocation2 + $0x11] ss:$0 sm:$0xff]  ;;  %v3786_v63 = vld [vmem:[#allocation5 + $0x88] sm:$0xff]  ;;  %v3376_v2 = vld [vmem:[#allocation2 + $0x12] ss:$0 sm:$0xff]  ;;  %v967_v8 = vmul.f32 %v3352_v56, %v3781_v57  ;;  %v1025_v19 = vmul.f32 %v3360_v58, %v3784_v61 }
  0x32   :  { %5484 = vst [vmem:[#allocation18_spill] sm:$0xff] %v3786_v63  ;;  %v3788_v3 = vld [vmem:[#allocation5 + $0x90] sm:$0xff]  ;;  %v3791_v9 = vld [vmem:[#allocation5 + $0x98] sm:$0xff]  ;;  %v3793_v13 = vld [vmem:[#allocation5 + $0xa0] sm:$0xff]  ;;  %v3802_v25 = vsub.s32 0, %v2096_v0  ;;  %v1083_v27 = vmul.f32 %v3368_v62, %v3786_v63 }
  0x33   :  { %v453_v33 = vadd.f32 %v445_v26, %v395_v29  ;;  %5485 = vst [vmem:[#allocation19_spill] sm:$0xff] %v3788_v3  ;;  %v3384_v5 = vld [vmem:[#allocation2 + $0x13] ss:$0 sm:$0xff]  ;;  %5486 = vst [vmem:[#allocation20_spill] sm:$0xff] %v3791_v9  ;;  %v3392_v11 = vld [vmem:[#allocation2 + $0x14] ss:$0 sm:$0xff] }
  0x34   :  { %v3400_v14 = vld [vmem:[#allocation2 + $0x15] ss:$0 sm:$0xff]  ;;  %v3795_v15 = vld [vmem:[#allocation5 + $0xa8] sm:$0xff]  ;;  %v3408_v17 = vld [vmem:[#allocation2 + $0x16] ss:$0 sm:$0xff]  ;;  %5487 = vst [vmem:[#allocation21_spill] sm:$0xff] %v3802_v25  ;;  %v1199_v39 = vmul.f32 %v3384_v5, %v3791_v9 }
  0x35   :  { %v511_v37 = vadd.f32 %v503_v30, %v453_v33  ;;  %v3798_v21 = vld [vmem:[#allocation5 + $0xb0] sm:$0xff]  ;;  %v3800_v23 = vld [vmem:[#allocation5 + $0xb8] sm:$0xff]  ;;  %v3804_v26 = vsub.s32 1, %v2096_v0  ;;  %v3807_v30 = vld [vmem:[#allocation5 + $0xc0] sm:$0xff]  ;;  %5490 = vst [vmem:[#allocation24_spill] sm:$0xff] %v3813_v35  ;;  %v3832_v62 = vmul.f32 %v3400_v14, %v3795_v15 }
  0x36   :  { %v3416_v22 = vld [vmem:[#allocation2 + $0x17] ss:$0 sm:$0xff]  ;;  %v3424_v29 = vld [vmem:[#allocation2 + $0x18] ss:$0 sm:$0xff]  ;;  %v3432_v31 = vld [vmem:[#allocation2 + $0x19] ss:$0 sm:$0xff] }
  0x37   :  { %v569_v41 = vadd.f32 %v561_v34, %v511_v37  ;;  %5488 = vst [vmem:[#allocation22_spill] sm:$0xff] %v3804_v26  ;;  %v3809_v33 = vld [vmem:[#allocation5 + $0xc8] sm:$0xff]  ;;  %v3811_v34 = vsub.s32 2, %v2096_v0  ;;  %v3820_v43 = vld [vmem:[#allocation5 + $0xd0] sm:$0xff]  ;;  %v3233_v47 = vld [vmem:[#allocation2 + $0x20] ss:$0 sm:$0xff] }
  0x38   :  { %v3456_v51 = vld [vmem:[#allocation2 + $0x1c] ss:$0 sm:$0xff]  ;;  %v3824_v52 = vld [vmem:[#allocation5 + $0xe0] sm:$0xff]  ;;  %v3464_v5 = vld [vmem:[#allocation2 + $0x1d] ss:$0 sm:$0xff]  ;;  %v3853_v35 = vmul.f32 %v3432_v31, %v3809_v33 }
  0x39   :  { %v627_v45 = vadd.f32 %v619_v38, %v569_v41  ;;  %5489 = vst [vmem:[#allocation23_spill] sm:$0xff] %v3811_v34  ;;  %v1141_v38 = vmul.f32 %v3376_v2, %v3788_v3  ;;  %v3818_v41 = vmul.f32 %v3392_v11, %v3793_v13  ;;  %v3835_v2 = vmul.f32 %v3408_v17, %v3798_v21  ;;  %v3265_v11 = vld [vmem:[#allocation2 + $0x24] ss:$0 sm:$0xff]  ;;  %v3273_v34 = vld [vmem:[#allocation2 + $0x25] ss:$0 sm:$0xff] }
  0x3a   :  { %5495 = vst [vmem:[#allocation29_spill] sm:$0xff] %v3853_v35  ;;  %v3281_v26 = vld [vmem:[#allocation2 + $0x26] ss:$0 sm:$0xff]  ;;  %v3369_v35 = vld [vmem:[#allocation2 + $0x31] ss:$0 sm:$0xff] }
  0x3b   :  { %v685_v49 = vadd.f32 %v677_v42, %v627_v45  ;;  %v3440_v42 = vld [vmem:[#allocation2 + $0x1a] ss:$0 sm:$0xff]  ;;  %v3448_v45 = vld [vmem:[#allocation2 + $0x1b] ss:$0 sm:$0xff] }
  0x3c   :  { %v3860_v25 = vmul.f32 %v3440_v42, %v3820_v43  ;;  %v3313_v42 = vld [vmem:[#allocation2 + $0x2a] ss:$0 sm:$0xff] }
  0x3d   :  { %v743_v54 = vadd.f32 %v735_v46, %v685_v49  ;;  %v3822_v46 = vld [vmem:[#allocation5 + $0xd8] sm:$0xff]  ;;  %v3241_v49 = vld [vmem:[#allocation2 + $0x21] ss:$0 sm:$0xff] }
  0x3e   :  { %v156_v56 = vmul.f32 %v3241_v49, %v3740_v4  ;;  %v3844_v49 = vld [vmem:[#allocation5 + $0xf0] sm:$0xff]  ;;  %5498 = vst [vmem:[#allocation32_spill] sm:$0xff] %v3860_v25  ;;  %v3321_v25 = vld [vmem:[#allocation2 + $0x2b] ss:$0 sm:$0xff] }
  0x3f   :  { %v801_v59 = vadd.f32 %v793_v50, %v743_v54  ;;  %v3249_v50 = vld [vmem:[#allocation2 + $0x22] ss:$0 sm:$0xff]  ;;  %v3826_v54 = vsub.s32 4, %v2096_v0  ;;  %5493 = vst [vmem:[#allocation27_spill] sm:$0xff] %v3844_v49 }
  0x40   :  { %v214_v58 = vmul.f32 %v3249_v50, %v3742_v6  ;;  %v3480_v50 = vld [vmem:[#allocation2 + $0x1f] ss:$0 sm:$0xff] }
  0x41   :  { %v859_v7 = vadd.f32 %v851_v55, %v801_v59  ;;  %5491 = vst [vmem:[#allocation25_spill] sm:$0xff] %v3826_v54  ;;  %v98_v55 = vmul.f32 %v3233_v47, %v3737_v1  ;;  %v3257_v59 = vld [vmem:[#allocation2 + $0x23] ss:$0 sm:$0xff]  ;;  %v3472_v47 = vld [vmem:[#allocation2 + $0x1e] ss:$0 sm:$0xff]  ;;  %v3850_v54 = vmul.f32 %v3424_v29, %v3807_v30 }
  0x42   :  { %v3289_v29 = vld [vmem:[#allocation2 + $0x27] ss:$0 sm:$0xff] }
  0x43   :  { %v917_v18 = vadd.f32 %v909_v60, %v859_v7  ;;  %v3837_v7 = vld [vmem:[#allocation5 + $0xe8] sm:$0xff]  ;;  %v164_v14 = vadd.f32 %v156_v56, %v98_v55  ;;  %v3863_v55 = vmul.f32 %v3448_v45, %v3822_v46 }
  0x44   :  { %v3329_v45 = vld [vmem:[#allocation2 + $0x2c] ss:$0 sm:$0xff] }
  0x45   :  { %v975_v37 = vadd.f32 %v967_v8, %v917_v18  ;;  %v3839_v8 = vsub.s32 5, %v2096_v0  ;;  %v3842_v18 = vmul.f32 %v3416_v22, %v3800_v23  ;;  %v3857_v22 = vsub.s32 7, %v2096_v0  ;;  %5499 = vst [vmem:[#allocation33_spill] sm:$0xff] %v3863_v55 }
  0x46   :  { %v222_v56 = vadd.f32 %v214_v58, %v164_v14  ;;  %v388_v14 = vmul.f32 %v3273_v34, %v3751_v16  ;;  %v3889_v34 = vmul.f32 %v3321_v25, %v3769_v40  ;;  %v3409_v25 = vld [vmem:[#allocation2 + $0x36] ss:$0 sm:$0xff] }
  0x47   :  { %v1033_v60 = vadd.f32 %v1025_v19, %v975_v37  ;;  %5492 = vst [vmem:[#allocation26_spill] sm:$0xff] %v3839_v8  ;;  %v3846_v19 = vsub.s32 6, %v2096_v0  ;;  %v272_v37 = vmul.f32 %v3257_v59, %v3746_v10  ;;  %v3855_v8 = vld [vmem:[#allocation5 + $0xf8] sm:$0xff]  ;;  %5497 = vst [vmem:[#allocation31_spill] sm:$0xff] %v3857_v22  ;;  %v3297_v59 = vld [vmem:[#allocation2 + $0x28] ss:$0 sm:$0xff]  ;;  %v3870_v0 = vmul.f32 %v3464_v5, %v3837_v7 }
  0x48   :  { %5496 = vst [vmem:[#allocation30_spill] sm:$0xff] %v3855_v8  ;;  %v3873_v22 = vmul.f32 %v3472_v47, %v3844_v49  ;;  %v3876_v58 = vmul.f32 %v3480_v50, %v3855_v8  ;;  %v504_v5 = vmul.f32 %v3289_v29, %v3757_v24  ;;  %v562_v47 = vmul.f32 %v3297_v59, %v3760_v28  ;;  %v3393_v29 = vld [vmem:[#allocation2 + $0x34] ss:$0 sm:$0xff] }
  0x49   :  { %5494 = vst [vmem:[#allocation28_spill] sm:$0xff] %v3846_v19  ;;  %v1091_v17 = vadd.f32 %v1083_v27, %v1033_v60  ;;  %v330_v27 = vmul.f32 %v3265_v11, %v3748_v12  ;;  %v3305_v60 = vld [vmem:[#allocation2 + $0x29] ss:$0 sm:$0xff]  ;;  %v3867_v19 = vmul.f32 %v3456_v51, %v3824_v52  ;;  %5501 = vst [vmem:[#allocation35_spill] sm:$0xff] %v3870_v0  ;;  %v3345_v51 = vld [vmem:[#allocation2 + $0x2e] ss:$0 sm:$0xff] }
  0x4a   :  { %5502 = vst [vmem:[#allocation36_spill] sm:$0xff] %v3873_v22  ;;  %5503 = vst [vmem:[#allocation37_spill] sm:$0xff] %v3876_v58  ;;  %v280_v11 = vadd.f32 %v272_v37, %v222_v56  ;;  %v3883_v22 = vmul.f32 %v3305_v60, %v3763_v32  ;;  %v3361_v0 = vld [vmem:[#allocation2 + $0x30] ss:$0 sm:$0xff]  ;;  %v3886_v37 = vmul.f32 %v3313_v42, %v3766_v36  ;;  %v3385_v56 = vld [vmem:[#allocation2 + $0x33] ss:$0 sm:$0xff] }
  0x4b   :  { %v1149_v31 = vadd.f32 %v1141_v38, %v1091_v17  ;;  %5500 = vst [vmem:[#allocation34_spill] sm:$0xff] %v3867_v19  ;;  %v446_v38 = vmul.f32 %v3281_v26, %v3754_v20  ;;  %v3337_v17 = vld [vmem:[#allocation2 + $0x2d] ss:$0 sm:$0xff]  ;;  %v3353_v19 = vld [vmem:[#allocation2 + $0x2f] ss:$0 sm:$0xff]  ;;  %v3892_v26 = vmul.f32 %v3329_v45, %v3772_v44  ;;  %v3905_v45 = vmul.f32 %v3361_v0, %v3784_v61 }
  0x4c   :  { %v338_v50 = vadd.f32 %v330_v27, %v280_v11  ;;  %v3896_v60 = vmul.f32 %v3337_v17, %v3775_v48  ;;  %v3902_v27 = vmul.f32 %v3353_v19, %v3781_v57  ;;  %v3401_v42 = vld [vmem:[#allocation2 + $0x35] ss:$0 sm:$0xff]  ;;  %v3234_v11 = vld [vmem:[#allocation2 + $0x40] ss:$0 sm:$0xff]  ;;  %v3250_v17 = vld [vmem:[#allocation2 + $0x42] ss:$0 sm:$0xff] }
  0x4d   :  { %v1207_v55 = vadd.f32 %v1199_v39, %v1149_v31  ;;  %5504 = vst [vmem:[#allocation38_spill] sm:$0xff] %v3892_v26  ;;  %v3377_v39 = vld [vmem:[#allocation2 + $0x32] ss:$0 sm:$0xff]  ;;  %v3899_v31 = vmul.f32 %v3345_v51, %v3778_v53  ;;  %5508 = vst [vmem:[#allocation42_spill] sm:$0xff] %v3905_v45  ;;  %v3908_v26 = vmul.f32 %v3369_v35, %v3786_v63  ;;  %v3433_v57 = vld [vmem:[#allocation2 + $0x39] ss:$0 sm:$0xff] }
  0x4e   :  { %5505 = vst [vmem:[#allocation39_spill] sm:$0xff] %v3896_v60  ;;  %5507 = vst [vmem:[#allocation41_spill] sm:$0xff] %v3902_v27  ;;  %v396_v58 = vadd.f32 %v388_v14, %v338_v50  ;;  %v3258_v60 = vld [vmem:[#allocation2 + $0x43] ss:$0 sm:$0xff]  ;;  %v3913_v19 = vmul.f32 %v3377_v39, %v3788_v3  ;;  %v3417_v27 = vld [vmem:[#allocation2 + $0x37] ss:$0 sm:$0xff]  ;;  %v215_v0 = vmul.f32 %v3250_v17, %v3742_v6 }
  0x4f   :  { %v1265_v59 = vadd.f32 %v3818_v41, %v1207_v55  ;;  %5506 = vst [vmem:[#allocation40_spill] sm:$0xff] %v3899_v31  ;;  %5509 = vst [vmem:[#allocation43_spill] sm:$0xff] %v3908_v26  ;;  %v99_v41 = vmul.f32 %v3234_v11, %v3737_v1  ;;  %v3242_v55 = vld [vmem:[#allocation2 + $0x41] ss:$0 sm:$0xff]  ;;  %v3425_v31 = vld [vmem:[#allocation2 + $0x38] ss:$0 sm:$0xff]  ;;  %v3918_v35 = vmul.f32 %v3385_v56, %v3791_v9 }
  0x50   :  { %5510 = vst [vmem:[#allocation44_spill] sm:$0xff] %v3913_v19  ;;  %v157_v14 = vmul.f32 %v3242_v55, %v3740_v4  ;;  %v454_v50 = vadd.f32 %v446_v38, %v396_v58  ;;  %v3921_v11 = vmul.f32 %v3393_v29, %v3793_v13  ;;  %v3924_v26 = vmul.f32 %v3401_v42, %v3795_v15  ;;  %v3266_v39 = vld [vmem:[#allocation2 + $0x44] ss:$0 sm:$0xff]  ;;  %v3449_v55 = vld [vmem:[#allocation2 + $0x3b] ss:$0 sm:$0xff] }
  0x51   :  { %v1323_v51 = vadd.f32 %v3832_v62, %v1265_v59  ;;  %v3441_v62 = vld [vmem:[#allocation2 + $0x3a] ss:$0 sm:$0xff]  ;;  %v3928_v19 = vmul.f32 %v3409_v25, %v3798_v21  ;;  %v3457_v45 = vld [vmem:[#allocation2 + $0x3c] ss:$0 sm:$0xff]  ;;  %v3465_v17 = vld [vmem:[#allocation2 + $0x3d] ss:$0 sm:$0xff]  ;;  %v273_v38 = vmul.f32 %v3258_v60, %v3746_v10  ;;  %v3932_v29 = vmul.f32 %v3417_v27, %v3800_v23 }
  0x52   :  { %5511 = vst [vmem:[#allocation45_spill] sm:$0xff] %v3921_v11  ;;  %5512 = vst [vmem:[#allocation46_spill] sm:$0xff] %v3924_v26  ;;  %v165_v58 = vadd.f32 %v157_v14, %v99_v41  ;;  %v512_v56 = vadd.f32 %v504_v5, %v454_v50  ;;  %v3935_v42 = vmul.f32 %v3425_v31, %v3807_v30  ;;  %v3481_v41 = vld [vmem:[#allocation2 + $0x3f] ss:$0 sm:$0xff]  ;;  %v3282_v60 = vld [vmem:[#allocation2 + $0x46] ss:$0 sm:$0xff] }
  0x53   :  { %v1381_v59 = vadd.f32 %v3835_v2, %v1323_v51  ;;  %5513 = vst [vmem:[#allocation47_spill] sm:$0xff] %v3928_v19  ;;  %5514 = vst [vmem:[#allocation48_spill] sm:$0xff] %v3932_v29  ;;  %v3938_v26 = vmul.f32 %v3433_v57, %v3809_v33  ;;  %v3473_v2 = vld [vmem:[#allocation2 + $0x3e] ss:$0 sm:$0xff]  ;;  %v3274_v51 = vld [vmem:[#allocation2 + $0x45] ss:$0 sm:$0xff]  ;;  %v3942_v19 = vmul.f32 %v3441_v62, %v3820_v43 }
  0x54   :  { %5515 = vst [vmem:[#allocation49_spill] sm:$0xff] %v3935_v42  ;;  %v223_v14 = vadd.f32 %v215_v0, %v165_v58  ;;  %v331_v5 = vmul.f32 %v3266_v39, %v3748_v12  ;;  %v3290_v27 = vld [vmem:[#allocation2 + $0x47] ss:$0 sm:$0xff]  ;;  %v570_v50 = vadd.f32 %v562_v47, %v512_v56  ;;  %v3946_v31 = vmul.f32 %v3449_v55, %v3822_v46  ;;  %v3314_v47 = vld [vmem:[#allocation2 + $0x4a] ss:$0 sm:$0xff] }
  0x55   :  { %5516 = vst [vmem:[#allocation50_spill] sm:$0xff] %v3938_v26  ;;  %v1439_v25 = vadd.f32 %v3842_v18, %v1381_v59  ;;  %5517 = vst [vmem:[#allocation51_spill] sm:$0xff] %v3942_v19  ;;  %v3949_v57 = vmul.f32 %v3457_v45, %v3824_v52  ;;  %v3952_v26 = vmul.f32 %v3465_v17, %v3837_v7  ;;  %v3298_v18 = vld [vmem:[#allocation2 + $0x48] ss:$0 sm:$0xff]  ;;  %v3306_v59 = vld [vmem:[#allocation2 + $0x49] ss:$0 sm:$0xff] }
  0x56   :  { %5518 = vst [vmem:[#allocation52_spill] sm:$0xff] %v3946_v31  ;;  %v3956_v0 = vmul.f32 %v3473_v2, %v3844_v49  ;;  %v281_v39 = vadd.f32 %v273_v38, %v223_v14  ;;  %v389_v58 = vmul.f32 %v3274_v51, %v3751_v16  ;;  %v3322_v56 = vld [vmem:[#allocation2 + $0x4b] ss:$0 sm:$0xff]  ;;  %v3330_v55 = vld [vmem:[#allocation2 + $0x4c] ss:$0 sm:$0xff]  ;;  %v628_v31 = vadd.f32 %v3883_v22, %v570_v50 }
  0x57   :  { %5519 = vst [vmem:[#allocation53_spill] sm:$0xff] %v3949_v57  ;;  %5520 = vst [vmem:[#allocation54_spill] sm:$0xff] %v3952_v26  ;;  %v1497_v62 = vadd.f32 %v3850_v54, %v1439_v25  ;;  %v3961_v45 = vmul.f32 %v3481_v41, %v3855_v8  ;;  %v447_v17 = vmul.f32 %v3282_v60, %v3754_v20  ;;  %v3338_v57 = vld [vmem:[#allocation2 + $0x4d] ss:$0 sm:$0xff]  ;;  %v3346_v54 = vld [vmem:[#allocation2 + $0x4e] ss:$0 sm:$0xff] }
  0x58   :  { %5521 = vst [vmem:[#allocation55_spill] sm:$0xff] %v3956_v0  ;;  %v505_v26 = vmul.f32 %v3290_v27, %v3757_v24  ;;  %v5523_v25 = vld [vmem:[#allocation29_spill] sm:$0xff]  ;;  %v339_v0 = vadd.f32 %v331_v5, %v281_v39  ;;  %v563_v38 = vmul.f32 %v3298_v18, %v3760_v28  ;;  %v621_v51 = vmul.f32 %v3306_v59, %v3763_v32  ;;  %v3362_v19 = vld [vmem:[#allocation2 + $0x50] ss:$0 sm:$0xff]  ;;  %v3370_v42 = vld [vmem:[#allocation2 + $0x51] ss:$0 sm:$0xff] }
  0x59   :  { %5522 = vst [vmem:[#allocation56_spill] sm:$0xff] %v3961_v45  ;;  %v1555_v2 = vadd.f32 %v5523_v25, %v1497_v62  ;;  %v3354_v14 = vld [vmem:[#allocation2 + $0x4f] ss:$0 sm:$0xff]  ;;  %v686_v22 = vadd.f32 %v3886_v37, %v628_v31  ;;  %v3970_v41 = vmul.f32 %v3314_v47, %v3766_v36  ;;  %v3973_v60 = vmul.f32 %v3322_v56, %v3769_v40  ;;  %v3235_v50 = vld [vmem:[#allocation2 + $0x60] ss:$0 sm:$0xff] }
  0x5a   :  { %v3976_v27 = vmul.f32 %v3330_v55, %v3772_v44  ;;  %v3243_v5 = vld [vmem:[#allocation2 + $0x61] ss:$0 sm:$0xff]  ;;  %v397_v39 = vadd.f32 %v389_v58, %v339_v0  ;;  %v3980_v59 = vmul.f32 %v3338_v57, %v3775_v48  ;;  %v3983_v25 = vmul.f32 %v3346_v54, %v3778_v53  ;;  %v3378_v37 = vld [vmem:[#allocation2 + $0x52] ss:$0 sm:$0xff]  ;;  %v3386_v31 = vld [vmem:[#allocation2 + $0x53] ss:$0 sm:$0xff] }
  0x5b   :  { %v5524_v62 = vld [vmem:[#allocation32_spill] sm:$0xff]  ;;  %v744_v56 = vadd.f32 %v3889_v34, %v686_v22  ;;  %v3990_v55 = vmul.f32 %v3362_v19, %v3784_v61  ;;  %v5531_v57 = vld [vmem:[#allocation33_spill] sm:$0xff]  ;;  %v3394_v54 = vld [vmem:[#allocation2 + $0x54] ss:$0 sm:$0xff]  ;;  %v158_v34 = vmul.f32 %v3243_v5, %v3740_v4  ;;  %v4003_v19 = vmul.f32 %v3386_v31, %v3791_v9 }
  0x5c   :  { %v1613_v18 = vadd.f32 %v5524_v62, %v1555_v2  ;;  %5525 = vst [vmem:[#allocation29_spill] sm:$0xff] %v3980_v59  ;;  %5526 = vst [vmem:[#allocation32_spill] sm:$0xff] %v3983_v25  ;;  %v3251_v47 = vld [vmem:[#allocation2 + $0x62] ss:$0 sm:$0xff]  ;;  %v3993_v2 = vmul.f32 %v3370_v42, %v3786_v63  ;;  %v3259_v0 = vld [vmem:[#allocation2 + $0x63] ss:$0 sm:$0xff]  ;;  %v455_v62 = vadd.f32 %v447_v17, %v397_v39 }
  0x5d   :  { %v5527_v45 = vld [vmem:[#allocation16_spill] sm:$0xff]  ;;  %5529 = vst [vmem:[#allocation58_spill] sm:$0xff] %v3990_v55  ;;  %v3402_v25 = vld [vmem:[#allocation2 + $0x55] ss:$0 sm:$0xff]  ;;  %v3410_v11 = vld [vmem:[#allocation2 + $0x56] ss:$0 sm:$0xff]  ;;  %v100_v59 = vmul.f32 %v3235_v50, %v3737_v1  ;;  %v216_v42 = vmul.f32 %v3251_v47, %v3742_v6  ;;  %v274_v5 = vmul.f32 %v3259_v0, %v3746_v10 }
  0x5e   :  { %v3987_v29 = vmul.f32 %v3354_v14, %v5527_v45  ;;  %5530 = vst [vmem:[#allocation59_spill] sm:$0xff] %v3993_v2  ;;  %v1671_v58 = vadd.f32 %v5531_v57, %v1613_v18  ;;  %v5532_v22 = vld [vmem:[#allocation38_spill] sm:$0xff]  ;;  %5533 = vst [vmem:[#allocation33_spill] sm:$0xff] %v4003_v19  ;;  %v3267_v2 = vld [vmem:[#allocation2 + $0x64] ss:$0 sm:$0xff]  ;;  %v513_v39 = vadd.f32 %v505_v26, %v455_v62 }
  0x5f   :  { %v802_v14 = vadd.f32 %v5532_v22, %v744_v56  ;;  %v5534_v18 = vld [vmem:[#allocation34_spill] sm:$0xff]  ;;  %v3426_v55 = vld [vmem:[#allocation2 + $0x58] ss:$0 sm:$0xff]  ;;  %v3434_v63 = vld [vmem:[#allocation2 + $0x59] ss:$0 sm:$0xff]  ;;  %v166_v50 = vadd.f32 %v158_v34, %v100_v59  ;;  %v4013_v31 = vmul.f32 %v3402_v25, %v3795_v15  ;;  %v4016_v47 = vmul.f32 %v3410_v11, %v3798_v21 }
  0x60   :  { %5528 = vst [vmem:[#allocation57_spill] sm:$0xff] %v3987_v29  ;;  %v4000_v29 = vmul.f32 %v3378_v37, %v3788_v3  ;;  %v1729_v17 = vadd.f32 %v5534_v18, %v1671_v58  ;;  %v3418_v57 = vld [vmem:[#allocation2 + $0x57] ss:$0 sm:$0xff]  ;;  %v5535_v4 = vld [vmem:[#allocation39_spill] sm:$0xff]  ;;  %v4010_v37 = vmul.f32 %v3394_v54, %v3793_v13  ;;  %v3275_v22 = vld [vmem:[#allocation2 + $0x65] ss:$0 sm:$0xff]  ;;  %v571_v62 = vadd.f32 %v563_v38, %v513_v39 }
  0x61   :  { %v860_v56 = vadd.f32 %v5535_v4, %v802_v14  ;;  %5536 = vst [vmem:[#allocation38_spill] sm:$0xff] %v4013_v31  ;;  %5537 = vst [vmem:[#allocation34_spill] sm:$0xff] %v4016_v47  ;;  %v5538_v58 = vld [vmem:[#allocation35_spill] sm:$0xff]  ;;  %v224_v34 = vadd.f32 %v216_v42, %v166_v50  ;;  %v332_v0 = vmul.f32 %v3267_v2, %v3748_v12  ;;  %v5539_v4 = vld [vmem:[#allocation40_spill] sm:$0xff] }
  0x62   :  { %v1787_v26 = vadd.f32 %v5538_v58, %v1729_v17  ;;  %v3442_v18 = vld [vmem:[#allocation2 + $0x5a] ss:$0 sm:$0xff]  ;;  %v3450_v19 = vld [vmem:[#allocation2 + $0x5b] ss:$0 sm:$0xff]  ;;  %v3458_v59 = vld [vmem:[#allocation2 + $0x5c] ss:$0 sm:$0xff]  ;;  %v4022_v54 = vmul.f32 %v3418_v57, %v3800_v23  ;;  %v4025_v25 = vmul.f32 %v3426_v55, %v3807_v30  ;;  %v4028_v11 = vmul.f32 %v3434_v63, %v3809_v33 }
  0x63   :  { %v918_v14 = vadd.f32 %v5539_v4, %v860_v56  ;;  %v3466_v47 = vld [vmem:[#allocation2 + $0x5d] ss:$0 sm:$0xff]  ;;  %v5543_v17 = vld [vmem:[#allocation36_spill] sm:$0xff]  ;;  %v629_v39 = vadd.f32 %v621_v51, %v571_v62  ;;  %v3474_v58 = vld [vmem:[#allocation2 + $0x5e] ss:$0 sm:$0xff]  ;;  %v282_v42 = vadd.f32 %v274_v5, %v224_v34  ;;  %v390_v2 = vmul.f32 %v3275_v22, %v3751_v16 }
  0x64   :  { %5540 = vst [vmem:[#allocation39_spill] sm:$0xff] %v4022_v54  ;;  %5541 = vst [vmem:[#allocation35_spill] sm:$0xff] %v4025_v25  ;;  %v1845_v38 = vadd.f32 %v5543_v17, %v1787_v26  ;;  %v3482_v31 = vld [vmem:[#allocation2 + $0x5f] ss:$0 sm:$0xff]  ;;  %v3283_v50 = vld [vmem:[#allocation2 + $0x66] ss:$0 sm:$0xff]  ;;  %v4034_v57 = vmul.f32 %v3442_v18, %v3820_v43  ;;  %v4037_v55 = vmul.f32 %v3450_v19, %v3822_v46 }
  0x65   :  { %5542 = vst [vmem:[#allocation40_spill] sm:$0xff] %v4028_v11  ;;  %v5544_v56 = vld [vmem:[#allocation41_spill] sm:$0xff]  ;;  %v4040_v63 = vmul.f32 %v3458_v59, %v3824_v52  ;;  %v3291_v11 = vld [vmem:[#allocation2 + $0x67] ss:$0 sm:$0xff]  ;;  %v687_v62 = vadd.f32 %v3970_v41, %v629_v39  ;;  %v4045_v5 = vmul.f32 %v3466_v47, %v3837_v7  ;;  %v340_v22 = vadd.f32 %v332_v0, %v282_v42  ;;  %v5550_v18 = vld [vmem:[#allocation42_spill] sm:$0xff] }
  0x66   :  { %v976_v4 = vadd.f32 %v5544_v56, %v918_v14  ;;  %5545 = vst [vmem:[#allocation36_spill] sm:$0xff] %v4034_v57  ;;  %5546 = vst [vmem:[#allocation41_spill] sm:$0xff] %v4037_v55  ;;  %v5548_v26 = vld [vmem:[#allocation37_spill] sm:$0xff]  ;;  %v4049_v19 = vmul.f32 %v3474_v58, %v3844_v49  ;;  %v4052_v59 = vmul.f32 %v3482_v31, %v3855_v8  ;;  %v3387_v25 = vld [vmem:[#allocation2 + $0x73] ss:$0 sm:$0xff] }
  0x67   :  { %5547 = vst [vmem:[#allocation60_spill] sm:$0xff] %v4040_v63  ;;  %v1903_v51 = vadd.f32 %v5548_v26, %v1845_v38  ;;  %5549 = vst [vmem:[#allocation37_spill] sm:$0xff] %v4045_v5  ;;  %v3299_v34 = vld [vmem:[#allocation2 + $0x68] ss:$0 sm:$0xff]  ;;  %v3307_v14 = vld [vmem:[#allocation2 + $0x69] ss:$0 sm:$0xff]  ;;  %v448_v63 = vmul.f32 %v3283_v50, %v3754_v20  ;;  %v745_v47 = vadd.f32 %v3973_v60, %v687_v62 }
  0x68   :  { %v3315_v17 = vld [vmem:[#allocation2 + $0x6a] ss:$0 sm:$0xff]  ;;  %v1034_v56 = vadd.f32 %v5550_v18, %v976_v4  ;;  %5551 = vst [vmem:[#allocation42_spill] sm:$0xff] %v4049_v19  ;;  %5552 = vst [vmem:[#allocation61_spill] sm:$0xff] %v4052_v59  ;;  %v3323_v38 = vld [vmem:[#allocation2 + $0x6b] ss:$0 sm:$0xff]  ;;  %v398_v0 = vadd.f32 %v390_v2, %v340_v22  ;;  %v506_v42 = vmul.f32 %v3291_v11, %v3757_v24 }
  0x69   :  { %v3331_v26 = vld [vmem:[#allocation2 + $0x6c] ss:$0 sm:$0xff]  ;;  %v3339_v41 = vld [vmem:[#allocation2 + $0x6d] ss:$0 sm:$0xff]  ;;  %v4055_v39 = vmul.f32 0.17677669, %v1903_v51  ;;  %v564_v19 = vmul.f32 %v3299_v34, %v3760_v28  ;;  %v622_v31 = vmul.f32 %v3307_v14, %v3763_v32  ;;  %v680_v50 = vmul.f32 %v3315_v17, %v3766_v36 }
  0x6a   :  { %v3347_v5 = vld [vmem:[#allocation2 + $0x6e] ss:$0 sm:$0xff]  ;;  %v3355_v4 = vld [vmem:[#allocation2 + $0x6f] ss:$0 sm:$0xff]  ;;  %v5553_v18 = vld [vmem:[#allocation43_spill] sm:$0xff]  ;;  %v4066_v60 = vmul.f32 %v3323_v38, %v3769_v40  ;;  %v4069_v11 = vmul.f32 %v3331_v26, %v3772_v44  ;;  %v4073_v34 = vmul.f32 %v3339_v41, %v3775_v48  ;;  %v803_v26 = vadd.f32 %v3976_v27, %v745_v47 }
  0x6b   :  { %v1092_v58 = vadd.f32 %v5553_v18, %v1034_v56  ;;  %v3363_v59 = vld [vmem:[#allocation2 + $0x70] ss:$0 sm:$0xff]  ;;  %v1927_v55 = vrot.slane %v4055_v39, 1  ;;  %v1951_v51 = vrot.slane %v4055_v39, 2  ;;  %v3371_v2 = vld [vmem:[#allocation2 + $0x71] ss:$0 sm:$0xff]  ;;  %v4076_v14 = vmul.f32 %v3347_v5, %v3778_v53 }
  0x6c   :  { %v3379_v62 = vld [vmem:[#allocation2 + $0x72] ss:$0 sm:$0xff]  ;;  %v5554_v22 = vld [vmem:[#allocation44_spill] sm:$0xff]  ;;  %v4079_v17 = vmul.f32 %v3355_v4, %v5527_v45  ;;  %v1975_v38 = vrot.slane %v4055_v39, 3  ;;  %v456_v57 = vadd.f32 %v448_v63, %v398_v0  ;;  %v4086_v41 = vmul.f32 %v3363_v59, %v3784_v61  ;;  %v5558_v48 = vld [vmem:[#allocation29_spill] sm:$0xff] }
  0x6d   :  { %v1150_v56 = vadd.f32 %v5554_v22, %v1092_v58  ;;  %v1943_v18 = vmax.f32 %v4055_v39, %v1927_v55  ;;  %v3236_v54 = vld [vmem:[#allocation2 + $0x80] ss:$0 sm:$0xff]  ;;  %v5555_v22 = vld [vmem:[#allocation18_spill] sm:$0xff]  ;;  %v4092_v4 = vmul.f32 %v3379_v62, %v3788_v3  ;;  %v3244_v45 = vld [vmem:[#allocation2 + $0x81] ss:$0 sm:$0xff]  ;;  %v1999_v53 = vrot.slane %v4055_v39, 4 }
  0x6e   :  { %v4089_v5 = vmul.f32 %v3371_v2, %v5555_v22  ;;  %v861_v27 = vadd.f32 %v5558_v48, %v803_v26  ;;  %v514_v63 = vadd.f32 %v506_v42, %v456_v57  ;;  %v3252_v47 = vld [vmem:[#allocation2 + $0x82] ss:$0 sm:$0xff]  ;;  %v3260_v0 = vld [vmem:[#allocation2 + $0x83] ss:$0 sm:$0xff]  ;;  %v4099_v61 = vmul.f32 %v3387_v25, %v3791_v9  ;;  %v3268_v48 = vld [vmem:[#allocation2 + $0x84] ss:$0 sm:$0xff] }
  0x6f   :  { %v1208_v58 = vadd.f32 %v3918_v35, %v1150_v56  ;;  %5557 = vst [vmem:[#allocation44_spill] sm:$0xff] %v4092_v4  ;;  %v1967_v55 = vmax.f32 %v1943_v18, %v1951_v51  ;;  %v2023_v35 = vrot.slane %v4055_v39, 5  ;;  %v5559_v56 = vld [vmem:[#allocation45_spill] sm:$0xff]  ;;  %v101_v2 = vmul.f32 %v3236_v54, %v3737_v1  ;;  %v5561_v3 = vld [vmem:[#allocation32_spill] sm:$0xff]  ;;  %v3395_v18 = vld [vmem:[#allocation2 + $0x74] ss:$0 sm:$0xff] }
  0x70   :  { %5556 = vst [vmem:[#allocation43_spill] sm:$0xff] %v4089_v5  ;;  %5560 = vst [vmem:[#allocation29_spill] sm:$0xff] %v4099_v61  ;;  %v919_v4 = vadd.f32 %v5561_v3, %v861_v27  ;;  %v572_v51 = vadd.f32 %v564_v19, %v514_v63  ;;  %v5562_v22 = vld [vmem:[#allocation12_spill] sm:$0xff]  ;;  %v2047_v57 = vrot.slane %v4055_v39, 6  ;;  %v5563_v42 = vld [vmem:[#allocation46_spill] sm:$0xff]  ;;  %v217_v44 = vmul.f32 %v3252_v47, %v3742_v6 }
  0x71   :  { %v1266_v59 = vadd.f32 %v5559_v56, %v1208_v58  ;;  %v1991_v62 = vmax.f32 %v1967_v55, %v1975_v38  ;;  %v159_v5 = vmul.f32 %v3244_v45, %v5562_v22  ;;  %v275_v58 = vmul.f32 %v3260_v0, %v3746_v10  ;;  %v5564_v56 = vld [vmem:[#allocation57_spill] sm:$0xff]  ;;  %v3403_v38 = vld [vmem:[#allocation2 + $0x75] ss:$0 sm:$0xff]  ;;  %v3411_v55 = vld [vmem:[#allocation2 + $0x76] ss:$0 sm:$0xff] }
  0x72   :  { %v977_v61 = vadd.f32 %v5564_v56, %v919_v4  ;;  %v630_v54 = vadd.f32 %v622_v31, %v572_v51  ;;  %v3276_v19 = vld [vmem:[#allocation2 + $0x85] ss:$0 sm:$0xff]  ;;  %v2071_v27 = vrot.slane %v4055_v39, 7  ;;  %v5565_v45 = vld [vmem:[#allocation47_spill] sm:$0xff]  ;;  %v4112_v9 = vmul.f32 %v3395_v18, %v3793_v13  ;;  %v3284_v51 = vld [vmem:[#allocation2 + $0x86] ss:$0 sm:$0xff] }
  0x73   :  { %v1324_v26 = vadd.f32 %v5563_v42, %v1266_v59  ;;  %v2015_v25 = vmax.f32 %v1991_v62, %v1999_v53  ;;  %v167_v3 = vadd.f32 %v159_v5, %v101_v2  ;;  %v333_v59 = vmul.f32 %v3268_v48, %v3748_v12  ;;  %v5566_v42 = vld [vmem:[#allocation58_spill] sm:$0xff]  ;;  %v3427_v4 = vld [vmem:[#allocation2 + $0x78] ss:$0 sm:$0xff]  ;;  %v5567_v56 = vld [vmem:[#allocation48_spill] sm:$0xff] }
  0x74   :  { %v1035_v0 = vadd.f32 %v5566_v42, %v977_v61  ;;  %v688_v53 = vadd.f32 %v680_v50, %v630_v54  ;;  %v3419_v62 = vld [vmem:[#allocation2 + $0x77] ss:$0 sm:$0xff]  ;;  %v4118_v2 = vmul.f32 %v3403_v38, %v3795_v15  ;;  %v391_v18 = vmul.f32 %v3276_v19, %v3751_v16  ;;  %v5568_v48 = vld [vmem:[#allocation59_spill] sm:$0xff] }
  0x75   :  { %v1382_v63 = vadd.f32 %v5565_v45, %v1324_v26  ;;  %v2039_v47 = vmax.f32 %v2015_v25, %v2023_v35  ;;  %v225_v31 = vadd.f32 %v217_v44, %v167_v3  ;;  %v4121_v26 = vmul.f32 %v3411_v55, %v3798_v21  ;;  %v3435_v50 = vld [vmem:[#allocation2 + $0x79] ss:$0 sm:$0xff]  ;;  %v3443_v25 = vld [vmem:[#allocation2 + $0x7a] ss:$0 sm:$0xff]  ;;  %v3292_v44 = vld [vmem:[#allocation2 + $0x87] ss:$0 sm:$0xff] }
  0x76   :  { %v1093_v35 = vadd.f32 %v5568_v48, %v1035_v0  ;;  %v746_v61 = vadd.f32 %v4066_v60, %v688_v53  ;;  %v5569_v3 = vld [vmem:[#allocation49_spill] sm:$0xff]  ;;  %v4131_v38 = vmul.f32 %v3427_v4, %v3807_v30  ;;  %v449_v55 = vmul.f32 %v3284_v51, %v3754_v20  ;;  %v3451_v60 = vld [vmem:[#allocation2 + $0x7b] ss:$0 sm:$0xff]  ;;  %v3459_v0 = vld [vmem:[#allocation2 + $0x7c] ss:$0 sm:$0xff] }
  0x77   :  { %v1440_v5 = vadd.f32 %v5567_v56, %v1382_v63  ;;  %v2063_v45 = vmax.f32 %v2039_v47, %v2047_v57  ;;  %v283_v54 = vadd.f32 %v275_v58, %v225_v31  ;;  %v4128_v63 = vmul.f32 %v3419_v62, %v3800_v23  ;;  %v3300_v58 = vld [vmem:[#allocation2 + $0x88] ss:$0 sm:$0xff]  ;;  %v5570_v31 = vld [vmem:[#allocation50_spill] sm:$0xff]  ;;  %v3467_v48 = vld [vmem:[#allocation2 + $0x7d] ss:$0 sm:$0xff] }
  0x78   :  { %v1151_v57 = vadd.f32 %v4000_v29, %v1093_v35  ;;  %v804_v47 = vadd.f32 %v4069_v11, %v746_v61  ;;  %v4141_v62 = vmul.f32 %v3443_v25, %v3820_v43  ;;  %v507_v4 = vmul.f32 %v3292_v44, %v3757_v24  ;;  %v5571_v51 = vld [vmem:[#allocation21_spill] sm:$0xff]  ;;  %v3475_v35 = vld [vmem:[#allocation2 + $0x7e] ss:$0 sm:$0xff] }
  0x79   :  { %v1498_v42 = vadd.f32 %v5569_v3, %v1440_v5  ;;  %v2087_v19 = vmax.f32 %v2063_v45, %v2071_v27  ;;  %v341_v53 = vadd.f32 %v333_v59, %v283_v54  ;;  %v4138_v5 = vmul.f32 %v3435_v50, %v3809_v33  ;;  %v5572_v45 = vld [vmem:[#allocation33_spill] sm:$0xff]  ;;  %v5573_v54 = vld [vmem:[#allocation51_spill] sm:$0xff] }
  0x7a   :  { %v1209_v29 = vadd.f32 %v5572_v45, %v1151_v57  ;;  %v862_v11 = vadd.f32 %v4073_v34, %v804_v47  ;;  %v3308_v61 = vld [vmem:[#allocation2 + $0x89] ss:$0 sm:$0xff]  ;;  %v4149_v50 = vmul.f32 %v3451_v60, %v3822_v46  ;;  %v4152_v25 = vmul.f32 %v3459_v0, %v3824_v52  ;;  %v3483_v57 = vld [vmem:[#allocation2 + $0x7f] ss:$0 sm:$0xff] }
  0x7b   :  { %v1556_v56 = vadd.f32 %v5570_v31, %v1498_v42  ;;  %v2098_v27 = vrot.slane %v2087_v19, %v5571_v51  ;;  %v399_v59 = vadd.f32 %v391_v18, %v341_v53  ;;  %v565_v44 = vmul.f32 %v3300_v58, %v3760_v28  ;;  %v3316_v18 = vld [vmem:[#allocation2 + $0x8a] ss:$0 sm:$0xff]  ;;  %v3324_v53 = vld [vmem:[#allocation2 + $0x8b] ss:$0 sm:$0xff]  ;;  %v5574_v31 = vld [vmem:[#allocation52_spill] sm:$0xff] }
  0x7c   :  { %v1267_v19 = vadd.f32 %v4010_v37, %v1209_v29  ;;  %v920_v34 = vadd.f32 %v4076_v14, %v862_v11  ;;  %v4160_v60 = vmul.f32 %v3467_v48, %v3837_v7  ;;  %v4163_v0 = vmul.f32 %v3475_v35, %v3844_v49  ;;  %v3332_v58 = vld [vmem:[#allocation2 + $0x8c] ss:$0 sm:$0xff]  ;;  %v3348_v29 = vld [vmem:[#allocation2 + $0x8e] ss:$0 sm:$0xff]  ;;  %v5591_v49 = vld [vmem:[#allocation56_spill] sm:$0xff] }
  0x7d   :  { %v1614_v3 = vadd.f32 %v5573_v54, %v1556_v56  ;;  %v2127_v42 = vsub.f32 %v4055_v39, %v2098_v27  ;;  %v457_v47 = vadd.f32 %v449_v55, %v399_v59  ;;  %v623_v28 = vmul.f32 %v3308_v61, %v3763_v32  ;;  %v5575_v27 = vld [vmem:[#allocation38_spill] sm:$0xff]  ;;  %v3340_v55 = vld [vmem:[#allocation2 + $0x8d] ss:$0 sm:$0xff] }
  0x7e   :  { %v1325_v37 = vadd.f32 %v5575_v27, %v1267_v19  ;;  %v978_v14 = vadd.f32 %v4079_v17, %v920_v34  ;;  %v5576_v11 = vld [vmem:[#allocation53_spill] sm:$0xff]  ;;  %v4170_v54 = vmul.f32 %v3483_v57, %v3855_v8  ;;  %v681_v48 = vmul.f32 %v3316_v18, %v3766_v36  ;;  %v5578_v32 = vld [vmem:[#allocation34_spill] sm:$0xff]  ;;  %v3237_v34 = vld [vmem:[#allocation2 + $0xa0] ss:$0 sm:$0xff] }
  0x7f   :  { %v1672_v56 = vadd.f32 %v5574_v31, %v1614_v3  ;;  %v2135_v39 = vmul.f32 1.442695, %v2127_v42  ;;  %v515_v45 = vadd.f32 %v507_v4, %v457_v47  ;;  %v739_v35 = vmul.f32 %v3324_v53, %v3769_v40  ;;  %v3356_v3 = vld [vmem:[#allocation2 + $0x8f] ss:$0 sm:$0xff]  ;;  %v3364_v17 = vld [vmem:[#allocation2 + $0x90] ss:$0 sm:$0xff] }
  0x80   :  { %5577 = vst [vmem:[#allocation45_spill] sm:$0xff] %v4170_v54  ;;  %v1383_v61 = vadd.f32 %v5578_v32, %v1325_v37  ;;  %v1036_v42 = vadd.f32 %v4086_v41, %v978_v14  ;;  %v3372_v4 = vld [vmem:[#allocation2 + $0x91] ss:$0 sm:$0xff]  ;;  %v5582_v8 = vld [vmem:[#allocation15_spill] sm:$0xff]  ;;  %v3245_v40 = vld [vmem:[#allocation2 + $0xa1] ss:$0 sm:$0xff] }
  0x81   :  { %v1730_v59 = vadd.f32 %v5576_v11, %v1672_v56  ;;  %3494 = vpow2.f32 %v2135_v39  ;;  %v573_v19 = vadd.f32 %v565_v44, %v515_v45  ;;  %v5579_v47 = vld [vmem:[#allocation54_spill] sm:$0xff]  ;;  %v5580_v56 = vld [vmem:[#allocation13_spill] sm:$0xff]  ;;  %v4180_v36 = vmul.f32 %v3348_v29, %v5582_v8  ;;  %v5583_v18 = vld [vmem:[#allocation39_spill] sm:$0xff] }
  0x82   :  { %v797_v27 = vmul.f32 %v3332_v58, %v5580_v56  ;;  %v5581_v57 = vld [vmem:[#allocation14_spill] sm:$0xff]  ;;  %v1441_v53 = vadd.f32 %v5583_v18, %v1383_v61  ;;  %v5584_v39 = vld [vmem:[#allocation43_spill] sm:$0xff]  ;;  %v5585_v41 = vld [vmem:[#allocation16_spill] sm:$0xff]  ;;  %v102_v29 = vmul.f32 %v3237_v34, %v3737_v1 }
  0x83   :  { %v1788_v31 = vadd.f32 %v5579_v47, %v1730_v59  ;;  %v855_v11 = vmul.f32 %v3340_v55, %v5581_v57  ;;  %v1094_v37 = vadd.f32 %v5584_v39, %v1036_v42  ;;  %v631_v32 = vadd.f32 %v623_v28, %v573_v19  ;;  %v3380_v14 = vld [vmem:[#allocation2 + $0x92] ss:$0 sm:$0xff]  ;;  %v3388_v45 = vld [vmem:[#allocation2 + $0x93] ss:$0 sm:$0xff]  ;;  %v3253_v54 = vld [vmem:[#allocation2 + $0xa2] ss:$0 sm:$0xff] }
  0x84   :  { %v4185_v44 = vmul.f32 %v3356_v3, %v5585_v41  ;;  %v5586_v59 = vld [vmem:[#allocation55_spill] sm:$0xff]  ;;  %v5587_v58 = vld [vmem:[#allocation17_spill] sm:$0xff]  ;;  %v5588_v55 = vld [vmem:[#allocation18_spill] sm:$0xff]  ;;  %v160_v39 = vmul.f32 %v3245_v40, %v5562_v22  ;;  %v218_v1 = vmul.f32 %v3253_v54, %v3742_v6 }
  0x85   :  { %v1846_v47 = vadd.f32 %v5586_v59, %v1788_v31  ;;  %v4189_v56 = vmul.f32 %v3364_v17, %v5587_v58  ;;  %v4192_v8 = vmul.f32 %v3372_v4, %v5588_v55  ;;  %v5589_v61 = vld [vmem:[#allocation35_spill] sm:$0xff]  ;;  %v5590_v42 = vld [vmem:[#allocation44_spill] sm:$0xff]  ;;  %v689_v19 = vadd.f32 %v681_v48, %v631_v32  ;;  %v3396_v3 = vld [vmem:[#allocation2 + $0x94] ss:$0 sm:$0xff] }
  0x86   :  { %v1499_v57 = vadd.f32 %v5589_v61, %v1441_v53  ;;  %v1152_v28 = vadd.f32 %v5590_v42, %v1094_v37  ;;  %v3404_v18 = vld [vmem:[#allocation2 + $0x95] ss:$0 sm:$0xff]  ;;  %v3261_v41 = vld [vmem:[#allocation2 + $0xa3] ss:$0 sm:$0xff]  ;;  %v5592_v59 = vld [vmem:[#allocation19_spill] sm:$0xff]  ;;  %v168_v61 = vadd.f32 %v160_v39, %v102_v29 }
  0x87   :  { %v1904_v31 = vadd.f32 %v5591_v49, %v1846_v47  ;;  %v4200_v17 = vmul.f32 %v3380_v14, %v5592_v59  ;;  %v5593_v58 = vld [vmem:[#allocation20_spill] sm:$0xff]  ;;  %v5595_v55 = vld [vmem:[#allocation29_spill] sm:$0xff]  ;;  %v747_v48 = vadd.f32 %v739_v35, %v689_v19  ;;  %v3412_v32 = vld [vmem:[#allocation2 + $0x96] ss:$0 sm:$0xff]  ;;  %v4211_v49 = vmul.f32 %v3396_v3, %v3793_v13 }
  0x88   :  { %v4203_v4 = vmul.f32 %v3388_v45, %v5593_v58  ;;  %v5594_v34 = vld [vmem:[#allocation40_spill] sm:$0xff]  ;;  %v1210_v37 = vadd.f32 %v5595_v55, %v1152_v28  ;;  %v4214_v40 = vmul.f32 %v3404_v18, %v3795_v15  ;;  %v3420_v14 = vld [vmem:[#allocation2 + $0x97] ss:$0 sm:$0xff]  ;;  %v3428_v45 = vld [vmem:[#allocation2 + $0x98] ss:$0 sm:$0xff]  ;;  %v276_v6 = vmul.f32 %v3261_v41, %v3746_v10 }
  0x89   :  { %v1557_v53 = vadd.f32 %v5594_v34, %v1499_v57  ;;  %v3269_v42 = vld [vmem:[#allocation2 + $0xa4] ss:$0 sm:$0xff]  ;;  %v4208_v22 = vmul.f32 0.17677669, %v1904_v31  ;;  %v805_v35 = vadd.f32 %v797_v27, %v747_v48  ;;  %v226_v28 = vadd.f32 %v218_v1, %v168_v61  ;;  %v3436_v3 = vld [vmem:[#allocation2 + $0x99] ss:$0 sm:$0xff] }
  0x8a   :  { %v5596_v54 = vld [vmem:[#allocation36_spill] sm:$0xff]  ;;  %v1268_v57 = vadd.f32 %v4112_v9, %v1210_v37  ;;  %v4222_v13 = vmul.f32 %v3412_v32, %v3798_v21  ;;  %v334_v15 = vmul.f32 %v3269_v42, %v3748_v12  ;;  %v5597_v10 = vld [vmem:[#allocation41_spill] sm:$0xff]  ;;  %v4228_v31 = vmul.f32 %v3420_v14, %v3800_v23 }
  0x8b   :  { %v1615_v47 = vadd.f32 %v5596_v54, %v1557_v53  ;;  %v1928_v29 = vrot.slane %v4208_v22, 1  ;;  %v1952_v19 = vrot.slane %v4208_v22, 2  ;;  %v3277_v18 = vld [vmem:[#allocation2 + $0xa5] ss:$0 sm:$0xff]  ;;  %v1976_v39 = vrot.slane %v4208_v22, 3 }
  0x8c   :  { %v4231_v9 = vmul.f32 %v3428_v45, %v3807_v30  ;;  %v1326_v59 = vadd.f32 %v4118_v2, %v1268_v57  ;;  %v863_v21 = vadd.f32 %v855_v11, %v805_v35  ;;  %v284_v58 = vadd.f32 %v276_v6, %v226_v28  ;;  %v3285_v1 = vld [vmem:[#allocation2 + $0xa6] ss:$0 sm:$0xff]  ;;  %v3293_v34 = vld [vmem:[#allocation2 + $0xa7] ss:$0 sm:$0xff]  ;;  %v3301_v28 = vld [vmem:[#allocation2 + $0xa8] ss:$0 sm:$0xff] }
  0x8d   :  { %v1673_v41 = vadd.f32 %v5597_v10, %v1615_v47  ;;  %v1944_v27 = vmax.f32 %v4208_v22, %v1928_v29  ;;  %v2000_v12 = vrot.slane %v4208_v22, 4  ;;  %v5598_v53 = vld [vmem:[#allocation60_spill] sm:$0xff]  ;;  %v4238_v37 = vmul.f32 %v3436_v3, %v3809_v33  ;;  %v5599_v47 = vld [vmem:[#allocation37_spill] sm:$0xff] }
  0x8e   :  { %v392_v23 = vmul.f32 %v3277_v18, %v3751_v16  ;;  %v4241_v48 = vpop.eup %3494  ;;  %v1384_v32 = vadd.f32 %v4121_v26, %v1326_v59  ;;  %v921_v2 = vadd.f32 %v4180_v36, %v863_v21  ;;  %v342_v11 = vadd.f32 %v334_v15, %v284_v58  ;;  %v5600_v15 = vld [vmem:[#allocation42_spill] sm:$0xff]  ;;  %v4262_v21 = vld [vmem:[#allocation5 + $0x40] sm:$0xff] }
  0x8f   :  { %v1731_v55 = vadd.f32 %v5598_v53, %v1673_v41  ;;  %v1968_v30 = vmax.f32 %v1944_v27, %v1952_v19  ;;  %v2159_v61 = vrot.slane %v4241_v48, 1  ;;  %v2183_v42 = vrot.slane %v4241_v48, 2  ;;  %v3444_v41 = vld [vmem:[#allocation2 + $0x9a] ss:$0 sm:$0xff]  ;;  %v3452_v27 = vld [vmem:[#allocation2 + $0x9b] ss:$0 sm:$0xff] }
  0x90   :  { %v450_v14 = vmul.f32 %v3285_v1, %v3754_v20  ;;  %v508_v45 = vmul.f32 %v3293_v34, %v3757_v24  ;;  %v2207_v33 = vrot.slane %v4241_v48, 3  ;;  %v2024_v16 = vrot.slane %v4208_v22, 5  ;;  %v5601_v34 = vld [vmem:[#allocation61_spill] sm:$0xff] }
  0x91   :  { %v1992_v6 = vmax.f32 %v1968_v30, %v1976_v39  ;;  %v2048_v54 = vrot.slane %v4208_v22, 6  ;;  %v2175_v26 = vadd.f32 %v4241_v48, %v2159_v61  ;;  %v1789_v36 = vadd.f32 %v5599_v47, %v1731_v55 }
  0x92   :  { %v1442_v57 = vadd.f32 %v4128_v63, %v1384_v32  ;;  %v979_v35 = vadd.f32 %v4185_v44, %v921_v2  ;;  %v2231_v20 = vrot.slane %v4241_v48, 4  ;;  %v2072_v24 = vrot.slane %v4208_v22, 7  ;;  %v3460_v32 = vld [vmem:[#allocation2 + $0x9c] ss:$0 sm:$0xff]  ;;  %v3468_v2 = vld [vmem:[#allocation2 + $0x9d] ss:$0 sm:$0xff] }
  0x93   :  { %v2016_v29 = vmax.f32 %v1992_v6, %v2000_v12  ;;  %v400_v19 = vadd.f32 %v392_v23, %v342_v11  ;;  %v2199_v3 = vadd.f32 %v2183_v42, %v2175_v26  ;;  %v1847_v18 = vadd.f32 %v5600_v15, %v1789_v36  ;;  %v3325_v36 = vld [vmem:[#allocation2 + $0xab] ss:$0 sm:$0xff] }
  0x94   :  { %v1500_v39 = vadd.f32 %v4131_v38, %v1442_v57  ;;  %v1037_v10 = vadd.f32 %v4189_v56, %v979_v35  ;;  %v2255_v63 = vrot.slane %v4241_v48, 5  ;;  %v566_v58 = vmul.f32 %v4262_v21, %v3301_v28  ;;  %v3309_v38 = vld [vmem:[#allocation2 + $0xa9] ss:$0 sm:$0xff]  ;;  %v4292_v35 = vld [vmem:[#allocation5 + $0x50] sm:$0xff] }
  0x95   :  { %v2040_v59 = vmax.f32 %v2016_v29, %v2024_v16  ;;  %v458_v44 = vadd.f32 %v450_v14, %v400_v19  ;;  %v2223_v1 = vadd.f32 %v2207_v33, %v2199_v3  ;;  %v1905_v12 = vadd.f32 %v5601_v34, %v1847_v18  ;;  %v3317_v33 = vld [vmem:[#allocation2 + $0xaa] ss:$0 sm:$0xff]  ;;  %5602 = vst [vmem:[#allocation32_spill] sm:$0xff] %v4292_v35  ;;  %v3333_v3 = vld [vmem:[#allocation2 + $0xac] ss:$0 sm:$0xff] }
  0x96   :  { %v1558_v53 = vadd.f32 %v4138_v5, %v1500_v39  ;;  %v1095_v55 = vadd.f32 %v4192_v8, %v1037_v10  ;;  %v4269_v56 = vmul.f32 %v3444_v41, %v3820_v43  ;;  %v4272_v30 = vmul.f32 %v3452_v27, %v3822_v46  ;;  %v4279_v43 = vld [vmem:[#allocation5 + $0x48] sm:$0xff]  ;;  %v4300_v39 = vld [vmem:[#allocation5 + $0x58] sm:$0xff] }
  0x97   :  { %v2064_v23 = vmax.f32 %v2040_v59, %v2048_v54  ;;  %v516_v11 = vadd.f32 %v508_v45, %v458_v44  ;;  %v2247_v61 = vadd.f32 %v2231_v20, %v2223_v1  ;;  %v2279_v42 = vrot.slane %v4241_v48, 6  ;;  %5603 = vst [vmem:[#allocation12_spill] sm:$0xff] %v4300_v39  ;;  %v3341_v59 = vld [vmem:[#allocation2 + $0xad] ss:$0 sm:$0xff]  ;;  %v4306_v1 = vld [vmem:[#allocation5 + $0x60] sm:$0xff] }
  0x98   :  { %v4275_v14 = vmul.f32 0.17677669, %v1905_v12  ;;  %v1616_v5 = vadd.f32 %v4141_v62, %v1558_v53  ;;  %v1153_v6 = vadd.f32 %v4200_v17, %v1095_v55  ;;  %v624_v46 = vmul.f32 %v4279_v43, %v3309_v38  ;;  %5604 = vst [vmem:[#allocation46_spill] sm:$0xff] %v4306_v1  ;;  %v3476_v55 = vld [vmem:[#allocation2 + $0x9e] ss:$0 sm:$0xff] }
  0x99   :  { %v2088_v8 = vmax.f32 %v2064_v23, %v2072_v24  ;;  %v574_v16 = vadd.f32 %v566_v58, %v516_v11  ;;  %v2271_v54 = vadd.f32 %v2255_v63, %v2247_v61  ;;  %v2303_v26 = vrot.slane %v4241_v48, 7  ;;  %v3349_v38 = vld [vmem:[#allocation2 + $0xae] ss:$0 sm:$0xff]  ;;  %v3484_v23 = vld [vmem:[#allocation2 + $0x9f] ss:$0 sm:$0xff] }
  0x9a   :  { %v1929_v45 = vrot.slane %v4275_v14, 1  ;;  %v1953_v47 = vrot.slane %v4275_v14, 2  ;;  %v4287_v62 = vmul.f32 %v3460_v32, %v3824_v52  ;;  %v4290_v17 = vmul.f32 %v3468_v2, %v3837_v7 }
  0x9b   :  { %v2102_v57 = vrot.slane %v2088_v8, %v5571_v51  ;;  %v682_v28 = vmul.f32 %v4292_v35, %v3317_v33  ;;  %v2295_v20 = vadd.f32 %v2279_v42, %v2271_v54  ;;  %v1977_v24 = vrot.slane %v4275_v14, 3  ;;  %v3365_v33 = vld [vmem:[#allocation2 + $0xb0] ss:$0 sm:$0xff]  ;;  %v5606_v8 = vld [vmem:[#allocation27_spill] sm:$0xff]  ;;  %v3373_v54 = vld [vmem:[#allocation2 + $0xb1] ss:$0 sm:$0xff] }
  0x9c   :  { %v1945_v29 = vmax.f32 %v4275_v14, %v1929_v45  ;;  %v1674_v19 = vadd.f32 %v4149_v50, %v1616_v5  ;;  %v1211_v52 = vadd.f32 %v4203_v4, %v1153_v6  ;;  %v632_v18 = vadd.f32 %v624_v46, %v574_v16  ;;  %v3357_v5 = vld [vmem:[#allocation2 + $0xaf] ss:$0 sm:$0xff]  ;;  %v4322_v16 = vld [vmem:[#allocation5 + $0x70] sm:$0xff] }
  0x9d   :  { %v2128_v15 = vsub.f32 %v4208_v22, %v2102_v57  ;;  %v740_v7 = vmul.f32 %v4300_v39, %v3325_v36  ;;  %v2319_v10 = vadd.f32 %v2303_v26, %v2295_v20  ;;  %v2001_v27 = vrot.slane %v4275_v14, 4  ;;  %5607 = vst [vmem:[#allocation47_spill] sm:$0xff] %v4322_v16  ;;  %v3381_v26 = vld [vmem:[#allocation2 + $0xb2] ss:$0 sm:$0xff]  ;;  %v5608_v36 = vld [vmem:[#allocation45_spill] sm:$0xff] }
  0x9e   :  { %v1969_v41 = vmax.f32 %v1945_v29, %v1953_v47  ;;  %v1732_v63 = vadd.f32 %v4152_v25, %v1674_v19  ;;  %v1269_v50 = vadd.f32 %v4211_v49, %v1211_v52  ;;  %v690_v58 = vadd.f32 %v682_v28, %v632_v18  ;;  %v4313_v49 = vld [vmem:[#allocation5 + $0x68] sm:$0xff]  ;;  %v3238_v20 = vld [vmem:[#allocation2 + $0xc0] ss:$0 sm:$0xff]  ;;  %v4331_v19 = vld [vmem:[#allocation5 + $0x78] sm:$0xff] }
  0x9f   :  { %v2137_v44 = vmul.f32 1.442695, %v2128_v15  ;;  %v798_v4 = vmul.f32 %v4306_v1, %v3333_v3  ;;  %v2330_v22 = vrot.slane %v2319_v10, %v5571_v51  ;;  %v2025_v12 = vrot.slane %v4275_v14, 5  ;;  %5605 = vst [vmem:[#allocation57_spill] sm:$0xff] %v4313_v49  ;;  %5610 = vst [vmem:[#allocation58_spill] sm:$0xff] %v4331_v19  ;;  %v4334_v15 = vld [vmem:[#allocation5 + $0x80] sm:$0xff] }
  0xa0   :  { %v1993_v34 = vmax.f32 %v1969_v41, %v1977_v24  ;;  %v1790_v53 = vadd.f32 %v4160_v60, %v1732_v63  ;;  %v1327_v25 = vadd.f32 %v4214_v40, %v1269_v50  ;;  %v748_v32 = vadd.f32 %v740_v7, %v690_v58  ;;  %5611 = vst [vmem:[#allocation48_spill] sm:$0xff] %v4334_v15  ;;  %v3389_v18 = vld [vmem:[#allocation2 + $0xb3] ss:$0 sm:$0xff]  ;;  %v3397_v7 = vld [vmem:[#allocation2 + $0xb4] ss:$0 sm:$0xff]  ;;  %v4540_v1 = vld [vmem:[#allocation7 + $0xb8] sm:$0xff] }
  0xa1   :  { %3496 = vpow2.f32 %v2137_v44  ;;  %v856_v2 = vmul.f32 %v4313_v49, %v3341_v59  ;;  %v2049_v61 = vrot.slane %v4275_v14, 6  ;;  %v4320_v6 = vmul.f32 %v3476_v55, %v5606_v8  ;;  %v4342_v59 = vld [vmem:[#allocation5 + $0x90] sm:$0xff]  ;;  %v3254_v50 = vld [vmem:[#allocation2 + $0xc2] ss:$0 sm:$0xff]  ;;  %v4536_v49 = vld [vmem:[#allocation7 + $0x98] sm:$0xff] }
  0xa2   :  { %3498 = vrcp.f32 %v2330_v22  ;;  %v2017_v11 = vmax.f32 %v1993_v34, %v2001_v27  ;;  %v1848_v42 = vadd.f32 %v4163_v0, %v1790_v53  ;;  %v1385_v60 = vadd.f32 %v4222_v13, %v1327_v25  ;;  %v5609_v0 = vld [vmem:[#allocation30_spill] sm:$0xff]  ;;  %v3246_v13 = vld [vmem:[#allocation2 + $0xc1] ss:$0 sm:$0xff]  ;;  %v4339_v27 = vld [vmem:[#allocation5 + $0x88] sm:$0xff]  ;;  %5613 = vst [vmem:[#allocation49_spill] sm:$0xff] %v4342_v59 }
  0xa3   :  { %v806_v40 = vadd.f32 %v798_v4, %v748_v32  ;;  %v914_v46 = vmul.f32 %v4322_v16, %v3349_v38  ;;  %v2073_v47 = vrot.slane %v4275_v14, 7  ;;  %v4328_v28 = vmul.f32 %v3484_v23, %v5609_v0  ;;  %5612 = vst [vmem:[#allocation59_spill] sm:$0xff] %v4339_v27  ;;  %v3405_v44 = vld [vmem:[#allocation2 + $0xb5] ss:$0 sm:$0xff]  ;;  %v4348_v22 = vld [vmem:[#allocation5] sm:$0xff]  ;;  %v4356_v23 = vld [vmem:[#allocation5 + $0x98] sm:$0xff] }
  0xa4   :  { %v2041_v45 = vmax.f32 %v2017_v11, %v2025_v12  ;;  %v1906_v57 = vadd.f32 %v5608_v36, %v1848_v42  ;;  %v1443_v29 = vadd.f32 %v4228_v31, %v1385_v60  ;;  %v972_v3 = vmul.f32 %v4331_v19, %v3357_v5  ;;  %5614 = vst [vmem:[#allocation50_spill] sm:$0xff] %v4348_v22  ;;  %v4351_v12 = vld [vmem:[#allocation5 + $0x8] sm:$0xff]  ;;  %v4372_v5 = vld [vmem:[#allocation5 + $0x10] sm:$0xff]  ;;  %v4517_v19 = vld [vmem:[#allocation7 + $0x38] sm:$0xff] }
  0xa5   :  { %v864_v24 = vadd.f32 %v856_v2, %v806_v40  ;;  %v1030_v52 = vmul.f32 %v4334_v15, %v3365_v33  ;;  %v1088_v63 = vmul.f32 %v4339_v27, %v3373_v54  ;;  %v4345_v31 = vmul.f32 %v4342_v59, %v3381_v26  ;;  %5615 = vst [vmem:[#allocation21_spill] sm:$0xff] %v4351_v12  ;;  %v4362_v2 = vld [vmem:[#allocation5 + $0xa0] sm:$0xff] }
  0xa6   :  { %v2065_v10 = vmax.f32 %v2041_v45, %v2049_v61  ;;  %v4337_v41 = vmul.f32 0.17677669, %v1906_v57  ;;  %v1501_v58 = vadd.f32 %v4231_v9, %v1443_v29  ;;  %v103_v34 = vmul.f32 %v4348_v22, %v3238_v20  ;;  %5616 = vst [vmem:[#allocation33_spill] sm:$0xff] %v4356_v23  ;;  %5617 = vst [vmem:[#allocation51_spill] sm:$0xff] %v4362_v2  ;;  %v4367_v61 = vld [vmem:[#allocation5 + $0xa8] sm:$0xff]  ;;  %v4534_v22 = vld [vmem:[#allocation7 + $0x78] sm:$0xff] }
  0xa7   :  { %v922_v4 = vadd.f32 %v914_v46, %v864_v24  ;;  %v161_v53 = vmul.f32 %v4351_v12, %v3246_v13  ;;  %v4359_v32 = vmul.f32 %v4356_v23, %v3389_v18  ;;  %v4365_v11 = vmul.f32 %v4362_v2, %v3397_v7  ;;  %5618 = vst [vmem:[#allocation52_spill] sm:$0xff] %v4367_v61  ;;  %v3262_v54 = vld [vmem:[#allocation2 + $0xc3] ss:$0 sm:$0xff]  ;;  %v3270_v26 = vld [vmem:[#allocation2 + $0xc4] ss:$0 sm:$0xff]  ;;  %v5632_v18 = vld [vmem:[#allocation23_spill] sm:$0xff] }
  0xa8   :  { %v2089_v55 = vmax.f32 %v2065_v10, %v2073_v47  ;;  %v1930_v38 = vrot.slane %v4337_v41, 1  ;;  %v1954_v25 = vrot.slane %v4337_v41, 2  ;;  %v1978_v9 = vrot.slane %v4337_v41, 3  ;;  %5619 = vst [vmem:[#allocation38_spill] sm:$0xff] %v4372_v5  ;;  %v3278_v45 = vld [vmem:[#allocation2 + $0xc5] ss:$0 sm:$0xff] }
  0xa9   :  { %v4370_v42 = vmul.f32 %v4367_v61, %v3405_v44  ;;  %v219_v33 = vmul.f32 %v4372_v5, %v3254_v50  ;;  %v1559_v40 = vadd.f32 %v4238_v37, %v1501_v58  ;;  %v980_v46 = vadd.f32 %v972_v3, %v922_v4  ;;  %v4384_v37 = vld [vmem:[#allocation5 + $0x18] sm:$0xff]  ;;  %v4389_v7 = vld [vmem:[#allocation5 + $0x20] sm:$0xff]  ;;  %v4394_v44 = vld [vmem:[#allocation5 + $0x28] sm:$0xff] }
  0xaa   :  { %v2106_v60 = vrot.slane %v2089_v55, %v5571_v51  ;;  %v1946_v8 = vmax.f32 %v4337_v41, %v1930_v38  ;;  %v2002_v47 = vrot.slane %v4337_v41, 4  ;;  %v169_v0 = vadd.f32 %v161_v53, %v103_v34  ;;  %5620 = vst [vmem:[#allocation53_spill] sm:$0xff] %v4384_v37  ;;  %5621 = vst [vmem:[#allocation34_spill] sm:$0xff] %v4389_v7  ;;  %v4455_v55 = vld [vmem:[#allocation7 + $0x8] sm:$0xff]  ;;  %v4512_v12 = vld [vmem:[#allocation7 + $0xd0] sm:$0xff] }
  0xab   :  { %v1617_v29 = vadd.f32 %v4269_v56, %v1559_v40  ;;  %v1038_v24 = vadd.f32 %v1030_v52, %v980_v46  ;;  %v4387_v3 = vmul.f32 %v4384_v37, %v3262_v54  ;;  %v4392_v10 = vmul.f32 %v4389_v7, %v3270_v26  ;;  %5622 = vst [vmem:[#allocation54_spill] sm:$0xff] %v4394_v44  ;;  %v4412_v40 = vld [vmem:[#allocation7 + $0x20] sm:$0xff]  ;;  %v4457_v61 = vld [vmem:[#allocation7 + $0x28] sm:$0xff]  ;;  %v4492_v7 = vld [vmem:[#allocation7 + $0x30] sm:$0xff] }
  0xac   :  { %v2129_v20 = vsub.f32 %v4275_v14, %v2106_v60  ;;  %v1970_v13 = vmax.f32 %v1946_v8, %v1954_v25  ;;  %v4397_v14 = vmul.f32 %v4394_v44, %v3278_v45  ;;  %v4402_v4 = vadd.f32 %v219_v33, %v169_v0  ;;  %v4410_v8 = vld [vmem:[#allocation7] sm:$0xff]  ;;  %5624 = vst [vmem:[#allocation14_spill] sm:$0xff] %v4412_v40  ;;  %v4459_v2 = vld [vmem:[#allocation7 + $0x48] sm:$0xff]  ;;  %v4486_v44 = vld [vmem:[#allocation7 + $0x10] sm:$0xff] }
  0xad   :  { %v1675_v58 = vadd.f32 %v4272_v30, %v1617_v29  ;;  %v4407_v25 = vadd.f32 %v1088_v63, %v1038_v24  ;;  %5623 = vst [vmem:[#allocation13_spill] sm:$0xff] %v4410_v8  ;;  %v4417_v46 = vld [vmem:[#allocation7 + $0x40] sm:$0xff]  ;;  %v5631_v24 = vld [vmem:[#allocation22_spill] sm:$0xff]  ;;  %5638 = vst [vmem:[#allocation18_spill] sm:$0xff] %v4455_v55 }
  0xae   :  { %v4399_v50 = vpop.eup %3496  ;;  %v2139_v56 = vmul.f32 1.442695, %v2129_v20  ;;  %v1994_v52 = vmax.f32 %v1970_v13, %v1978_v9  ;;  %5625 = vst [vmem:[#allocation15_spill] sm:$0xff] %v4417_v46  ;;  %v4419_v54 = vld [vmem:[#allocation7 + $0x60] sm:$0xff]  ;;  %v5637_v9 = vld [vmem:[#allocation31_spill] sm:$0xff]  ;;  %5639 = vst [vmem:[#allocation35_spill] sm:$0xff] %v4457_v61 }
  0xaf   :  { %v3499_v34 = vpop.eup %3498  ;;  %v2160_v53 = vrot.slane %v4399_v50, 1  ;;  %5626 = vst [vmem:[#allocation39_spill] sm:$0xff] %v4419_v54  ;;  %v4421_v26 = vld [vmem:[#allocation7 + $0x80] sm:$0xff]  ;;  %5640 = vst [vmem:[#allocation44_spill] sm:$0xff] %v4459_v2  ;;  %v4496_v37 = vld [vmem:[#allocation7 + $0x70] sm:$0xff] }
  0xb0   :  { %v2360_v60 = vmul.f32 %v3499_v34, %v4241_v48  ;;  %5627 = vst [vmem:[#allocation43_spill] sm:$0xff] %v4421_v26  ;;  %3500 = vpow2.f32 %v2139_v56  ;;  %v4427_v45 = vmax.f32 %v1994_v52, %v2002_v47  ;;  %v4429_v0 = vld [vmem:[#allocation7 + $0xa0] sm:$0xff]  ;;  %v5634_v48 = vld [vmem:[#allocation25_spill] sm:$0xff]  ;;  %v5635_v47 = vld [vmem:[#allocation26_spill] sm:$0xff] }
  0xb1   :  { %v4424_v63 = vadd.f32 %v4399_v50, %v2160_v53  ;;  %5628 = vst [vmem:[#allocation16_spill] sm:$0xff] %v4429_v0  ;;  %v4431_v20 = vld [vmem:[#allocation7 + $0xc0] sm:$0xff]  ;;  %5646 = vst [vmem:[#allocation36_spill] sm:$0xff] %v4486_v44 }
  0xb2   :  { %5629 = vst [vmem:[#allocation55_spill] sm:$0xff] %v4431_v20  ;;  %v4433_v13 = vld [vmem:[#allocation7 + $0xe0] sm:$0xff]  ;;  %v2410_v29 = vrot.slane %v2360_v60, %v5571_v51  ;;  %v2422_v34 = vrot.slane %v2360_v60, %v5631_v24  ;;  %v4438_v33 = vrot.slane %v2360_v60, %v5632_v18  ;;  %v4444_v56 = vrot.slane %v2360_v60, %v5634_v48  ;;  %v4465_v48 = vld [vmem:[#allocation7 + $0x68] sm:$0xff] }
  0xb3   :  { %5630 = vst [vmem:[#allocation17_spill] sm:$0xff] %v4433_v13  ;;  %v5633_v53 = vld [vmem:[#allocation24_spill] sm:$0xff]  ;;  %v4447_v52 = vrot.slane %v2360_v60, %v5635_v47  ;;  %v4453_v38 = vrot.slane %v2360_v60, %v5637_v9  ;;  %5641 = vst [vmem:[#allocation56_spill] sm:$0xff] %v4465_v48  ;;  %v4482_v18 = vld [vmem:[#allocation7 + $0xc8] sm:$0xff] }
  0xb4   :  { %v4441_v57 = vrot.slane %v2360_v60, %v5633_v53  ;;  %v5636_v30 = vld [vmem:[#allocation28_spill] sm:$0xff]  ;;  %v2411_v23 = vmul.f32 %v2410_v29, %v4410_v8  ;;  %v2423_v59 = vmul.f32 %v2422_v34, %v4412_v40  ;;  %v2435_v47 = vmul.f32 %v4438_v33, %v4417_v46  ;;  %v4469_v53 = vld [vmem:[#allocation7 + $0xa8] sm:$0xff]  ;;  %5644 = vst [vmem:[#allocation40_spill] sm:$0xff] %v4482_v18 }
  0xb5   :  { %v4450_v36 = vrot.slane %v2360_v60, %v5636_v30  ;;  %v4467_v30 = vld [vmem:[#allocation7 + $0x88] sm:$0xff]  ;;  %5643 = vst [vmem:[#allocation20_spill] sm:$0xff] %v4469_v53  ;;  %v4472_v60 = vadd.f32 %v4287_v62, %v1675_v58  ;;  %v2459_v8 = vmul.f32 %v4444_v56, %v4421_v26  ;;  %v2471_v40 = vmul.f32 %v4447_v52, %v4429_v0  ;;  %v4494_v0 = vld [vmem:[#allocation7 + $0x50] sm:$0xff] }
  0xb6   :  { %5642 = vst [vmem:[#allocation19_spill] sm:$0xff] %v4467_v30  ;;  %v2447_v9 = vmul.f32 %v4441_v57, %v4419_v54  ;;  %v4484_v24 = vld [vmem:[#allocation7 + $0xe8] sm:$0xff]  ;;  %v2427_v62 = vadd.f32 %v2423_v59, %v2411_v23  ;;  %v2412_v58 = vmul.f32 %v2410_v29, %v4455_v55  ;;  %v2424_v54 = vmul.f32 %v2422_v34, %v4457_v61  ;;  %v4506_v61 = vld [vmem:[#allocation7 + $0x90] sm:$0xff] }
  0xb7   :  { %v2483_v46 = vmul.f32 %v4450_v36, %v4431_v20  ;;  %5645 = vst [vmem:[#allocation29_spill] sm:$0xff] %v4484_v24  ;;  %v2436_v26 = vmul.f32 %v4438_v33, %v4459_v2  ;;  %5647 = vst [vmem:[#allocation41_spill] sm:$0xff] %v4492_v7  ;;  %v2495_v20 = vmul.f32 %v4453_v38, %v4433_v13  ;;  %v4508_v2 = vld [vmem:[#allocation7 + $0xb0] sm:$0xff] }
  0xb8   :  { %5648 = vst [vmem:[#allocation60_spill] sm:$0xff] %v4494_v0  ;;  %5649 = vst [vmem:[#allocation37_spill] sm:$0xff] %v4496_v37  ;;  %v2448_v5 = vmul.f32 %v4441_v57, %v4465_v48  ;;  %v2460_v59 = vmul.f32 %v4444_v56, %v4467_v30  ;;  %v2472_v23 = vmul.f32 %v4447_v52, %v4469_v53  ;;  %v4515_v48 = vld [vmem:[#allocation7 + $0x18] sm:$0xff]  ;;  %v4521_v30 = vld [vmem:[#allocation7 + $0xf0] sm:$0xff] }
  0xb9   :  { %5650 = vst [vmem:[#allocation42_spill] sm:$0xff] %v4506_v61  ;;  %5651 = vst [vmem:[#allocation61_spill] sm:$0xff] %v4508_v2  ;;  %v2439_v55 = vadd.f32 %v2435_v47, %v2427_v62  ;;  %v2428_v27 = vadd.f32 %v2424_v54, %v2412_v58  ;;  %v2484_v15 = vmul.f32 %v4450_v36, %v4482_v18  ;;  %v4528_v62 = vld [vmem:[#allocation7 + $0x58] sm:$0xff] }
  0xba   :  { %5652 = vst [vmem:[#allocation27_spill] sm:$0xff] %v4512_v12  ;;  %v2413_v13 = vmul.f32 %v2410_v29, %v4486_v44  ;;  %5653 = vst [vmem:[#allocation45_spill] sm:$0xff] %v4515_v48  ;;  %v2496_v53 = vmul.f32 %v4453_v38, %v4484_v24  ;;  %v2425_v16 = vmul.f32 %v2422_v34, %v4492_v7 }
  0xbb   :  { %v2437_v54 = vmul.f32 %v4438_v33, %v4494_v0  ;;  %v2449_v47 = vmul.f32 %v4441_v57, %v4496_v37  ;;  %v2451_v58 = vadd.f32 %v2447_v9, %v2439_v55  ;;  %v2440_v44 = vadd.f32 %v2436_v26, %v2428_v27  ;;  %v4542_v37 = vld [vmem:[#allocation7 + $0xd8] sm:$0xff] }
  0xbc   :  { %v2461_v18 = vmul.f32 %v4444_v56, %v4506_v61  ;;  %v2473_v24 = vmul.f32 %v4447_v52, %v4508_v2  ;;  %v2429_v7 = vadd.f32 %v2425_v16, %v2413_v13  ;;  %v2485_v0 = vmul.f32 %v4450_v36, %v4512_v12 }
  0xbd   :  { %v2414_v27 = vmul.f32 %v2410_v29, %v4515_v48  ;;  %v2426_v55 = vmul.f32 %v2422_v34, %v4517_v19  ;;  %v2463_v9 = vadd.f32 %v2459_v8, %v2451_v58  ;;  %v2452_v26 = vadd.f32 %v2448_v5, %v2440_v44  ;;  %v4554_v35 = vpop.eup %3500 }
  0xbe   :  { %v2497_v2 = vmul.f32 %v4453_v38, %v4521_v30  ;;  %v2438_v61 = vmul.f32 %v4438_v33, %v4528_v62  ;;  %v2441_v16 = vadd.f32 %v2437_v54, %v2429_v7  ;;  %v2450_v12 = vmul.f32 %v4441_v57, %v4534_v22  ;;  %v4560_v33 = vld [vmem:[#allocation7 + $0xf8] sm:$0xff] }
  0xbf   :  { %v2430_v13 = vadd.f32 %v2426_v55, %v2414_v27  ;;  %v2462_v39 = vmul.f32 %v4444_v56, %v4536_v49  ;;  %v2475_v29 = vadd.f32 %v2471_v40, %v2463_v9  ;;  %v2464_v34 = vadd.f32 %v2460_v59, %v2452_v26  ;;  %5654 = vst [vmem:[#allocation30_spill] sm:$0xff] %v4560_v33 }
  0xc0   :  { %v2474_v5 = vmul.f32 %v4447_v52, %v4540_v1  ;;  %v2486_v44 = vmul.f32 %v4450_v36, %v4542_v37  ;;  %v2453_v8 = vadd.f32 %v2449_v47, %v2441_v16  ;;  %v5655_v57 = vrot.slane %v4399_v50, 2 }
  0xc1   :  { %v2442_v7 = vadd.f32 %v2438_v61, %v2430_v13  ;;  %v2161_v56 = vrot.slane %v4554_v35, 1  ;;  %v2487_v58 = vadd.f32 %v2483_v46, %v2475_v29  ;;  %v2476_v27 = vadd.f32 %v2472_v23, %v2464_v34 }
  0xc2   :  { %v2200_v54 = vadd.f32 %v5655_v57, %v4424_v63  ;;  %v2185_v40 = vrot.slane %v4554_v35, 2  ;;  %v2209_v59 = vrot.slane %v4554_v35, 3  ;;  %v2465_v52 = vadd.f32 %v2461_v18, %v2453_v8 }
  0xc3   :  { %v2454_v55 = vadd.f32 %v2450_v12, %v2442_v7  ;;  %v5656_v36 = vrot.slane %v4399_v50, 3  ;;  %v2177_v9 = vadd.f32 %v4554_v35, %v2161_v56  ;;  %v2499_v61 = vadd.f32 %v2495_v20, %v2487_v58 }
  0xc4   :  { %v2488_v26 = vadd.f32 %v2484_v15, %v2476_v27  ;;  %v2498_v63 = vmul.f32 %v4453_v38, %v4560_v33  ;;  %v2233_v16 = vrot.slane %v4554_v35, 4  ;;  %v2477_v46 = vadd.f32 %v2473_v24, %v2465_v52 }
  0xc5   :  { %v2224_v47 = vadd.f32 %v5656_v36, %v2200_v54  ;;  %v2466_v23 = vadd.f32 %v2462_v39, %v2454_v55  ;;  %v5657_v13 = vrot.slane %v4399_v50, 4  ;;  %v2201_v34 = vadd.f32 %v2185_v40, %v2177_v9  ;;  %2503 = vst [vmem:[#allocation8] sm:$0xff] %v2499_v61 }
  0xc6   :  { %v2500_v12 = vadd.f32 %v2496_v53, %v2488_v26  ;;  %v2257_v18 = vrot.slane %v4554_v35, 5  ;;  %v2281_v8 = vrot.slane %v4554_v35, 6  ;;  %v5658_v20 = vrot.slane %v4337_v41, 5 }
  0xc7   :  { %v2248_v29 = vadd.f32 %v5657_v13, %v2224_v47  ;;  %v2489_v7 = vadd.f32 %v2485_v0, %v2477_v46  ;;  %v2478_v38 = vadd.f32 %v2474_v5, %v2466_v23  ;;  %v5659_v57 = vrot.slane %v4399_v50, 5  ;;  %v3421_v23 = vld [vmem:[#allocation2 + $0xb7] ss:$0 sm:$0xff]  ;;  %v3429_v13 = vld [vmem:[#allocation2 + $0xb8] ss:$0 sm:$0xff] }
  0xc8   :  { %v2042_v15 = vmax.f32 %v4427_v45, %v5658_v20  ;;  %v2225_v39 = vadd.f32 %v2209_v59, %v2201_v34  ;;  %2504 = vst [vmem:[#allocation8 + $0x8] sm:$0xff] %v2500_v12  ;;  %v5660_v54 = vrot.slane %v4337_v41, 6  ;;  %v1791_v53 = vadd.f32 %v4290_v17, %v4472_v60  ;;  %v3286_v45 = vld [vmem:[#allocation2 + $0xc6] ss:$0 sm:$0xff]  ;;  %v3413_v60 = vld [vmem:[#allocation2 + $0xb6] ss:$0 sm:$0xff] }
  0xc9   :  { %v2272_v24 = vadd.f32 %v5659_v57, %v2248_v29  ;;  %v1154_v58 = vadd.f32 %v4345_v31, %v4407_v25  ;;  %v285_v27 = vadd.f32 %v4387_v3, %v4402_v4  ;;  %v2501_v0 = vadd.f32 %v2497_v2, %v2489_v7  ;;  %v3437_v29 = vld [vmem:[#allocation2 + $0xb9] ss:$0 sm:$0xff] }
  0xca   :  { %v2066_v56 = vmax.f32 %v2042_v15, %v5660_v54  ;;  %v2490_v5 = vadd.f32 %v2486_v44, %v2478_v38  ;;  %v5661_v40 = vrot.slane %v4399_v50, 6  ;;  %v2249_v59 = vadd.f32 %v2233_v16, %v2225_v39  ;;  %v4600_v44 = vld [vmem:[#allocation5 + $0x30] sm:$0xff]  ;;  %v4615_v15 = vld [vmem:[#allocation5 + $0x38] sm:$0xff]  ;;  %v3310_v54 = vld [vmem:[#allocation2 + $0xc9] ss:$0 sm:$0xff] }
  0xcb   :  { %v5662_v55 = vrot.slane %v4337_v41, 7  ;;  %v1849_v47 = vadd.f32 %v4320_v6, %v1791_v53  ;;  %v1212_v17 = vadd.f32 %v4359_v32, %v1154_v58  ;;  %v343_v31 = vadd.f32 %v4392_v10, %v285_v27  ;;  %2505 = vst [vmem:[#allocation8 + $0x10] sm:$0xff] %v2501_v0  ;;  %5664 = vst [vmem:[#allocation62_spill] sm:$0xff] %v4600_v44  ;;  %v3294_v32 = vld [vmem:[#allocation2 + $0xc7] ss:$0 sm:$0xff]  ;;  %v4608_v16 = vld [vmem:[#allocation5 + $0xb0] sm:$0xff] }
  0xcc   :  { %v2296_v52 = vadd.f32 %v5661_v40, %v2272_v24  ;;  %v2502_v25 = vadd.f32 %v2498_v63, %v2490_v5  ;;  %v5663_v3 = vrot.slane %v4399_v50, 7  ;;  %v2273_v4 = vadd.f32 %v2257_v18, %v2249_v59  ;;  %5665 = vst [vmem:[#allocation63_spill] sm:$0xff] %v4608_v16  ;;  %v3445_v18 = vld [vmem:[#allocation2 + $0xba] ss:$0 sm:$0xff]  ;;  %5667 = vst [vmem:[#allocation65_spill] sm:$0xff] %v4615_v15  ;;  %v4627_v58 = vld [vmem:[#allocation5 + $0xc8] sm:$0xff] }
  0xcd   :  { %v2090_v36 = vmax.f32 %v2066_v56, %v5662_v55  ;;  %v451_v9 = vmul.f32 %v4600_v44, %v3286_v45  ;;  %v1907_v61 = vadd.f32 %v4328_v28, %v1849_v47  ;;  %v1270_v26 = vadd.f32 %v4365_v11, %v1212_v17  ;;  %v4620_v24 = vld [vmem:[#allocation5 + $0xb8] sm:$0xff]  ;;  %v4624_v56 = vld [vmem:[#allocation5 + $0xc0] sm:$0xff]  ;;  %5670 = vst [vmem:[#allocation68_spill] sm:$0xff] %v4627_v58  ;;  %v5724_v44 = vld [vmem:[#allocation17_spill] sm:$0xff] }
  0xce   :  { %v2320_v2 = vadd.f32 %v5663_v3, %v2296_v52  ;;  %v401_v6 = vadd.f32 %v4397_v14, %v343_v31  ;;  %2506 = vst [vmem:[#allocation8 + $0x18] sm:$0xff] %v2502_v25  ;;  %v1378_v46 = vmul.f32 %v4608_v16, %v3413_v60  ;;  %v2297_v34 = vadd.f32 %v2281_v8, %v2273_v4  ;;  %v3302_v14 = vld [vmem:[#allocation2 + $0xc8] ss:$0 sm:$0xff]  ;;  %v3453_v39 = vld [vmem:[#allocation2 + $0xbb] ss:$0 sm:$0xff]  ;;  %v5721_v16 = vld [vmem:[#allocation18_spill] sm:$0xff] }
  0xcf   :  { %v2110_v63 = vrot.slane %v2090_v36, %v5571_v51  ;;  %v2305_v28 = vrot.slane %v4554_v35, 7  ;;  %v4612_v12 = vmul.f32 0.17677669, %v1907_v61  ;;  %v1328_v11 = vadd.f32 %v4370_v42, %v1270_v26  ;;  %5668 = vst [vmem:[#allocation66_spill] sm:$0xff] %v4620_v24  ;;  %5669 = vst [vmem:[#allocation67_spill] sm:$0xff] %v4624_v56  ;;  %v4636_v17 = vld [vmem:[#allocation5 + $0xd8] sm:$0xff] }
  0xd0   :  { %v2334_v10 = vrot.slane %v2320_v2, %v5571_v51  ;;  %v459_v20 = vadd.f32 %v451_v9, %v401_v6  ;;  %v509_v7 = vmul.f32 %v4615_v15, %v3294_v32  ;;  %v1436_v8 = vmul.f32 %v4620_v24, %v3421_v23  ;;  %v3461_v45 = vld [vmem:[#allocation2 + $0xbc] ss:$0 sm:$0xff]  ;;  %v3469_v55 = vld [vmem:[#allocation2 + $0xbd] ss:$0 sm:$0xff]  ;;  %v3318_v36 = vld [vmem:[#allocation2 + $0xca] ss:$0 sm:$0xff] }
  0xd1   :  { %5666 = vst [vmem:[#allocation64_spill] sm:$0xff] %v4612_v12  ;;  %v1931_v38 = vrot.slane %v4612_v12, 1  ;;  %v1955_v57 = vrot.slane %v4612_v12, 2  ;;  %v2130_v42 = vsub.f32 %v4337_v41, %v2110_v63  ;;  %v1494_v53 = vmul.f32 %v4624_v56, %v3429_v13  ;;  %v4633_v41 = vld [vmem:[#allocation5 + $0xd0] sm:$0xff]  ;;  %5672 = vst [vmem:[#allocation70_spill] sm:$0xff] %v4636_v17  ;;  %v4641_v9 = vld [vmem:[#allocation5 + $0xe0] sm:$0xff] }
  0xd2   :  { %3502 = vrcp.f32 %v2334_v10  ;;  %v1552_v27 = vmul.f32 %v4627_v58, %v3437_v29  ;;  %v567_v0 = vmul.f32 %v4262_v21, %v3302_v14  ;;  %v2321_v5 = vadd.f32 %v2305_v28, %v2297_v34  ;;  %5671 = vst [vmem:[#allocation69_spill] sm:$0xff] %v4633_v41  ;;  %v3477_v31 = vld [vmem:[#allocation2 + $0xbe] ss:$0 sm:$0xff]  ;;  %5673 = vst [vmem:[#allocation71_spill] sm:$0xff] %v4641_v9  ;;  %v3485_v26 = vld [vmem:[#allocation2 + $0xbf] ss:$0 sm:$0xff] }
  0xd3   :  { %v1947_v40 = vmax.f32 %v4612_v12, %v1931_v38  ;;  %v1979_v52 = vrot.slane %v4612_v12, 3  ;;  %v1386_v59 = vadd.f32 %v1378_v46, %v1328_v11  ;;  %v1610_v47 = vmul.f32 %v4633_v41, %v3445_v18  ;;  %v3326_v6 = vld [vmem:[#allocation2 + $0xcb] ss:$0 sm:$0xff]  ;;  %v5676_v23 = vld [vmem:[#allocation32_spill] sm:$0xff]  ;;  %v3334_v13 = vld [vmem:[#allocation2 + $0xcc] ss:$0 sm:$0xff] }
  0xd4   :  { %v1668_v60 = vmul.f32 %v4636_v17, %v3453_v39  ;;  %v517_v25 = vadd.f32 %v509_v7, %v459_v20  ;;  %v625_v21 = vmul.f32 %v4279_v43, %v3310_v54  ;;  %v2003_v2 = vrot.slane %v4612_v12, 4  ;;  %v4646_v10 = vld [vmem:[#allocation5 + $0xe8] sm:$0xff]  ;;  %v4654_v18 = vld [vmem:[#allocation5 + $0xf0] sm:$0xff]  ;;  %v4659_v7 = vld [vmem:[#allocation5 + $0xf8] sm:$0xff] }
  0xd5   :  { %v1971_v3 = vmax.f32 %v1947_v40, %v1955_v57  ;;  %v1444_v4 = vadd.f32 %v1436_v8, %v1386_v59  ;;  %v4644_v61 = vmul.f32 %v4641_v9, %v3461_v45  ;;  %v2141_v32 = vmul.f32 1.442695, %v2130_v42  ;;  %5674 = vst [vmem:[#allocation72_spill] sm:$0xff] %v4646_v10  ;;  %v3342_v14 = vld [vmem:[#allocation2 + $0xcd] ss:$0 sm:$0xff]  ;;  %5677 = vst [vmem:[#allocation32_spill] sm:$0xff] %v4654_v18 }
  0xd6   :  { %v4649_v63 = vmul.f32 %v4646_v10, %v3469_v55  ;;  %v575_v46 = vadd.f32 %v567_v0, %v517_v25  ;;  %v683_v43 = vmul.f32 %v5676_v23, %v3318_v36  ;;  %v2338_v29 = vrot.slane %v2321_v5, %v5571_v51  ;;  %5679 = vst [vmem:[#allocation75_spill] sm:$0xff] %v4659_v7  ;;  %v5681_v8 = vld [vmem:[#allocation12_spill] sm:$0xff]  ;;  %v3350_v54 = vld [vmem:[#allocation2 + $0xce] ss:$0 sm:$0xff]  ;;  %v3358_v42 = vld [vmem:[#allocation2 + $0xcf] ss:$0 sm:$0xff] }
  0xd7   :  { %v1995_v34 = vmax.f32 %v1971_v3, %v1979_v52  ;;  %v2027_v28 = vrot.slane %v4612_v12, 5  ;;  %v1502_v11 = vadd.f32 %v1494_v53, %v1444_v4  ;;  %v4657_v20 = vmul.f32 %v4654_v18, %v3477_v31  ;;  %v3239_v45 = vld [vmem:[#allocation2 + $0xe0] ss:$0 sm:$0xff]  ;;  %v5682_v40 = vld [vmem:[#allocation46_spill] sm:$0xff]  ;;  %v3247_v55 = vld [vmem:[#allocation2 + $0xe1] ss:$0 sm:$0xff] }
  0xd8   :  { %5675 = vst [vmem:[#allocation73_spill] sm:$0xff] %v4649_v63  ;;  %v4662_v38 = vmul.f32 %v4659_v7, %v3485_v26  ;;  %v633_v57 = vadd.f32 %v625_v21, %v575_v46  ;;  %v741_v39 = vmul.f32 %v5681_v8, %v3326_v6  ;;  %v2051_v53 = vrot.slane %v4612_v12, 6  ;;  %v3366_v59 = vld [vmem:[#allocation2 + $0xd0] ss:$0 sm:$0xff]  ;;  %v5683_v25 = vld [vmem:[#allocation57_spill] sm:$0xff]  ;;  %v5691_v7 = vld [vmem:[#allocation48_spill] sm:$0xff] }
  0xd9   :  { %5678 = vst [vmem:[#allocation74_spill] sm:$0xff] %v4657_v20  ;;  %v2019_v0 = vmax.f32 %v1995_v34, %v2003_v2  ;;  %v1560_v5 = vadd.f32 %v1552_v27, %v1502_v11  ;;  %v799_v52 = vmul.f32 %v5682_v40, %v3334_v13  ;;  %3504 = vpow2.f32 %v2141_v32  ;;  %v3374_v21 = vld [vmem:[#allocation2 + $0xd1] ss:$0 sm:$0xff]  ;;  %v3255_v4 = vld [vmem:[#allocation2 + $0xe2] ss:$0 sm:$0xff]  ;;  %v5686_v13 = vld [vmem:[#allocation47_spill] sm:$0xff] }
  0xda   :  { %5680 = vst [vmem:[#allocation76_spill] sm:$0xff] %v4662_v38  ;;  %v2075_v36 = vrot.slane %v4612_v12, 7  ;;  %v691_v31 = vadd.f32 %v683_v43, %v633_v57  ;;  %v4669_v3 = vmul.f32 %v5683_v25, %v3342_v14  ;;  %3506 = vrcp.f32 %v2338_v29  ;;  %v5685_v2 = vld [vmem:[#allocation50_spill] sm:$0xff]  ;;  %v3263_v23 = vld [vmem:[#allocation2 + $0xe3] ss:$0 sm:$0xff]  ;;  %v5690_v43 = vld [vmem:[#allocation21_spill] sm:$0xff] }
  0xdb   :  { %v2043_v26 = vmax.f32 %v2019_v0, %v2027_v28  ;;  %v1618_v6 = vadd.f32 %v1610_v47, %v1560_v5  ;;  %v104_v46 = vmul.f32 %v5685_v2, %v3239_v45  ;;  %v3271_v27 = vld [vmem:[#allocation2 + $0xe4] ss:$0 sm:$0xff]  ;;  %v4673_v11 = vmul.f32 %v5686_v13, %v3350_v54  ;;  %v5688_v32 = vld [vmem:[#allocation58_spill] sm:$0xff]  ;;  %v3279_v14 = vld [vmem:[#allocation2 + $0xe5] ss:$0 sm:$0xff] }
  0xdc   :  { %5684 = vst [vmem:[#allocation12_spill] sm:$0xff] %v4669_v3  ;;  %v749_v34 = vadd.f32 %v741_v39, %v691_v31  ;;  %v4676_v8 = vmul.f32 %v5688_v32, %v3358_v42  ;;  %v162_v57 = vmul.f32 %v5690_v43, %v3247_v55  ;;  %v4680_v29 = vmul.f32 %v5691_v7, %v3366_v59  ;;  %v5693_v47 = vld [vmem:[#allocation59_spill] sm:$0xff]  ;;  %v5695_v45 = vld [vmem:[#allocation38_spill] sm:$0xff]  ;;  %v5697_v5 = vld [vmem:[#allocation53_spill] sm:$0xff] }
  0xdd   :  { %5687 = vst [vmem:[#allocation46_spill] sm:$0xff] %v4673_v11  ;;  %v2067_v25 = vmax.f32 %v2043_v26, %v2051_v53  ;;  %v4683_v28 = vmul.f32 %v5693_v47, %v3374_v21  ;;  %v4686_v0 = vmul.f32 %v5695_v45, %v3255_v4  ;;  %v1676_v54 = vadd.f32 %v1668_v60, %v1618_v6  ;;  %v5699_v31 = vld [vmem:[#allocation34_spill] sm:$0xff]  ;;  %v5707_v60 = vld [vmem:[#allocation23_spill] sm:$0xff]  ;;  %v5709_v32 = vld [vmem:[#allocation25_spill] sm:$0xff] }
  0xde   :  { %5689 = vst [vmem:[#allocation57_spill] sm:$0xff] %v4676_v8  ;;  %5692 = vst [vmem:[#allocation50_spill] sm:$0xff] %v4680_v29  ;;  %v4690_v42 = vmul.f32 %v5697_v5, %v3263_v23  ;;  %v4693_v55 = vmul.f32 %v5699_v31, %v3271_v27  ;;  %v4697_v53 = vadd.f32 %v799_v52, %v749_v34  ;;  %v5704_v59 = vld [vmem:[#allocation54_spill] sm:$0xff]  ;;  %v5708_v23 = vld [vmem:[#allocation24_spill] sm:$0xff] }
  0xdf   :  { %v3503_v40 = vpop.eup %3502  ;;  %5694 = vst [vmem:[#allocation47_spill] sm:$0xff] %v4683_v28  ;;  %5696 = vst [vmem:[#allocation58_spill] sm:$0xff] %v4686_v0  ;;  %v4695_v2 = vmax.f32 %v2067_v25, %v2075_v36  ;;  %v4699_v7 = vadd.f32 %v162_v57, %v104_v46  ;;  %v4702_v21 = vmul.f32 %v5704_v59, %v3279_v14  ;;  %v5706_v26 = vld [vmem:[#allocation22_spill] sm:$0xff]  ;;  %v5712_v34 = vld [vmem:[#allocation31_spill] sm:$0xff] }
  0xe0   :  { %v2362_v39 = vmul.f32 %v3503_v40, %v4399_v50  ;;  %5698 = vst [vmem:[#allocation21_spill] sm:$0xff] %v4690_v42  ;;  %5700 = vst [vmem:[#allocation48_spill] sm:$0xff] %v4693_v55  ;;  %v5710_v43 = vld [vmem:[#allocation26_spill] sm:$0xff]  ;;  %v5711_v40 = vld [vmem:[#allocation28_spill] sm:$0xff]  ;;  %v4716_v31 = vadd.f32 %v4644_v61, %v1676_v54 }
  0xe1   :  { %5701 = vst [vmem:[#allocation59_spill] sm:$0xff] %v4695_v2  ;;  %5702 = vst [vmem:[#allocation38_spill] sm:$0xff] %v4697_v53  ;;  %v5713_v57 = vld [vmem:[#allocation13_spill] sm:$0xff]  ;;  %v5714_v14 = vld [vmem:[#allocation14_spill] sm:$0xff] }
  0xe2   :  { %5703 = vst [vmem:[#allocation53_spill] sm:$0xff] %v4699_v7  ;;  %5705 = vst [vmem:[#allocation34_spill] sm:$0xff] %v4702_v21  ;;  %v2510_v4 = vrot.slane %v2362_v39, %v5571_v51  ;;  %v2522_v50 = vrot.slane %v2362_v39, %v5706_v26  ;;  %v2534_v6 = vrot.slane %v2362_v39, %v5707_v60  ;;  %v5715_v45 = vld [vmem:[#allocation15_spill] sm:$0xff]  ;;  %v5719_v17 = vld [vmem:[#allocation16_spill] sm:$0xff] }
  0xe3   :  { %v2546_v13 = vrot.slane %v2362_v39, %v5708_v23  ;;  %v2558_v27 = vrot.slane %v2362_v39, %v5709_v32  ;;  %v2570_v36 = vrot.slane %v2362_v39, %v5710_v43  ;;  %v2582_v52 = vrot.slane %v2362_v39, %v5711_v40  ;;  %5716 = vst [vmem:[#allocation54_spill] sm:$0xff] %v4716_v31  ;;  %v5717_v59 = vld [vmem:[#allocation39_spill] sm:$0xff]  ;;  %v5723_v21 = vld [vmem:[#allocation44_spill] sm:$0xff]  ;;  %v5730_v53 = vld [vmem:[#allocation29_spill] sm:$0xff] }
  0xe4   :  { %v2594_v46 = vrot.slane %v2362_v39, %v5712_v34  ;;  %v2511_v25 = vmul.f32 %v2510_v4, %v5713_v57  ;;  %v2523_v47 = vmul.f32 %v2522_v50, %v5714_v14  ;;  %v2535_v5 = vmul.f32 %v2534_v6, %v5715_v45  ;;  %v5718_v10 = vld [vmem:[#allocation43_spill] sm:$0xff]  ;;  %v5725_v8 = vld [vmem:[#allocation56_spill] sm:$0xff]  ;;  %v5731_v31 = vld [vmem:[#allocation41_spill] sm:$0xff] }
  0xe5   :  { %v2547_v18 = vmul.f32 %v2546_v13, %v5717_v59  ;;  %v2559_v9 = vmul.f32 %v2558_v27, %v5718_v10  ;;  %v2571_v41 = vmul.f32 %v2570_v36, %v5719_v17  ;;  %v5720_v58 = vld [vmem:[#allocation55_spill] sm:$0xff]  ;;  %v2512_v39 = vmul.f32 %v2510_v4, %v5721_v16  ;;  %v5727_v42 = vld [vmem:[#allocation20_spill] sm:$0xff] }
  0xe6   :  { %v2583_v56 = vmul.f32 %v2582_v52, %v5720_v58  ;;  %v2527_v24 = vadd.f32 %v2523_v47, %v2511_v25  ;;  %v5722_v28 = vld [vmem:[#allocation35_spill] sm:$0xff]  ;;  %v2536_v29 = vmul.f32 %v2534_v6, %v5723_v21  ;;  %v2595_v55 = vmul.f32 %v2594_v46, %v5724_v44  ;;  %v5728_v0 = vld [vmem:[#allocation40_spill] sm:$0xff]  ;;  %v4731_v47 = vpop.eup %3504 }
  0xe7   :  { %v2524_v15 = vmul.f32 %v2522_v50, %v5722_v28  ;;  %v2548_v61 = vmul.f32 %v2546_v13, %v5725_v8  ;;  %v5726_v54 = vld [vmem:[#allocation19_spill] sm:$0xff]  ;;  %v2572_v11 = vmul.f32 %v2570_v36, %v5727_v42  ;;  %v2584_v7 = vmul.f32 %v2582_v52, %v5728_v0  ;;  %v5729_v3 = vld [vmem:[#allocation36_spill] sm:$0xff]  ;;  %v5733_v28 = vld [vmem:[#allocation37_spill] sm:$0xff]  ;;  %v3507_v58 = vpop.eup %3506 }
  0xe8   :  { %v2560_v38 = vmul.f32 %v2558_v27, %v5726_v54  ;;  %v2539_v20 = vadd.f32 %v2535_v5, %v2527_v24  ;;  %v2513_v25 = vmul.f32 %v2510_v4, %v5729_v3  ;;  %v2596_v63 = vmul.f32 %v2594_v46, %v5730_v53  ;;  %v5732_v21 = vld [vmem:[#allocation60_spill] sm:$0xff]  ;;  %v5734_v42 = vld [vmem:[#allocation42_spill] sm:$0xff]  ;;  %v5736_v0 = vld [vmem:[#allocation27_spill] sm:$0xff] }
  0xe9   :  { %v2528_v12 = vadd.f32 %v2524_v15, %v2512_v39  ;;  %v2525_v2 = vmul.f32 %v2522_v50, %v5731_v31  ;;  %v2537_v44 = vmul.f32 %v2534_v6, %v5732_v21  ;;  %v2549_v8 = vmul.f32 %v2546_v13, %v5733_v28  ;;  %v5735_v15 = vld [vmem:[#allocation61_spill] sm:$0xff] }
  0xea   :  { %v2551_v54 = vadd.f32 %v2547_v18, %v2539_v20  ;;  %v2561_v24 = vmul.f32 %v2558_v27, %v5734_v42  ;;  %v2573_v5 = vmul.f32 %v2570_v36, %v5735_v15  ;;  %v2585_v3 = vmul.f32 %v2582_v52, %v5736_v0 }
  0xeb   :  { %v2540_v17 = vadd.f32 %v2536_v29, %v2528_v12  ;;  %v2529_v39 = vadd.f32 %v2525_v2, %v2513_v25  ;;  %v2514_v10 = vmul.f32 %v2510_v4, %v4515_v48  ;;  %v2526_v53 = vmul.f32 %v2522_v50, %v4517_v19 }
  0xec   :  { %v2563_v16 = vadd.f32 %v2559_v9, %v2551_v54  ;;  %v2597_v21 = vmul.f32 %v2594_v46, %v4521_v30  ;;  %v2538_v28 = vmul.f32 %v2534_v6, %v4528_v62  ;;  %v2550_v12 = vmul.f32 %v2546_v13, %v4534_v22 }
  0xed   :  { %v2552_v31 = vadd.f32 %v2548_v61, %v2540_v17  ;;  %v2541_v34 = vadd.f32 %v2537_v44, %v2529_v39  ;;  %v2530_v18 = vadd.f32 %v2526_v53, %v2514_v10  ;;  %v2562_v20 = vmul.f32 %v2558_v27, %v4536_v49 }
  0xee   :  { %v2575_v29 = vadd.f32 %v2571_v41, %v2563_v16  ;;  %v2574_v25 = vmul.f32 %v2570_v36, %v4540_v1  ;;  %v2586_v4 = vmul.f32 %v2582_v52, %v4542_v37  ;;  %v2598_v17 = vmul.f32 %v2594_v46, %v4560_v33 }
  0xef   :  { %v2564_v2 = vadd.f32 %v2560_v38, %v2552_v31  ;;  %v2553_v48 = vadd.f32 %v2549_v8, %v2541_v34  ;;  %v2542_v50 = vadd.f32 %v2538_v28, %v2530_v18  ;;  %v2364_v9 = vmul.f32 %v3507_v58, %v4554_v35 }
  0xf0   :  { %v2587_v61 = vadd.f32 %v2583_v56, %v2575_v29  ;;  %v5741_v29 = vld [vmem:[#allocation55_spill] sm:$0xff] }
  0xf1   :  { %v2576_v6 = vadd.f32 %v2572_v11, %v2564_v2  ;;  %v2565_v53 = vadd.f32 %v2561_v24, %v2553_v48  ;;  %v2554_v13 = vadd.f32 %v2550_v12, %v2542_v50  ;;  %v2611_v16 = vrot.slane %v2364_v9, %v5571_v51  ;;  %v5737_v24 = vld [vmem:[#allocation31_spill] sm:$0xff] }
  0xf2   :  { %v2623_v41 = vrot.slane %v2364_v9, %v5706_v26  ;;  %v2599_v38 = vadd.f32 %v2595_v55, %v2587_v61  ;;  %v2635_v8 = vrot.slane %v2364_v9, %v5707_v60  ;;  %v2647_v28 = vrot.slane %v2364_v9, %v5708_v23  ;;  %v5743_v61 = vld [vmem:[#allocation44_spill] sm:$0xff] }
  0xf3   :  { %v2588_v27 = vadd.f32 %v2584_v7, %v2576_v6  ;;  %v2577_v36 = vadd.f32 %v2573_v5, %v2565_v53  ;;  %v2566_v35 = vadd.f32 %v2562_v20, %v2554_v13  ;;  %v2612_v56 = vmul.f32 %v2611_v16, %v5713_v57  ;;  %v5738_v5 = vld [vmem:[#allocation18_spill] sm:$0xff]  ;;  %v5740_v20 = vld [vmem:[#allocation16_spill] sm:$0xff]  ;;  %v5744_v13 = vld [vmem:[#allocation17_spill] sm:$0xff] }
  0xf4   :  { %v2624_v58 = vmul.f32 %v2623_v41, %v5714_v14  ;;  %2604 = vst [vmem:[#allocation8 + $0x20] sm:$0xff] %v2599_v38  ;;  %v2636_v48 = vmul.f32 %v2635_v8, %v5715_v45  ;;  %v2648_v52 = vmul.f32 %v2647_v28, %v5717_v59  ;;  %v2659_v34 = vrot.slane %v2364_v9, %v5709_v32  ;;  %v5739_v59 = vld [vmem:[#allocation43_spill] sm:$0xff] }
  0xf5   :  { %v2600_v11 = vadd.f32 %v2596_v63, %v2588_v27  ;;  %v2589_v55 = vadd.f32 %v2585_v3, %v2577_v36  ;;  %v2578_v7 = vadd.f32 %v2574_v25, %v2566_v35  ;;  %v2671_v31 = vrot.slane %v2364_v9, %v5710_v43  ;;  %v5742_v25 = vld [vmem:[#allocation35_spill] sm:$0xff]  ;;  %v5745_v27 = vld [vmem:[#allocation56_spill] sm:$0xff] }
  0xf6   :  { %v2628_v46 = vadd.f32 %v2624_v58, %v2612_v56  ;;  %v2683_v54 = vrot.slane %v2364_v9, %v5711_v40  ;;  %v2695_v57 = vrot.slane %v2364_v9, %v5737_v24  ;;  %v2613_v14 = vmul.f32 %v2611_v16, %v5738_v5  ;;  %v5747_v56 = vld [vmem:[#allocation20_spill] sm:$0xff]  ;;  %v5750_v5 = vld [vmem:[#allocation41_spill] sm:$0xff] }
  0xf7   :  { %2605 = vst [vmem:[#allocation8 + $0x28] sm:$0xff] %v2600_v11  ;;  %v2210_v63 = vrot.slane %v4731_v47, 3  ;;  %v2601_v39 = vadd.f32 %v2597_v21, %v2589_v55  ;;  %v2590_v45 = vadd.f32 %v2586_v4, %v2578_v7  ;;  %v2660_v12 = vmul.f32 %v2659_v34, %v5739_v59  ;;  %v5746_v4 = vld [vmem:[#allocation19_spill] sm:$0xff]  ;;  %v5748_v11 = vld [vmem:[#allocation40_spill] sm:$0xff] }
  0xf8   :  { %v2640_v18 = vadd.f32 %v2636_v48, %v2628_v46  ;;  %v2672_v3 = vmul.f32 %v2671_v31, %v5740_v20  ;;  %v2684_v2 = vmul.f32 %v2683_v54, %v5741_v29  ;;  %v2625_v50 = vmul.f32 %v2623_v41, %v5742_v25  ;;  %v5749_v7 = vld [vmem:[#allocation36_spill] sm:$0xff]  ;;  %v5753_v20 = vld [vmem:[#allocation37_spill] sm:$0xff] }
  0xf9   :  { %v2637_v6 = vmul.f32 %v2635_v8, %v5743_v61  ;;  %2606 = vst [vmem:[#allocation8 + $0x30] sm:$0xff] %v2601_v39  ;;  %v2602_v53 = vadd.f32 %v2598_v17, %v2590_v45  ;;  %v2696_v38 = vmul.f32 %v2695_v57, %v5744_v13  ;;  %v2649_v36 = vmul.f32 %v2647_v28, %v5745_v27  ;;  %v5751_v39 = vld [vmem:[#allocation60_spill] sm:$0xff]  ;;  %v5752_v45 = vld [vmem:[#allocation29_spill] sm:$0xff] }
  0xfa   :  { %v2652_v9 = vadd.f32 %v2648_v52, %v2640_v18  ;;  %v2629_v21 = vadd.f32 %v2625_v50, %v2613_v14  ;;  %v2661_v35 = vmul.f32 %v2659_v34, %v5746_v4  ;;  %v2673_v58 = vmul.f32 %v2671_v31, %v5747_v56 }
  0xfb   :  { %v2685_v48 = vmul.f32 %v2683_v54, %v5748_v11  ;;  %2607 = vst [vmem:[#allocation8 + $0x38] sm:$0xff] %v2602_v53  ;;  %v2614_v46 = vmul.f32 %v2611_v16, %v5749_v7  ;;  %v2626_v59 = vmul.f32 %v2623_v41, %v5750_v5  ;;  %v2638_v17 = vmul.f32 %v2635_v8, %v5751_v39 }
  0xfc   :  { %v2664_v55 = vadd.f32 %v2660_v12, %v2652_v9  ;;  %v2641_v52 = vadd.f32 %v2637_v6, %v2629_v21  ;;  %v2697_v18 = vmul.f32 %v2695_v57, %v5752_v45  ;;  %v2650_v29 = vmul.f32 %v2647_v28, %v5753_v20  ;;  %v5754_v9 = vld [vmem:[#allocation45_spill] sm:$0xff] }
  0xfd   :  { %v2662_v14 = vmul.f32 %v2659_v34, %v5734_v42  ;;  %v2630_v50 = vadd.f32 %v2626_v59, %v2614_v46  ;;  %v2674_v61 = vmul.f32 %v2671_v31, %v5735_v15  ;;  %v2686_v53 = vmul.f32 %v2683_v54, %v5736_v0 }
  0xfe   :  { %v2676_v25 = vadd.f32 %v2672_v3, %v2664_v55  ;;  %v2653_v12 = vadd.f32 %v2649_v36, %v2641_v52  ;;  %v2615_v13 = vmul.f32 %v2611_v16, %v5754_v9  ;;  %v2627_v27 = vmul.f32 %v2623_v41, %v4517_v19 }
  0xff   :  { %v2639_v4 = vmul.f32 %v2635_v8, %v4528_v62  ;;  %v2642_v21 = vadd.f32 %v2638_v17, %v2630_v50  ;;  %v2698_v56 = vmul.f32 %v2695_v57, %v4521_v30  ;;  %v2651_v10 = vmul.f32 %v2647_v28, %v4534_v22 }
 0x100   :  { %v2688_v6 = vadd.f32 %v2684_v2, %v2676_v25  ;;  %v2665_v44 = vadd.f32 %v2661_v35, %v2653_v12  ;;  %v2631_v3 = vadd.f32 %v2627_v27, %v2615_v13  ;;  %v2663_v55 = vmul.f32 %v2659_v34, %v4536_v49  ;;  %v5760_v27 = vld [vmem:[#allocation38_spill] sm:$0xff] }
 0x101   :  { %v2675_v46 = vmul.f32 %v2671_v31, %v4540_v1  ;;  %v2654_v36 = vadd.f32 %v2650_v29, %v2642_v21  ;;  %v2687_v16 = vmul.f32 %v2683_v54, %v4542_v37  ;;  %v5755_v41 = vrot.slane %v4731_v47, 1  ;;  %v5757_v29 = vld [vmem:[#allocation59_spill] sm:$0xff]  ;;  %v5763_v21 = vld [vmem:[#allocation58_spill] sm:$0xff] }
 0x102   :  { %v2700_v59 = vadd.f32 %v2696_v38, %v2688_v6  ;;  %v2677_v2 = vadd.f32 %v2673_v58, %v2665_v44  ;;  %v2643_v17 = vadd.f32 %v2639_v4, %v2631_v3  ;;  %v2699_v52 = vmul.f32 %v2695_v57, %v4560_v33  ;;  %v5758_v44 = vld [vmem:[#allocation54_spill] sm:$0xff]  ;;  %v5759_v58 = vld [vmem:[#allocation73_spill] sm:$0xff]  ;;  %v5761_v4 = vld [vmem:[#allocation12_spill] sm:$0xff] }
 0x103   :  { %v2178_v8 = vadd.f32 %v4731_v47, %v5755_v41  ;;  %v2234_v28 = vrot.slane %v4731_v47, 4  ;;  %v2666_v35 = vadd.f32 %v2662_v14, %v2654_v36  ;;  %v5756_v34 = vrot.slane %v4731_v47, 2  ;;  %v5762_v6 = vld [vmem:[#allocation53_spill] sm:$0xff]  ;;  %v5764_v41 = vld [vmem:[#allocation64_spill] sm:$0xff] }
 0x104   :  { %2705 = vst [vmem:[#allocation8 + $0x40] sm:$0xff] %v2700_v59  ;;  %v2258_v31 = vrot.slane %v4731_v47, 5  ;;  %v2282_v38 = vrot.slane %v4731_v47, 6  ;;  %v2689_v37 = vadd.f32 %v2685_v48, %v2677_v2  ;;  %v2655_v54 = vadd.f32 %v2651_v10, %v2643_v17  ;;  %v5765_v48 = vld [vmem:[#allocation74_spill] sm:$0xff]  ;;  %v5767_v33 = vld [vmem:[#allocation21_spill] sm:$0xff] }
 0x105   :  { %v2202_v25 = vadd.f32 %v5756_v34, %v2178_v8  ;;  %v2114_v50 = vrot.slane %v5757_v29, %v5571_v51  ;;  %v1792_v12 = vadd.f32 %v5759_v58, %v5758_v44  ;;  %v2678_v57 = vadd.f32 %v2674_v61, %v2666_v35  ;;  %v5766_v34 = vld [vmem:[#allocation46_spill] sm:$0xff]  ;;  %v3287_v61 = vld [vmem:[#allocation2 + $0xe6] ss:$0 sm:$0xff] }
 0x106   :  { %v865_v14 = vadd.f32 %v5761_v4, %v5760_v27  ;;  %v228_v3 = vadd.f32 %v5763_v21, %v5762_v6  ;;  %v2701_v59 = vadd.f32 %v2697_v18, %v2689_v37  ;;  %v2667_v36 = vadd.f32 %v2663_v55, %v2655_v54  ;;  %v5768_v58 = vld [vmem:[#allocation76_spill] sm:$0xff]  ;;  %v3382_v18 = vld [vmem:[#allocation2 + $0xd2] ss:$0 sm:$0xff]  ;;  %v5769_v54 = vld [vmem:[#allocation57_spill] sm:$0xff] }
 0x107   :  { %v2226_v13 = vadd.f32 %v2210_v63, %v2202_v25  ;;  %v2131_v8 = vsub.f32 %v5764_v41, %v2114_v50  ;;  %v1850_v10 = vadd.f32 %v5765_v48, %v1792_v12  ;;  %v2690_v2 = vadd.f32 %v2686_v53, %v2678_v57  ;;  %v5770_v12 = vld [vmem:[#allocation48_spill] sm:$0xff]  ;;  %v5771_v4 = vld [vmem:[#allocation62_spill] sm:$0xff] }
 0x108   :  { %v923_v29 = vadd.f32 %v5766_v34, %v865_v14  ;;  %v286_v44 = vadd.f32 %v5767_v33, %v228_v3  ;;  %2706 = vst [vmem:[#allocation8 + $0x48] sm:$0xff] %v2701_v59  ;;  %v2679_v63 = vadd.f32 %v2675_v46, %v2667_v36  ;;  %v2306_v35 = vrot.slane %v4731_v47, 7  ;;  %v3390_v33 = vld [vmem:[#allocation2 + $0xd3] ss:$0 sm:$0xff]  ;;  %v3303_v14 = vld [vmem:[#allocation2 + $0xe8] ss:$0 sm:$0xff] }
 0x109   :  { %v2250_v17 = vadd.f32 %v2234_v28, %v2226_v13  ;;  %v2143_v25 = vmul.f32 1.442695, %v2131_v8  ;;  %v1908_v27 = vadd.f32 %v5768_v58, %v1850_v10  ;;  %v2702_v55 = vadd.f32 %v2698_v56, %v2690_v2  ;;  %v3295_v28 = vld [vmem:[#allocation2 + $0xe7] ss:$0 sm:$0xff]  ;;  %v5772_v21 = vld [vmem:[#allocation50_spill] sm:$0xff]  ;;  %v5773_v59 = vld [vmem:[#allocation49_spill] sm:$0xff] }
 0x10a   :  { %v981_v50 = vadd.f32 %v5769_v54, %v923_v29  ;;  %v344_v53 = vadd.f32 %v5770_v12, %v286_v44  ;;  %v2691_v57 = vadd.f32 %v2687_v16, %v2679_v63  ;;  %v452_v46 = vmul.f32 %v5771_v4, %v3287_v61  ;;  %v3398_v48 = vld [vmem:[#allocation2 + $0xd4] ss:$0 sm:$0xff]  ;;  %v5775_v10 = vld [vmem:[#allocation65_spill] sm:$0xff]  ;;  %v3558_v61 = vld [vmem:[#allocation5 + $0x40] sm:$0xff] }
 0x10b   :  { %v2274_v37 = vadd.f32 %v2258_v31, %v2250_v17  ;;  %3508 = vpow2.f32 %v2143_v25  ;;  %v4817_v13 = vmul.f32 0.17677669, %v1908_v27  ;;  %2707 = vst [vmem:[#allocation8 + $0x50] sm:$0xff] %v2702_v55  ;;  %v1147_v56 = vmul.f32 %v5773_v59, %v3382_v18  ;;  %v5774_v31 = vld [vmem:[#allocation34_spill] sm:$0xff]  ;;  %v3311_v17 = vld [vmem:[#allocation2 + $0xe9] ss:$0 sm:$0xff] }
 0x10c   :  { %v1039_v3 = vadd.f32 %v5772_v21, %v981_v50  ;;  %v402_v36 = vadd.f32 %v5774_v31, %v344_v53  ;;  %v2703_v41 = vadd.f32 %v2699_v52, %v2691_v57  ;;  %v510_v2 = vmul.f32 %v5775_v10, %v3295_v28  ;;  %v5776_v29 = vld [vmem:[#allocation33_spill] sm:$0xff]  ;;  %v5777_v58 = vld [vmem:[#allocation47_spill] sm:$0xff]  ;;  %v3406_v27 = vld [vmem:[#allocation2 + $0xd5] ss:$0 sm:$0xff] }
 0x10d   :  { %v2298_v6 = vadd.f32 %v2282_v38, %v2274_v37  ;;  %v1932_v8 = vrot.slane %v4817_v13, 1  ;;  %v1956_v16 = vrot.slane %v4817_v13, 2  ;;  %v1205_v44 = vmul.f32 %v5776_v29, %v3390_v33  ;;  %v3319_v55 = vld [vmem:[#allocation2 + $0xea] ss:$0 sm:$0xff]  ;;  %v5778_v54 = vld [vmem:[#allocation51_spill] sm:$0xff]  ;;  %v5779_v4 = vld [vmem:[#allocation52_spill] sm:$0xff] }
 0x10e   :  { %v568_v38 = vmul.f32 %v3558_v61, %v3303_v14  ;;  %2708 = vst [vmem:[#allocation8 + $0x58] sm:$0xff] %v2703_v41  ;;  %v1980_v25 = vrot.slane %v4817_v13, 3  ;;  %v1097_v52 = vadd.f32 %v5777_v58, %v1039_v3  ;;  %v460_v18 = vadd.f32 %v452_v46, %v402_v36  ;;  %v3559_v12 = vld [vmem:[#allocation5 + $0x48] sm:$0xff]  ;;  %v3414_v31 = vld [vmem:[#allocation2 + $0xd6] ss:$0 sm:$0xff] }
 0x10f   :  { %v2322_v34 = vadd.f32 %v2306_v35, %v2298_v6  ;;  %v1948_v63 = vmax.f32 %v4817_v13, %v1932_v8  ;;  %v1263_v50 = vmul.f32 %v5778_v54, %v3398_v48  ;;  %v626_v35 = vmul.f32 %v3559_v12, %v3311_v17  ;;  %v3560_v6 = vld [vmem:[#allocation5 + $0x50] sm:$0xff]  ;;  %v3327_v41 = vld [vmem:[#allocation2 + $0xeb] ss:$0 sm:$0xff]  ;;  %v3335_v29 = vld [vmem:[#allocation2 + $0xec] ss:$0 sm:$0xff] }
 0x110   :  { %v2004_v28 = vrot.slane %v4817_v13, 4  ;;  %v1155_v57 = vadd.f32 %v1147_v56, %v1097_v52  ;;  %v518_v33 = vadd.f32 %v510_v2, %v460_v18  ;;  %v1321_v14 = vmul.f32 %v5779_v4, %v3406_v27  ;;  %v3422_v10 = vld [vmem:[#allocation2 + $0xd7] ss:$0 sm:$0xff]  ;;  %v5780_v56 = vld [vmem:[#allocation63_spill] sm:$0xff] }
 0x111   :  { %v2342_v37 = vrot.slane %v2322_v34, %v5571_v51  ;;  %v1972_v53 = vmax.f32 %v1948_v63, %v1956_v16  ;;  %v684_v21 = vmul.f32 %v3560_v6, %v3319_v55  ;;  %v2028_v46 = vrot.slane %v4817_v13, 5  ;;  %v3430_v34 = vld [vmem:[#allocation2 + $0xd8] ss:$0 sm:$0xff]  ;;  %v3438_v58 = vld [vmem:[#allocation2 + $0xd9] ss:$0 sm:$0xff] }
 0x112   :  { %v1213_v59 = vadd.f32 %v1205_v44, %v1155_v57  ;;  %v576_v36 = vadd.f32 %v568_v38, %v518_v33  ;;  %v2052_v17 = vrot.slane %v4817_v13, 6  ;;  %v1379_v2 = vmul.f32 %v5780_v56, %v3414_v31  ;;  %v3454_v52 = vld [vmem:[#allocation2 + $0xdb] ss:$0 sm:$0xff]  ;;  %v3470_v57 = vld [vmem:[#allocation2 + $0xdd] ss:$0 sm:$0xff]  ;;  %v3562_v33 = vld [vmem:[#allocation5 + $0x60] sm:$0xff] }
 0x113   :  { %3510 = vrcp.f32 %v2342_v37  ;;  %v1996_v3 = vmax.f32 %v1972_v53, %v1980_v25  ;;  %v3446_v25 = vld [vmem:[#allocation2 + $0xda] ss:$0 sm:$0xff]  ;;  %v2076_v55 = vrot.slane %v4817_v13, 7  ;;  %v5781_v37 = vld [vmem:[#allocation66_spill] sm:$0xff]  ;;  %v800_v4 = vmul.f32 %v3562_v33, %v3335_v29 }
 0x114   :  { %v1271_v48 = vadd.f32 %v1263_v50, %v1213_v59  ;;  %v634_v16 = vadd.f32 %v626_v35, %v576_v36  ;;  %v3561_v44 = vld [vmem:[#allocation5 + $0x58] sm:$0xff]  ;;  %v1437_v54 = vmul.f32 %v5781_v37, %v3422_v10  ;;  %v5785_v31 = vld [vmem:[#allocation70_spill] sm:$0xff] }
 0x115   :  { %v2020_v8 = vmax.f32 %v1996_v3, %v2004_v28  ;;  %v742_v18 = vmul.f32 %v3561_v44, %v3327_v41  ;;  %v3462_v50 = vld [vmem:[#allocation2 + $0xdc] ss:$0 sm:$0xff]  ;;  %v4849_v36 = vmul.f32 %v5785_v31, %v3454_v52  ;;  %v3478_v41 = vld [vmem:[#allocation2 + $0xde] ss:$0 sm:$0xff]  ;;  %v3359_v44 = vld [vmem:[#allocation2 + $0xef] ss:$0 sm:$0xff] }
 0x116   :  { %v1329_v63 = vadd.f32 %v1321_v14, %v1271_v48  ;;  %v692_v27 = vadd.f32 %v684_v21, %v634_v16  ;;  %v5782_v53 = vld [vmem:[#allocation67_spill] sm:$0xff]  ;;  %v3343_v14 = vld [vmem:[#allocation2 + $0xed] ss:$0 sm:$0xff]  ;;  %v5783_v21 = vld [vmem:[#allocation68_spill] sm:$0xff] }
 0x117   :  { %v2044_v61 = vmax.f32 %v2020_v8, %v2028_v46  ;;  %v1495_v28 = vmul.f32 %v5782_v53, %v3430_v34  ;;  %v1553_v3 = vmul.f32 %v5783_v21, %v3438_v58  ;;  %v5784_v46 = vld [vmem:[#allocation69_spill] sm:$0xff]  ;;  %v5786_v33 = vld [vmem:[#allocation71_spill] sm:$0xff]  ;;  %v3367_v52 = vld [vmem:[#allocation2 + $0xf0] ss:$0 sm:$0xff] }
 0x118   :  { %v4837_v38 = vpop.eup %3508  ;;  %v4846_v59 = vmul.f32 %v5784_v46, %v3446_v25  ;;  %v1387_v10 = vadd.f32 %v1379_v2, %v1329_v63  ;;  %v750_v16 = vadd.f32 %v742_v18, %v692_v27  ;;  %v3351_v34 = vld [vmem:[#allocation2 + $0xee] ss:$0 sm:$0xff]  ;;  %v3375_v31 = vld [vmem:[#allocation2 + $0xf1] ss:$0 sm:$0xff]  ;;  %v3383_v21 = vld [vmem:[#allocation2 + $0xf2] ss:$0 sm:$0xff] }
 0x119   :  { %v2163_v12 = vrot.slane %v4837_v38, 1  ;;  %v2187_v35 = vrot.slane %v4837_v38, 2  ;;  %v2068_v6 = vmax.f32 %v2044_v61, %v2052_v17  ;;  %v2211_v48 = vrot.slane %v4837_v38, 3  ;;  %v5787_v61 = vld [vmem:[#allocation72_spill] sm:$0xff]  ;;  %v3563_v25 = vld [vmem:[#allocation5 + $0x68] sm:$0xff] }
 0x11a   :  { %v4854_v17 = vmul.f32 %v5786_v33, %v3462_v50  ;;  %v4857_v58 = vmul.f32 %v5787_v61, %v3470_v57  ;;  %v858_v46 = vmul.f32 %v3563_v25, %v3343_v14  ;;  %v1445_v37 = vadd.f32 %v1437_v54, %v1387_v10  ;;  %v5788_v27 = vld [vmem:[#allocation32_spill] sm:$0xff]  ;;  %v3568_v54 = vld [vmem:[#allocation5 + $0x90] sm:$0xff] }
 0x11b   :  { %v2179_v8 = vadd.f32 %v4837_v38, %v2163_v12  ;;  %v2092_v29 = vmax.f32 %v2068_v6, %v2076_v55  ;;  %v2235_v12 = vrot.slane %v4837_v38, 4  ;;  %v808_v2 = vadd.f32 %v800_v4, %v750_v16  ;;  %v3564_v55 = vld [vmem:[#allocation5 + $0x70] sm:$0xff]  ;;  %v3565_v6 = vld [vmem:[#allocation5 + $0x78] sm:$0xff]  ;;  %v3566_v25 = vld [vmem:[#allocation5 + $0x80] sm:$0xff] }
 0x11c   :  { %v4862_v18 = vmul.f32 %v5788_v27, %v3478_v41  ;;  %v916_v50 = vmul.f32 %v3564_v55, %v3351_v34  ;;  %v4864_v57 = vmul.f32 %v3565_v6, %v3359_v44  ;;  %v4866_v33 = vmul.f32 %v3566_v25, %v3367_v52  ;;  %v4899_v55 = vld [vmem:[#allocation7 + $0x40] sm:$0xff] }
 0x11d   :  { %v2203_v53 = vadd.f32 %v2187_v35, %v2179_v8  ;;  %v2118_v63 = vrot.slane %v2092_v29, %v5571_v51  ;;  %v3567_v35 = vld [vmem:[#allocation5 + $0x88] sm:$0xff]  ;;  %v4870_v4 = vmul.f32 %v3568_v54, %v3383_v21  ;;  %v1503_v34 = vadd.f32 %v1495_v28, %v1445_v37  ;;  %5791 = vst [vmem:[#allocation15_spill] sm:$0xff] %v4899_v55 }
 0x11e   :  { %v4868_v8 = vmul.f32 %v3567_v35, %v3375_v31  ;;  %v866_v29 = vadd.f32 %v858_v46, %v808_v2  ;;  %v4896_v2 = vld [vmem:[#allocation7 + $0x20] sm:$0xff] }
 0x11f   :  { %v2227_v14 = vadd.f32 %v2211_v48, %v2203_v53  ;;  %v4879_v48 = vsub.f32 %v4817_v13, %v2118_v63  ;;  %v4893_v13 = vld [vmem:[#allocation7] sm:$0xff]  ;;  %5790 = vst [vmem:[#allocation14_spill] sm:$0xff] %v4896_v2 }
 0x120   :  { %v3511_v61 = vpop.eup %3510  ;;  %5789 = vst [vmem:[#allocation13_spill] sm:$0xff] %v4893_v13  ;;  %v4905_v35 = vld [vmem:[#allocation7 + $0x80] sm:$0xff]  ;;  %v924_v16 = vadd.f32 %v916_v50, %v866_v29  ;;  %v4928_v29 = vld [vmem:[#allocation7 + $0x68] sm:$0xff] }
 0x121   :  { %v2366_v10 = vmul.f32 %v3511_v61, %v4731_v47  ;;  %v4875_v44 = vadd.f32 %v2235_v12, %v2227_v14  ;;  %v1561_v61 = vadd.f32 %v1553_v3, %v1503_v34  ;;  %v4902_v14 = vld [vmem:[#allocation7 + $0x60] sm:$0xff]  ;;  %5793 = vst [vmem:[#allocation42_spill] sm:$0xff] %v4905_v35  ;;  %v4917_v34 = vld [vmem:[#allocation7 + $0x48] sm:$0xff]  ;;  %5800 = vst [vmem:[#allocation35_spill] sm:$0xff] %v4928_v29 }
 0x122   :  { %5792 = vst [vmem:[#allocation39_spill] sm:$0xff] %v4902_v14  ;;  %5797 = vst [vmem:[#allocation43_spill] sm:$0xff] %v4917_v34 }
 0x123   :  { %v2712_v31 = vrot.slane %v2366_v10, %v5571_v51  ;;  %v2724_v21 = vrot.slane %v2366_v10, %v5706_v26  ;;  %v2736_v52 = vrot.slane %v2366_v10, %v5707_v60  ;;  %v2748_v47 = vrot.slane %v2366_v10, %v5708_v23 }
 0x124   :  { %v2760_v27 = vrot.slane %v2366_v10, %v5709_v32  ;;  %v2772_v37 = vrot.slane %v2366_v10, %v5710_v43  ;;  %v4888_v28 = vrot.slane %v2366_v10, %v5711_v40  ;;  %v4891_v12 = vrot.slane %v2366_v10, %v5737_v24  ;;  %v4908_v10 = vld [vmem:[#allocation7 + $0xa0] sm:$0xff]  ;;  %v4934_v40 = vld [vmem:[#allocation7 + $0xa8] sm:$0xff] }
 0x125   :  { %v2713_v46 = vmul.f32 %v4893_v13, %v2712_v31  ;;  %v2725_v63 = vmul.f32 %v4896_v2, %v2724_v21  ;;  %v2737_v6 = vmul.f32 %v4899_v55, %v2736_v52  ;;  %v2749_v25 = vmul.f32 %v4902_v14, %v2748_v47  ;;  %5794 = vst [vmem:[#allocation61_spill] sm:$0xff] %v4908_v10  ;;  %v4911_v2 = vld [vmem:[#allocation7 + $0x8] sm:$0xff]  ;;  %v4920_v24 = vld [vmem:[#allocation7 + $0xc0] sm:$0xff] }
 0x126   :  { %v2761_v54 = vmul.f32 %v4905_v35, %v2760_v27  ;;  %v2773_v53 = vmul.f32 %v4908_v10, %v2772_v37  ;;  %5795 = vst [vmem:[#allocation27_spill] sm:$0xff] %v4911_v2  ;;  %v2714_v13 = vmul.f32 %v4911_v2, %v2712_v31  ;;  %v4914_v55 = vld [vmem:[#allocation7 + $0x28] sm:$0xff]  ;;  %v2738_v14 = vmul.f32 %v4917_v34, %v2736_v52  ;;  %v4924_v10 = vld [vmem:[#allocation7 + $0xe0] sm:$0xff] }
 0x127   :  { %v2729_v41 = vadd.f32 %v2725_v63, %v2713_v46  ;;  %5796 = vst [vmem:[#allocation18_spill] sm:$0xff] %v4914_v55  ;;  %v2726_v3 = vmul.f32 %v4914_v55, %v2724_v21  ;;  %5798 = vst [vmem:[#allocation16_spill] sm:$0xff] %v4920_v24  ;;  %v2785_v35 = vmul.f32 %v4920_v24, %v4888_v28  ;;  %v4931_v63 = vld [vmem:[#allocation7 + $0x88] sm:$0xff] }
 0x128   :  { %5799 = vst [vmem:[#allocation55_spill] sm:$0xff] %v4924_v10  ;;  %v2797_v50 = vmul.f32 %v4924_v10, %v4891_v12  ;;  %v2750_v46 = vmul.f32 %v4928_v29, %v2748_v47  ;;  %5801 = vst [vmem:[#allocation44_spill] sm:$0xff] %v4931_v63  ;;  %v2762_v55 = vmul.f32 %v4931_v63, %v2760_v27 }
 0x129   :  { %v2741_v2 = vadd.f32 %v2737_v6, %v2729_v41  ;;  %v2730_v34 = vadd.f32 %v2726_v3, %v2714_v13  ;;  %5802 = vst [vmem:[#allocation17_spill] sm:$0xff] %v4934_v40  ;;  %v2774_v43 = vmul.f32 %v4934_v40, %v2772_v37  ;;  %v2715_v24 = vmul.f32 %v2712_v31, %v5749_v7 }
 0x12a   :  { %v2786_v32 = vmul.f32 %v4888_v28, %v5748_v11  ;;  %v2798_v10 = vmul.f32 %v4891_v12, %v5752_v45  ;;  %v2727_v29 = vmul.f32 %v2724_v21, %v5750_v5  ;;  %v2739_v23 = vmul.f32 %v2736_v52, %v5751_v39 }
 0x12b   :  { %v2753_v60 = vadd.f32 %v2749_v25, %v2741_v2  ;;  %v2742_v63 = vadd.f32 %v2738_v14, %v2730_v34  ;;  %v2751_v41 = vmul.f32 %v2748_v47, %v5753_v20  ;;  %v2763_v13 = vmul.f32 %v2760_v27, %v5734_v42  ;;  %v3399_v14 = vld [vmem:[#allocation2 + $0xf4] ss:$0 sm:$0xff] }
 0x12c   :  { %v2731_v6 = vadd.f32 %v2727_v29, %v2715_v24  ;;  %v2775_v3 = vmul.f32 %v2772_v37, %v5735_v15  ;;  %v2716_v7 = vmul.f32 %v2712_v31, %v5754_v9  ;;  %v2728_v11 = vmul.f32 %v2724_v21, %v4517_v19 }
 0x12d   :  { %v2765_v40 = vadd.f32 %v2761_v54, %v2753_v60  ;;  %v2754_v26 = vadd.f32 %v2750_v46, %v2742_v63  ;;  %v2787_v5 = vmul.f32 %v4888_v28, %v5736_v0  ;;  %v2740_v39 = vmul.f32 %v2736_v52, %v4528_v62  ;;  %v5807_v63 = vld [vmem:[#allocation75_spill] sm:$0xff] }
 0x12e   :  { %v2743_v45 = vadd.f32 %v2739_v23, %v2731_v6  ;;  %v2799_v20 = vmul.f32 %v4891_v12, %v4521_v30  ;;  %v2732_v2 = vadd.f32 %v2728_v11, %v2716_v7  ;;  %v2752_v42 = vmul.f32 %v2748_v47, %v4534_v22 }
 0x12f   :  { %v2777_v24 = vadd.f32 %v2773_v53, %v2765_v40  ;;  %v2766_v15 = vadd.f32 %v2762_v55, %v2754_v26  ;;  %v2764_v9 = vmul.f32 %v2760_v27, %v4536_v49  ;;  %v2776_v19 = vmul.f32 %v2772_v37, %v4540_v1  ;;  %v3391_v1 = vld [vmem:[#allocation2 + $0xf3] ss:$0 sm:$0xff] }
 0x130   :  { %v2755_v60 = vadd.f32 %v2751_v41, %v2743_v45  ;;  %v2744_v31 = vadd.f32 %v2740_v39, %v2732_v2  ;;  %v5803_v0 = vrot.slane %v4837_v38, 5  ;;  %v2145_v62 = vmul.f32 1.442695, %v4879_v48  ;;  %v3586_v45 = vld [vmem:[#allocation5 + $0xa8] sm:$0xff] }
 0x131   :  { %v2789_v23 = vadd.f32 %v2785_v35, %v2777_v24  ;;  %v2778_v52 = vadd.f32 %v2774_v43, %v2766_v15  ;;  %v1619_v30 = vadd.f32 %v4846_v59, %v1561_v61  ;;  %v982_v22 = vadd.f32 %v4864_v57, %v924_v16  ;;  %v4967_v43 = vld [vmem:[#allocation7 + $0xd8] sm:$0xff] }
 0x132   :  { %v2275_v21 = vadd.f32 %v5803_v0, %v4875_v44  ;;  %v2767_v40 = vadd.f32 %v2763_v13, %v2755_v60  ;;  %v2756_v26 = vadd.f32 %v2752_v42, %v2744_v31  ;;  %v5804_v49 = vrot.slane %v4837_v38, 6  ;;  %v3486_v61 = vld [vmem:[#allocation2 + $0xdf] ss:$0 sm:$0xff]  ;;  %v3585_v13 = vld [vmem:[#allocation5 + $0xa0] sm:$0xff]  ;;  %v3439_v31 = vld [vmem:[#allocation2 + $0xf9] ss:$0 sm:$0xff] }
 0x133   :  { %3512 = vpow2.f32 %v2145_v62  ;;  %v2801_v47 = vadd.f32 %v2797_v50, %v2789_v23  ;;  %v2790_v27 = vadd.f32 %v2786_v32, %v2778_v52  ;;  %v1677_v37 = vadd.f32 %v4849_v36, %v1619_v30  ;;  %v3584_v35 = vld [vmem:[#allocation5 + $0x98] sm:$0xff]  ;;  %v5806_v50 = vld [vmem:[#allocation30_spill] sm:$0xff] }
 0x134   :  { %v2299_v53 = vadd.f32 %v5804_v49, %v2275_v21  ;;  %v1040_v44 = vadd.f32 %v4866_v33, %v982_v22  ;;  %v2779_v48 = vadd.f32 %v2775_v3, %v2767_v40  ;;  %v2768_v55 = vadd.f32 %v2764_v9, %v2756_v26  ;;  %v3407_v3 = vld [vmem:[#allocation2 + $0xf5] ss:$0 sm:$0xff]  ;;  %v3423_v9 = vld [vmem:[#allocation2 + $0xf7] ss:$0 sm:$0xff]  ;;  %v3447_v21 = vld [vmem:[#allocation2 + $0xfa] ss:$0 sm:$0xff] }
 0x135   :  { %v2788_v59 = vmul.f32 %v4967_v43, %v4888_v28  ;;  %v5805_v57 = vrot.slane %v4837_v38, 7  ;;  %2806 = vst [vmem:[#allocation8 + $0x60] sm:$0xff] %v2801_v47  ;;  %v2802_v25 = vadd.f32 %v2798_v10, %v2790_v27  ;;  %v1735_v32 = vadd.f32 %v4854_v17, %v1677_v37  ;;  %v3455_v62 = vld [vmem:[#allocation2 + $0xfb] ss:$0 sm:$0xff]  ;;  %v3463_v23 = vld [vmem:[#allocation2 + $0xfc] ss:$0 sm:$0xff] }
 0x136   :  { %v1098_v36 = vadd.f32 %v4868_v8, %v1040_v44  ;;  %v1206_v33 = vmul.f32 %v3584_v35, %v3391_v1  ;;  %v2791_v54 = vadd.f32 %v2787_v5, %v2779_v48  ;;  %v2780_v34 = vadd.f32 %v2776_v19, %v2768_v55  ;;  %v3431_v19 = vld [vmem:[#allocation2 + $0xf8] ss:$0 sm:$0xff]  ;;  %v5808_v30 = vld [vmem:[#allocation66_spill] sm:$0xff]  ;;  %v5810_v47 = vld [vmem:[#allocation68_spill] sm:$0xff] }
 0x137   :  { %v2323_v16 = vadd.f32 %v5805_v57, %v2299_v53  ;;  %v2800_v29 = vmul.f32 %v4891_v12, %v5806_v50  ;;  %2807 = vst [vmem:[#allocation8 + $0x68] sm:$0xff] %v2802_v25  ;;  %v1793_v46 = vadd.f32 %v4857_v58, %v1735_v32  ;;  %v1901_v41 = vmul.f32 %v5807_v63, %v3486_v61  ;;  %v3415_v58 = vld [vmem:[#allocation2 + $0xf6] ss:$0 sm:$0xff]  ;;  %v5809_v40 = vld [vmem:[#allocation67_spill] sm:$0xff]  ;;  %v5811_v37 = vld [vmem:[#allocation69_spill] sm:$0xff] }
 0x138   :  { %v1156_v10 = vadd.f32 %v4870_v4, %v1098_v36  ;;  %v1264_v17 = vmul.f32 %v3585_v13, %v3399_v14  ;;  %v2803_v6 = vadd.f32 %v2799_v20, %v2791_v54  ;;  %v2792_v8 = vadd.f32 %v2788_v59, %v2780_v34  ;;  %v5812_v48 = vld [vmem:[#allocation70_spill] sm:$0xff]  ;;  %v5813_v59 = vld [vmem:[#allocation71_spill] sm:$0xff]  ;;  %v5063_v25 = vld [vmem:[#allocation7 + $0xe8] sm:$0xff] }
 0x139   :  { %v2346_v28 = vrot.slane %v2323_v16, %v5571_v51  ;;  %v1851_v7 = vadd.f32 %v4862_v18, %v1793_v46  ;;  %v1322_v2 = vmul.f32 %v3586_v45, %v3407_v3  ;;  %v1380_v18 = vmul.f32 %v5780_v56, %v3415_v58  ;;  %v5814_v63 = vld [vmem:[#allocation22_spill] sm:$0xff]  ;;  %v5821_v45 = vld [vmem:[#allocation13_spill] sm:$0xff]  ;;  %5839 = vst [vmem:[#allocation36_spill] sm:$0xff] %v5063_v25 }
 0x13a   :  { %v1214_v11 = vadd.f32 %v1206_v33, %v1156_v10  ;;  %2808 = vst [vmem:[#allocation8 + $0x70] sm:$0xff] %v2803_v6  ;;  %v2804_v12 = vadd.f32 %v2800_v29, %v2792_v8  ;;  %v1438_v22 = vmul.f32 %v5808_v30, %v3423_v9  ;;  %v1496_v26 = vmul.f32 %v5809_v40, %v3431_v19  ;;  %v5815_v10 = vld [vmem:[#allocation23_spill] sm:$0xff]  ;;  %v5818_v3 = vld [vmem:[#allocation26_spill] sm:$0xff] }
 0x13b   :  { %3514 = vrcp.f32 %v2346_v28  ;;  %v1909_v5 = vadd.f32 %v1901_v41, %v1851_v7  ;;  %v4997_v27 = vmul.f32 %v5810_v47, %v3439_v31  ;;  %v5000_v44 = vmul.f32 %v5811_v37, %v3447_v21  ;;  %v5822_v58 = vld [vmem:[#allocation14_spill] sm:$0xff]  ;;  %v5824_v9 = vld [vmem:[#allocation39_spill] sm:$0xff]  ;;  %v5830_v47 = vld [vmem:[#allocation16_spill] sm:$0xff] }
 0x13c   :  { %v1272_v39 = vadd.f32 %v1264_v17, %v1214_v11  ;;  %2809 = vst [vmem:[#allocation8 + $0x78] sm:$0xff] %v2804_v12  ;;  %v5003_v55 = vmul.f32 %v5812_v48, %v3455_v62  ;;  %v5006_v57 = vmul.f32 %v5813_v59, %v3463_v23  ;;  %v5816_v17 = vld [vmem:[#allocation24_spill] sm:$0xff]  ;;  %v5825_v62 = vld [vmem:[#allocation27_spill] sm:$0xff]  ;;  %v5056_v35 = vld [vmem:[#allocation7 + $0x50] sm:$0xff] }
 0x13d   :  { %v4982_v42 = vmul.f32 0.17677669, %v1909_v5  ;;  %v5819_v11 = vld [vmem:[#allocation28_spill] sm:$0xff]  ;;  %v5820_v5 = vld [vmem:[#allocation31_spill] sm:$0xff]  ;;  %5837 = vst [vmem:[#allocation20_spill] sm:$0xff] %v5056_v35 }
 0x13e   :  { %v1330_v15 = vadd.f32 %v1322_v2, %v1272_v39  ;;  %v5831_v48 = vld [vmem:[#allocation55_spill] sm:$0xff] }
 0x13f   :  { %v1933_v20 = vrot.slane %v4982_v42, 1  ;;  %v1957_v24 = vrot.slane %v4982_v42, 2  ;;  %v1981_v52 = vrot.slane %v4982_v42, 3  ;;  %v2005_v32 = vrot.slane %v4982_v42, 4 }
 0x140   :  { %v4984_v4 = vpop.eup %3512  ;;  %v1388_v1 = vadd.f32 %v1380_v18, %v1330_v15  ;;  %v5053_v18 = vld [vmem:[#allocation7 + $0x30] sm:$0xff] }
 0x141   :  { %v2164_v60 = vrot.slane %v4984_v4, 1  ;;  %v1949_v0 = vmax.f32 %v4982_v42, %v1933_v20  ;;  %v2188_v56 = vrot.slane %v4984_v4, 2  ;;  %v2212_v61 = vrot.slane %v4984_v4, 3  ;;  %5836 = vst [vmem:[#allocation19_spill] sm:$0xff] %v5053_v18 }
 0x142   :  { %v1446_v28 = vadd.f32 %v1438_v22, %v1388_v1  ;;  %v5827_v22 = vld [vmem:[#allocation43_spill] sm:$0xff] }
 0x143   :  { %v2180_v49 = vadd.f32 %v4984_v4, %v2164_v60  ;;  %v1973_v53 = vmax.f32 %v1949_v0, %v1957_v24  ;;  %v5823_v24 = vld [vmem:[#allocation15_spill] sm:$0xff] }
 0x144   :  { %v1504_v0 = vadd.f32 %v1496_v26, %v1446_v28 }
 0x145   :  { %v2204_v34 = vadd.f32 %v2188_v56, %v2180_v49  ;;  %v1997_v50 = vmax.f32 %v1973_v53, %v1981_v52  ;;  %v5826_v52 = vld [vmem:[#allocation18_spill] sm:$0xff]  ;;  %v5829_v53 = vld [vmem:[#allocation61_spill] sm:$0xff] }
 0x146   :  { %v5828_v49 = vld [vmem:[#allocation42_spill] sm:$0xff] }
 0x147   :  { %v2228_v60 = vadd.f32 %v2212_v61, %v2204_v34  ;;  %v2021_v31 = vmax.f32 %v1997_v50, %v2005_v32  ;;  %v5832_v61 = vld [vmem:[#allocation35_spill] sm:$0xff]  ;;  %v5834_v50 = vld [vmem:[#allocation44_spill] sm:$0xff] }
 0x148   :  { %v3515_v16 = vpop.eup %3514 }
 0x149   :  { %v2368_v36 = vmul.f32 %v3515_v16, %v4837_v38  ;;  %v5817_v38 = vld [vmem:[#allocation25_spill] sm:$0xff] }
 0x14b   :  { %v2813_v46 = vrot.slane %v2368_v36, %v5571_v51  ;;  %v2825_v41 = vrot.slane %v2368_v36, %v5814_v63  ;;  %v2837_v13 = vrot.slane %v2368_v36, %v5815_v10  ;;  %v2849_v6 = vrot.slane %v2368_v36, %v5816_v17 }
 0x14c   :  { %v2861_v8 = vrot.slane %v2368_v36, %v5817_v38  ;;  %v5023_v7 = vrot.slane %v2368_v36, %v5818_v3  ;;  %v5026_v12 = vrot.slane %v2368_v36, %v5819_v11  ;;  %v5029_v39 = vrot.slane %v2368_v36, %v5820_v5  ;;  %v5047_v36 = vld [vmem:[#allocation7 + $0x10] sm:$0xff] }
 0x14d   :  { %v2814_v2 = vmul.f32 %v5821_v45, %v2813_v46  ;;  %v2826_v20 = vmul.f32 %v5822_v58, %v2825_v41  ;;  %v2838_v15 = vmul.f32 %v5823_v24, %v2837_v13  ;;  %v2850_v19 = vmul.f32 %v5824_v9, %v2849_v6  ;;  %5833 = vst [vmem:[#allocation56_spill] sm:$0xff] %v5047_v36 }
 0x14e   :  { %v2815_v23 = vmul.f32 %v5825_v62, %v2813_v46  ;;  %v2827_v30 = vmul.f32 %v5826_v52, %v2825_v41  ;;  %v2839_v40 = vmul.f32 %v5827_v22, %v2837_v13  ;;  %v2862_v56 = vmul.f32 %v5828_v49, %v2861_v8 }
 0x14f   :  { %v2830_v21 = vadd.f32 %v2826_v20, %v2814_v2  ;;  %v2874_v1 = vmul.f32 %v5829_v53, %v5023_v7  ;;  %v2886_v37 = vmul.f32 %v5830_v47, %v5026_v12  ;;  %v2898_v59 = vmul.f32 %v5831_v48, %v5029_v39  ;;  %v5835_v2 = vld [vmem:[#allocation17_spill] sm:$0xff] }
 0x150   :  { %v2831_v26 = vadd.f32 %v2827_v30, %v2815_v23  ;;  %v2851_v32 = vmul.f32 %v5832_v61, %v2849_v6  ;;  %v2816_v34 = vmul.f32 %v5047_v36, %v2813_v46  ;;  %v2863_v28 = vmul.f32 %v5834_v50, %v2861_v8  ;;  %v5059_v30 = vld [vmem:[#allocation7 + $0xc8] sm:$0xff]  ;;  %v5070_v50 = vld [vmem:[#allocation7 + $0x18] sm:$0xff] }
 0x151   :  { %v2842_v16 = vadd.f32 %v2838_v15, %v2830_v21  ;;  %v2875_v20 = vmul.f32 %v5835_v2, %v5023_v7  ;;  %v2828_v33 = vmul.f32 %v5053_v18, %v2825_v41  ;;  %v2840_v15 = vmul.f32 %v5056_v35, %v2837_v13  ;;  %5838 = vst [vmem:[#allocation40_spill] sm:$0xff] %v5059_v30  ;;  %v5067_v2 = vld [vmem:[#allocation7 + $0x70] sm:$0xff]  ;;  %v5086_v61 = vld [vmem:[#allocation7 + $0x78] sm:$0xff] }
 0x152   :  { %v2843_v23 = vadd.f32 %v2839_v40, %v2831_v26  ;;  %v2887_v29 = vmul.f32 %v5059_v30, %v5026_v12  ;;  %v2899_v54 = vmul.f32 %v5063_v25, %v5029_v39  ;;  %5840 = vst [vmem:[#allocation41_spill] sm:$0xff] %v5067_v2  ;;  %v2852_v18 = vmul.f32 %v5067_v2, %v2849_v6  ;;  %v5073_v40 = vld [vmem:[#allocation7 + $0x38] sm:$0xff]  ;;  %v5076_v35 = vld [vmem:[#allocation7 + $0x90] sm:$0xff] }
 0x153   :  { %v2854_v21 = vadd.f32 %v2850_v19, %v2842_v16  ;;  %v2832_v14 = vadd.f32 %v2828_v33, %v2816_v34  ;;  %5841 = vst [vmem:[#allocation60_spill] sm:$0xff] %v5070_v50  ;;  %v2817_v19 = vmul.f32 %v5070_v50, %v2813_v46  ;;  %5842 = vst [vmem:[#allocation29_spill] sm:$0xff] %v5073_v40  ;;  %v5079_v25 = vld [vmem:[#allocation7 + $0x58] sm:$0xff]  ;;  %v5082_v2 = vld [vmem:[#allocation7 + $0xb0] sm:$0xff] }
 0x154   :  { %v2829_v16 = vmul.f32 %v5073_v40, %v2825_v41  ;;  %v2855_v30 = vadd.f32 %v2851_v32, %v2843_v23  ;;  %5843 = vst [vmem:[#allocation37_spill] sm:$0xff] %v5076_v35  ;;  %v2864_v36 = vmul.f32 %v5076_v35, %v2861_v8  ;;  %5844 = vst [vmem:[#allocation45_spill] sm:$0xff] %v5079_v25  ;;  %v5093_v35 = vld [vmem:[#allocation7 + $0x98] sm:$0xff] }
 0x155   :  { %v2866_v26 = vadd.f32 %v2862_v56, %v2854_v21  ;;  %v2841_v33 = vmul.f32 %v5079_v25, %v2837_v13  ;;  %v2844_v34 = vadd.f32 %v2840_v15, %v2832_v14  ;;  %5845 = vst [vmem:[#allocation59_spill] sm:$0xff] %v5082_v2  ;;  %v2876_v46 = vmul.f32 %v5082_v2, %v5023_v7  ;;  %v5089_v21 = vld [vmem:[#allocation7 + $0xd0] sm:$0xff] }
 0x156   :  { %v2833_v50 = vadd.f32 %v2829_v16, %v2817_v19  ;;  %5846 = vst [vmem:[#allocation54_spill] sm:$0xff] %v5086_v61  ;;  %v2853_v41 = vmul.f32 %v5086_v61, %v2849_v6  ;;  %v2867_v32 = vadd.f32 %v2863_v28, %v2855_v30  ;;  %5847 = vst [vmem:[#allocation73_spill] sm:$0xff] %v5089_v21  ;;  %v5848_v2 = vrot.slane %v4984_v4, 4  ;;  %v5100_v28 = vld [vmem:[#allocation7 + $0xf0] sm:$0xff] }
 0x157   :  { %v2878_v56 = vadd.f32 %v2874_v1, %v2866_v26  ;;  %v2888_v23 = vmul.f32 %v5089_v21, %v5026_v12  ;;  %v2865_v14 = vmul.f32 %v5093_v35, %v2861_v8  ;;  %v2856_v13 = vadd.f32 %v2852_v18, %v2844_v34  ;;  %v5105_v8 = vld [vmem:[#allocation7 + $0xb8] sm:$0xff] }
 0x158   :  { %v2845_v15 = vadd.f32 %v2841_v33, %v2833_v50  ;;  %v2252_v19 = vadd.f32 %v5848_v2, %v2228_v60  ;;  %v5849_v16 = vrot.slane %v4982_v42, 5  ;;  %v2879_v1 = vadd.f32 %v2875_v20, %v2867_v32 }
 0x159   :  { %v2890_v6 = vadd.f32 %v2886_v37, %v2878_v56  ;;  %v2900_v30 = vmul.f32 %v5100_v28, %v5029_v39  ;;  %v1562_v26 = vadd.f32 %v4997_v27, %v1504_v0  ;;  %v2868_v21 = vadd.f32 %v2864_v36, %v2856_v13 }
 0x15a   :  { %v2045_v25 = vmax.f32 %v2021_v31, %v5849_v16  ;;  %v2857_v61 = vadd.f32 %v2853_v41, %v2845_v15  ;;  %v2877_v18 = vmul.f32 %v5105_v8, %v5023_v7  ;;  %v5850_v60 = vrot.slane %v4984_v4, 5  ;;  %v3471_v31 = vld [vmem:[#allocation2 + $0xfd] ss:$0 sm:$0xff]  ;;  %v3479_v7 = vld [vmem:[#allocation2 + $0xfe] ss:$0 sm:$0xff] }
 0x15b   :  { %v2902_v37 = vadd.f32 %v2898_v59, %v2890_v6  ;;  %v2891_v2 = vadd.f32 %v2887_v29, %v2879_v1  ;;  %v5851_v20 = vrot.slane %v4982_v42, 6  ;;  %v1620_v34 = vadd.f32 %v5000_v44, %v1562_v26  ;;  %v3603_v59 = vld [vmem:[#allocation5 + $0xe8] sm:$0xff] }
 0x15c   :  { %v2276_v50 = vadd.f32 %v5850_v60, %v2252_v19  ;;  %v2880_v56 = vadd.f32 %v2876_v46, %v2868_v21  ;;  %v2869_v27 = vadd.f32 %v2865_v14, %v2857_v61  ;;  %v2889_v0 = vmul.f32 %v4967_v43, %v5026_v12  ;;  %v3487_v46 = vld [vmem:[#allocation2 + $0xff] ss:$0 sm:$0xff] }
 0x15d   :  { %v2069_v33 = vmax.f32 %v2045_v25, %v5851_v20  ;;  %v5852_v36 = vrot.slane %v4984_v4, 6  ;;  %2907 = vst [vmem:[#allocation8 + $0x80] sm:$0xff] %v2902_v37  ;;  %v2903_v32 = vadd.f32 %v2899_v54, %v2891_v2  ;;  %v1678_v13 = vadd.f32 %v5003_v55, %v1620_v34  ;;  %v5119_v25 = vld [vmem:[#allocation7 + $0xf8] sm:$0xff]  ;;  %v3605_v55 = vld [vmem:[#allocation5 + $0xf0] sm:$0xff] }
 0x15e   :  { %v1786_v29 = vmul.f32 %v3603_v59, %v3471_v31  ;;  %v2892_v15 = vadd.f32 %v2888_v23, %v2880_v56  ;;  %v2881_v19 = vadd.f32 %v2877_v18, %v2869_v27  ;;  %v2901_v44 = vmul.f32 %v5119_v25, %v5029_v39  ;;  %v3606_v18 = vld [vmem:[#allocation5 + $0xf8] sm:$0xff] }
 0x15f   :  { %v2300_v41 = vadd.f32 %v5852_v36, %v2276_v50  ;;  %v5853_v61 = vrot.slane %v4984_v4, 7  ;;  %2908 = vst [vmem:[#allocation8 + $0x88] sm:$0xff] %v2903_v32  ;;  %v5854_v21 = vrot.slane %v4982_v42, 7  ;;  %v1736_v54 = vadd.f32 %v5006_v57, %v1678_v13 }
 0x160   :  { %v1844_v16 = vmul.f32 %v3605_v55, %v3479_v7  ;;  %v2904_v6 = vadd.f32 %v2900_v30, %v2892_v15  ;;  %v2893_v23 = vadd.f32 %v2889_v0, %v2881_v19  ;;  %v1902_v60 = vmul.f32 %v3606_v18, %v3487_v46  ;;  %v5861_v55 = vld [vmem:[#allocation40_spill] sm:$0xff] }
 0x161   :  { %v2324_v12 = vadd.f32 %v5853_v61, %v2300_v41  ;;  %v2093_v14 = vmax.f32 %v2069_v33, %v5854_v21  ;;  %v1794_v26 = vadd.f32 %v1786_v29, %v1736_v54 }
 0x162   :  { %2909 = vst [vmem:[#allocation8 + $0x90] sm:$0xff] %v2904_v6  ;;  %v2905_v39 = vadd.f32 %v2901_v44, %v2893_v23 }
 0x163   :  { %v2350_v1 = vrot.slane %v2324_v12, %v5571_v51  ;;  %v2122_v50 = vrot.slane %v2093_v14, %v5571_v51  ;;  %v1852_v31 = vadd.f32 %v1844_v16, %v1794_v26 }
 0x164   :  { %2910 = vst [vmem:[#allocation8 + $0x98] sm:$0xff] %v2905_v39 }
 0x165   :  { %3516 = vrcp.f32 %v2350_v1  ;;  %v1910_v37 = vadd.f32 %v1902_v60, %v1852_v31  ;;  %v2133_v2 = vsub.f32 %v4982_v42, %v2122_v50 }
 0x167   :  { %v5131_v57 = vmul.f32 0.17677669, %v1910_v37  ;;  %v2147_v33 = vmul.f32 1.442695, %v2133_v2  ;;  %v5855_v37 = vld [vmem:[#allocation35_spill] sm:$0xff] }
 0x169   :  { %v1934_v30 = vrot.slane %v5131_v57, 1  ;;  %v1958_v20 = vrot.slane %v5131_v57, 2  ;;  %v1982_v27 = vrot.slane %v5131_v57, 3  ;;  %3518 = vpow2.f32 %v2147_v33  ;;  %v5857_v33 = vld [vmem:[#allocation44_spill] sm:$0xff] }
 0x16a   :  { %v2006_v7 = vrot.slane %v5131_v57, 4  ;;  %v2030_v46 = vrot.slane %v5131_v57, 5 }
 0x16b   :  { %v1950_v34 = vmax.f32 %v5131_v57, %v1934_v30  ;;  %v5856_v30 = vld [vmem:[#allocation56_spill] sm:$0xff] }
 0x16d   :  { %v1974_v56 = vmax.f32 %v1950_v34, %v1958_v20 }
 0x16f   :  { %v1998_v41 = vmax.f32 %v1974_v56, %v1982_v27  ;;  %v5858_v56 = vld [vmem:[#allocation17_spill] sm:$0xff] }
 0x171   :  { %v2022_v14 = vmax.f32 %v1998_v41, %v2006_v7  ;;  %v5860_v41 = vld [vmem:[#allocation20_spill] sm:$0xff] }
 0x172   :  { %v3517_v0 = vpop.eup %3516 }
 0x173   :  { %v2370_v36 = vmul.f32 %v3517_v0, %v4984_v4  ;;  %v5859_v0 = vld [vmem:[#allocation19_spill] sm:$0xff] }
 0x175   :  { %v2914_v42 = vrot.slane %v2370_v36, %v5571_v51  ;;  %v2926_v32 = vrot.slane %v2370_v36, %v5814_v63  ;;  %v2938_v13 = vrot.slane %v2370_v36, %v5815_v10  ;;  %v2950_v59 = vrot.slane %v2370_v36, %v5816_v17 }
 0x176   :  { %v2962_v29 = vrot.slane %v2370_v36, %v5817_v38  ;;  %v2974_v15 = vrot.slane %v2370_v36, %v5818_v3  ;;  %v2986_v19 = vrot.slane %v2370_v36, %v5819_v11  ;;  %v5147_v44 = vrot.slane %v2370_v36, %v5820_v5 }
 0x177   :  { %v2915_v4 = vmul.f32 %v5821_v45, %v2914_v42  ;;  %v2927_v61 = vmul.f32 %v5822_v58, %v2926_v32  ;;  %v2939_v12 = vmul.f32 %v5823_v24, %v2938_v13  ;;  %v2951_v21 = vmul.f32 %v5824_v9, %v2950_v59 }
 0x178   :  { %v2916_v6 = vmul.f32 %v5825_v62, %v2914_v42  ;;  %v2928_v23 = vmul.f32 %v5826_v52, %v2926_v32  ;;  %v2940_v1 = vmul.f32 %v5827_v22, %v2938_v13  ;;  %v2963_v26 = vmul.f32 %v5828_v49, %v2962_v29  ;;  %v5868_v22 = vld [vmem:[#allocation54_spill] sm:$0xff] }
 0x179   :  { %v2931_v16 = vadd.f32 %v2927_v61, %v2915_v4  ;;  %v2975_v18 = vmul.f32 %v5829_v53, %v2974_v15  ;;  %v2987_v60 = vmul.f32 %v5830_v47, %v2986_v19  ;;  %v2999_v39 = vmul.f32 %v5831_v48, %v5147_v44  ;;  %v5862_v48 = vld [vmem:[#allocation36_spill] sm:$0xff] }
 0x17a   :  { %v2932_v31 = vadd.f32 %v2928_v23, %v2916_v6  ;;  %v2952_v2 = vmul.f32 %v5855_v37, %v2950_v59  ;;  %v2917_v20 = vmul.f32 %v5856_v30, %v2914_v42  ;;  %v2964_v34 = vmul.f32 %v5857_v33, %v2962_v29  ;;  %v5863_v6 = vld [vmem:[#allocation41_spill] sm:$0xff]  ;;  %v5864_v47 = vld [vmem:[#allocation60_spill] sm:$0xff]  ;;  %v3519_v30 = vpop.eup %3518 }
 0x17b   :  { %v2943_v50 = vadd.f32 %v2939_v12, %v2931_v16  ;;  %v2976_v27 = vmul.f32 %v5858_v56, %v2974_v15  ;;  %v2929_v36 = vmul.f32 %v5859_v0, %v2926_v32  ;;  %v2941_v7 = vmul.f32 %v5860_v41, %v2938_v13  ;;  %v5865_v0 = vld [vmem:[#allocation37_spill] sm:$0xff] }
 0x17c   :  { %v2944_v61 = vadd.f32 %v2940_v1, %v2932_v31  ;;  %v2988_v54 = vmul.f32 %v5861_v55, %v2986_v19  ;;  %v3000_v12 = vmul.f32 %v5862_v48, %v5147_v44  ;;  %v2953_v23 = vmul.f32 %v5863_v6, %v2950_v59  ;;  %v5866_v41 = vld [vmem:[#allocation45_spill] sm:$0xff] }
 0x17d   :  { %v2955_v4 = vadd.f32 %v2951_v21, %v2943_v50  ;;  %v2933_v16 = vadd.f32 %v2929_v36, %v2917_v20  ;;  %v2918_v53 = vmul.f32 %v5864_v47, %v2914_v42  ;;  %v2930_v33 = vmul.f32 %v5073_v40, %v2926_v32  ;;  %v5867_v50 = vld [vmem:[#allocation59_spill] sm:$0xff]  ;;  %v5869_v6 = vld [vmem:[#allocation73_spill] sm:$0xff] }
 0x17e   :  { %v2956_v37 = vadd.f32 %v2952_v2, %v2944_v61  ;;  %v2965_v49 = vmul.f32 %v5865_v0, %v2962_v29  ;;  %v2942_v21 = vmul.f32 %v5866_v41, %v2938_v13  ;;  %v2977_v31 = vmul.f32 %v5867_v50, %v2974_v15 }
 0x17f   :  { %v2967_v56 = vadd.f32 %v2963_v26, %v2955_v4  ;;  %v2945_v1 = vadd.f32 %v2941_v7, %v2933_v16  ;;  %v2934_v55 = vadd.f32 %v2930_v33, %v2918_v53  ;;  %v2954_v48 = vmul.f32 %v5868_v22, %v2950_v59 }
 0x180   :  { %v2968_v36 = vadd.f32 %v2964_v34, %v2956_v37  ;;  %v2989_v52 = vmul.f32 %v5869_v6, %v2986_v19  ;;  %v2966_v42 = vmul.f32 %v5093_v35, %v2962_v29  ;;  %v2165_v26 = vrot.slane %v3519_v30, 1 }
 0x181   :  { %v2979_v20 = vadd.f32 %v2975_v18, %v2967_v56  ;;  %v2957_v32 = vadd.f32 %v2953_v23, %v2945_v1  ;;  %v2946_v40 = vadd.f32 %v2942_v21, %v2934_v55  ;;  %v2189_v2 = vrot.slane %v3519_v30, 2 }
 0x182   :  { %v2980_v61 = vadd.f32 %v2976_v27, %v2968_v36  ;;  %v3001_v13 = vmul.f32 %v5100_v28, %v5147_v44  ;;  %v2978_v7 = vmul.f32 %v5105_v8, %v2974_v15  ;;  %v2181_v59 = vadd.f32 %v3519_v30, %v2165_v26 }
 0x183   :  { %v2991_v4 = vadd.f32 %v2987_v60, %v2979_v20  ;;  %v2969_v53 = vadd.f32 %v2965_v49, %v2957_v32  ;;  %v2958_v33 = vadd.f32 %v2954_v48, %v2946_v40  ;;  %v2213_v18 = vrot.slane %v3519_v30, 3 }
 0x184   :  { %v2992_v34 = vadd.f32 %v2988_v54, %v2980_v61  ;;  %v2990_v56 = vmul.f32 %v4967_v43, %v2986_v19  ;;  %v2237_v29 = vrot.slane %v3519_v30, 4  ;;  %v2205_v23 = vadd.f32 %v2189_v2, %v2181_v59 }
 0x185   :  { %v3003_v37 = vadd.f32 %v2999_v39, %v2991_v4  ;;  %v2981_v16 = vadd.f32 %v2977_v31, %v2969_v53  ;;  %v2970_v55 = vadd.f32 %v2966_v42, %v2958_v33  ;;  %v2046_v21 = vmax.f32 %v2022_v14, %v2030_v46 }
 0x186   :  { %v3004_v60 = vadd.f32 %v3000_v12, %v2992_v34  ;;  %v3002_v27 = vmul.f32 %v5119_v25, %v5147_v44  ;;  %v2261_v1 = vrot.slane %v3519_v30, 5  ;;  %v2229_v48 = vadd.f32 %v2213_v18, %v2205_v23 }
 0x187   :  { %3008 = vst [vmem:[#allocation8 + $0xa0] sm:$0xff] %v3003_v37  ;;  %v2993_v15 = vadd.f32 %v2989_v52, %v2981_v16  ;;  %v2982_v49 = vadd.f32 %v2978_v7, %v2970_v55  ;;  %v5870_v40 = vrot.slane %v5131_v57, 6  ;;  %v2285_v54 = vrot.slane %v3519_v30, 6 }
 0x188   :  { %3009 = vst [vmem:[#allocation8 + $0xa8] sm:$0xff] %v3004_v60  ;;  %v2253_v31 = vadd.f32 %v2237_v29, %v2229_v48  ;;  %v5871_v36 = vrot.slane %v5131_v57, 7  ;;  %v2309_v42 = vrot.slane %v3519_v30, 7  ;;  %v5873_v48 = vld [vmem:[#allocation43_spill] sm:$0xff] }
 0x189   :  { %v2070_v39 = vmax.f32 %v2046_v21, %v5870_v40  ;;  %v3005_v19 = vadd.f32 %v3001_v13, %v2993_v15  ;;  %v2994_v20 = vadd.f32 %v2990_v56, %v2982_v49  ;;  %v5872_v15 = vld [vmem:[#allocation18_spill] sm:$0xff] }
 0x18a   :  { %v2277_v12 = vadd.f32 %v2261_v1, %v2253_v31 }
 0x18b   :  { %v2094_v46 = vmax.f32 %v2070_v39, %v5871_v36  ;;  %3010 = vst [vmem:[#allocation8 + $0xb0] sm:$0xff] %v3005_v19  ;;  %v3006_v14 = vadd.f32 %v3002_v27, %v2994_v20  ;;  %v5874_v39 = vld [vmem:[#allocation42_spill] sm:$0xff] }
 0x18c   :  { %v2301_v52 = vadd.f32 %v2285_v54, %v2277_v12 }
 0x18d   :  { %v2126_v44 = vrot.slane %v2094_v46, %v5571_v51  ;;  %3011 = vst [vmem:[#allocation8 + $0xb8] sm:$0xff] %v3006_v14  ;;  %v5875_v14 = vld [vmem:[#allocation35_spill] sm:$0xff] }
 0x18e   :  { %v2325_v26 = vadd.f32 %v2309_v42, %v2301_v52  ;;  %v5876_v42 = vld [vmem:[#allocation56_spill] sm:$0xff]  ;;  %v5877_v52 = vld [vmem:[#allocation61_spill] sm:$0xff] }
 0x18f   :  { %v2134_v32 = vsub.f32 %v5131_v57, %v2126_v44 }
 0x190   :  { %v2354_v4 = vrot.slane %v2325_v26, %v5571_v51  ;;  %v5878_v26 = vld [vmem:[#allocation16_spill] sm:$0xff] }
 0x191   :  { %v2149_v2 = vmul.f32 1.442695, %v2134_v32 }
 0x192   :  { %3520 = vrcp.f32 %v2354_v4  ;;  %v5879_v4 = vld [vmem:[#allocation19_spill] sm:$0xff] }
 0x193   :  { %3522 = vpow2.f32 %v2149_v2 }
 0x19f   :  { %v3521_v61 = vpop.eup %3520 }
 0x1a0   :  { %v5195_v13 = vpop.eup %3522  ;;  %v2372_v7 = vmul.f32 %v3521_v61, %v3519_v30 }
 0x1a1   :  { %v2166_v37 = vrot.slane %v5195_v13, 1  ;;  %v2190_v34 = vrot.slane %v5195_v13, 2  ;;  %v2214_v16 = vrot.slane %v5195_v13, 3  ;;  %v2238_v20 = vrot.slane %v5195_v13, 4 }
 0x1a2   :  { %v3015_v53 = vrot.slane %v2372_v7, %v5571_v51  ;;  %v3027_v33 = vrot.slane %v2372_v7, %v5814_v63  ;;  %v3039_v59 = vrot.slane %v2372_v7, %v5815_v10  ;;  %v3051_v18 = vrot.slane %v2372_v7, %v5816_v17 }
 0x1a3   :  { %v3063_v57 = vrot.slane %v2372_v7, %v5817_v38  ;;  %v3075_v23 = vrot.slane %v2372_v7, %v5818_v3  ;;  %v3087_v21 = vrot.slane %v2372_v7, %v5819_v11  ;;  %v3099_v60 = vrot.slane %v2372_v7, %v5820_v5  ;;  %v5880_v7 = vld [vmem:[#allocation20_spill] sm:$0xff] }
 0x1a4   :  { %v3016_v56 = vmul.f32 %v5821_v45, %v3015_v53  ;;  %v3028_v29 = vmul.f32 %v5822_v58, %v3027_v33  ;;  %v3040_v30 = vmul.f32 %v5823_v24, %v3039_v59  ;;  %v3052_v55 = vmul.f32 %v5824_v9, %v3051_v18 }
 0x1a5   :  { %v3017_v1 = vmul.f32 %v5825_v62, %v3015_v53  ;;  %v3029_v49 = vmul.f32 %v5872_v15, %v3027_v33  ;;  %v3041_v40 = vmul.f32 %v5873_v48, %v3039_v59  ;;  %v3064_v54 = vmul.f32 %v5874_v39, %v3063_v57  ;;  %v5882_v48 = vld [vmem:[#allocation44_spill] sm:$0xff] }
 0x1a6   :  { %v3032_v27 = vadd.f32 %v3028_v29, %v3016_v56  ;;  %v2182_v19 = vadd.f32 %v5195_v13, %v2166_v37  ;;  %v2262_v31 = vrot.slane %v5195_v13, 5  ;;  %v3053_v12 = vmul.f32 %v5875_v14, %v3051_v18  ;;  %v5881_v37 = vld [vmem:[#allocation55_spill] sm:$0xff] }
 0x1a7   :  { %v3033_v46 = vadd.f32 %v3029_v49, %v3017_v1  ;;  %v3018_v44 = vmul.f32 %v5876_v42, %v3015_v53  ;;  %v3076_v32 = vmul.f32 %v5877_v52, %v3075_v23  ;;  %v3088_v2 = vmul.f32 %v5878_v26, %v3087_v21  ;;  %v5884_v42 = vld [vmem:[#allocation29_spill] sm:$0xff] }
 0x1a8   :  { %v3044_v36 = vadd.f32 %v3040_v30, %v3032_v27  ;;  %v3030_v61 = vmul.f32 %v5879_v4, %v3027_v33  ;;  %v3042_v56 = vmul.f32 %v5880_v7, %v3039_v59  ;;  %v3100_v5 = vmul.f32 %v5881_v37, %v3099_v60  ;;  %v5883_v27 = vld [vmem:[#allocation41_spill] sm:$0xff] }
 0x1a9   :  { %v3045_v39 = vadd.f32 %v3041_v40, %v3033_v46  ;;  %v3065_v15 = vmul.f32 %v5882_v48, %v3063_v57  ;;  %v3054_v1 = vmul.f32 %v5883_v27, %v3051_v18  ;;  %v3019_v49 = vmul.f32 %v5864_v47, %v3015_v53  ;;  %v5885_v26 = vld [vmem:[#allocation17_spill] sm:$0xff] }
 0x1aa   :  { %v3056_v29 = vadd.f32 %v3052_v55, %v3044_v36  ;;  %v3034_v30 = vadd.f32 %v3030_v61, %v3018_v44  ;;  %v3031_v14 = vmul.f32 %v5884_v42, %v3027_v33  ;;  %v3077_v11 = vmul.f32 %v5885_v26, %v3075_v23  ;;  %v5886_v61 = vld [vmem:[#allocation40_spill] sm:$0xff] }
 0x1ab   :  { %v3057_v62 = vadd.f32 %v3053_v12, %v3045_v39  ;;  %v3043_v4 = vmul.f32 %v5866_v41, %v3039_v59  ;;  %v3066_v55 = vmul.f32 %v5865_v0, %v3063_v57  ;;  %v3055_v40 = vmul.f32 %v5868_v22, %v3051_v18  ;;  %v5887_v59 = vld [vmem:[#allocation36_spill] sm:$0xff] }
 0x1ac   :  { %v3068_v52 = vadd.f32 %v3064_v54, %v3056_v29  ;;  %v3046_v7 = vadd.f32 %v3042_v56, %v3034_v30  ;;  %v3035_v36 = vadd.f32 %v3031_v14, %v3019_v49  ;;  %v3089_v37 = vmul.f32 %v5886_v61, %v3087_v21 }
 0x1ad   :  { %v3069_v44 = vadd.f32 %v3065_v15, %v3057_v62  ;;  %v3078_v53 = vmul.f32 %v5867_v50, %v3075_v23  ;;  %v3067_v39 = vmul.f32 %v5093_v35, %v3063_v57  ;;  %v2206_v54 = vadd.f32 %v2190_v34, %v2182_v19 }
 0x1ae   :  { %v3080_v46 = vadd.f32 %v3076_v32, %v3068_v52  ;;  %v3058_v47 = vadd.f32 %v3054_v1, %v3046_v7  ;;  %v3047_v33 = vadd.f32 %v3043_v4, %v3035_v36  ;;  %v3101_v56 = vmul.f32 %v5887_v59, %v3099_v60 }
 0x1af   :  { %v3081_v29 = vadd.f32 %v3077_v11, %v3069_v44  ;;  %v3090_v30 = vmul.f32 %v5869_v6, %v3087_v21  ;;  %v3079_v18 = vmul.f32 %v5105_v8, %v3075_v23  ;;  %v2230_v62 = vadd.f32 %v2214_v16, %v2206_v54 }
 0x1b0   :  { %v3092_v12 = vadd.f32 %v3088_v2, %v3080_v46  ;;  %v3070_v14 = vadd.f32 %v3066_v55, %v3058_v47  ;;  %v3059_v49 = vadd.f32 %v3055_v40, %v3047_v33  ;;  %v3102_v32 = vmul.f32 %v5100_v28, %v3099_v60 }
 0x1b1   :  { %v3093_v52 = vadd.f32 %v3089_v37, %v3081_v29  ;;  %v2286_v4 = vrot.slane %v5195_v13, 6  ;;  %v3091_v34 = vmul.f32 %v4967_v43, %v3087_v21  ;;  %v2254_v11 = vadd.f32 %v2238_v20, %v2230_v62 }
 0x1b2   :  { %v3104_v15 = vadd.f32 %v3100_v5, %v3092_v12  ;;  %v3082_v7 = vadd.f32 %v3078_v53, %v3070_v14  ;;  %v3071_v57 = vadd.f32 %v3067_v39, %v3059_v49  ;;  %v2310_v2 = vrot.slane %v5195_v13, 7 }
 0x1b3   :  { %v3105_v19 = vadd.f32 %v3101_v56, %v3093_v52  ;;  %v3103_v23 = vmul.f32 %v5119_v25, %v3099_v60  ;;  %v2278_v16 = vadd.f32 %v2262_v31, %v2254_v11  ;;  %v5888_v56 = vld [vmem:[#allocation28_spill] sm:$0xff] }
 0x1b4   :  { %3109 = vst [vmem:[#allocation8 + $0xc0] sm:$0xff] %v3104_v15  ;;  %v3094_v47 = vadd.f32 %v3090_v30, %v3082_v7  ;;  %v3083_v1 = vadd.f32 %v3079_v18, %v3071_v57  ;;  %v5897_v57 = vld [vmem:[#allocation19_spill] sm:$0xff]  ;;  %v5898_v11 = vld [vmem:[#allocation20_spill] sm:$0xff] }
 0x1b5   :  { %3110 = vst [vmem:[#allocation8 + $0xc8] sm:$0xff] %v3105_v19  ;;  %v2302_v55 = vadd.f32 %v2286_v4, %v2278_v16 }
 0x1b6   :  { %v3106_v5 = vadd.f32 %v3102_v32, %v3094_v47  ;;  %v3095_v37 = vadd.f32 %v3091_v34, %v3083_v1  ;;  %v5899_v47 = vld [vmem:[#allocation16_spill] sm:$0xff] }
 0x1b7   :  { %v2326_v40 = vadd.f32 %v2310_v2, %v2302_v55  ;;  %v5900_v55 = vld [vmem:[#allocation60_spill] sm:$0xff] }
 0x1b8   :  { %3111 = vst [vmem:[#allocation8 + $0xd0] sm:$0xff] %v3106_v5  ;;  %v3107_v36 = vadd.f32 %v3103_v23, %v3095_v37 }
 0x1b9   :  { %v2358_v21 = vrot.slane %v2326_v40, %v5571_v51 }
 0x1ba   :  { %3112 = vst [vmem:[#allocation8 + $0xd8] sm:$0xff] %v3107_v36 }
 0x1bb   :  { %3524 = vrcp.f32 %v2358_v21 }
 0x1c8   :  { %v3525_v20 = vpop.eup %3524 }
 0x1c9   :  { %v2374_v46 = vmul.f32 %v3525_v20, %v5195_v13 }
 0x1cb   :  { %v3116_v44 = vrot.slane %v2374_v46, %v5571_v51  ;;  %v3128_v53 = vrot.slane %v2374_v46, %v5814_v63  ;;  %v3140_v60 = vrot.slane %v2374_v46, %v5815_v10  ;;  %v3152_v31 = vrot.slane %v2374_v46, %v5816_v17  ;;  %v5889_v63 = vld [vmem:[#allocation27_spill] sm:$0xff]  ;;  %v5890_v10 = vld [vmem:[#allocation18_spill] sm:$0xff] }
 0x1cc   :  { %v3164_v33 = vrot.slane %v2374_v46, %v5817_v38  ;;  %v3176_v13 = vrot.slane %v2374_v46, %v5818_v3  ;;  %v3188_v51 = vrot.slane %v2374_v46, %v5888_v56  ;;  %v5891_v17 = vld [vmem:[#allocation43_spill] sm:$0xff]  ;;  %v5892_v38 = vld [vmem:[#allocation42_spill] sm:$0xff] }
 0x1cd   :  { %v3117_v39 = vmul.f32 %v5821_v45, %v3116_v44  ;;  %v3129_v54 = vmul.f32 %v5822_v58, %v3128_v53  ;;  %v3141_v12 = vmul.f32 %v5823_v24, %v3140_v60  ;;  %v3153_v29 = vmul.f32 %v5824_v9, %v3152_v31  ;;  %v5893_v58 = vld [vmem:[#allocation35_spill] sm:$0xff]  ;;  %v5894_v24 = vld [vmem:[#allocation56_spill] sm:$0xff]  ;;  %v5895_v9 = vld [vmem:[#allocation61_spill] sm:$0xff] }
 0x1ce   :  { %v3118_v14 = vmul.f32 %v5889_v63, %v3116_v44  ;;  %v3130_v49 = vmul.f32 %v5890_v10, %v3128_v53  ;;  %v3142_v18 = vmul.f32 %v5891_v17, %v3140_v60  ;;  %v3165_v62 = vmul.f32 %v5892_v38, %v3164_v33  ;;  %v5896_v3 = vld [vmem:[#allocation31_spill] sm:$0xff] }
 0x1cf   :  { %v3133_v30 = vadd.f32 %v3129_v54, %v3117_v39  ;;  %v3154_v52 = vmul.f32 %v5893_v58, %v3152_v31  ;;  %v3119_v32 = vmul.f32 %v5894_v24, %v3116_v44  ;;  %v3177_v4 = vmul.f32 %v5895_v9, %v3176_v13 }
 0x1d0   :  { %v3134_v15 = vadd.f32 %v3130_v49, %v3118_v14  ;;  %v3200_v7 = vrot.slane %v2374_v46, %v5896_v3  ;;  %v3131_v34 = vmul.f32 %v5897_v57, %v3128_v53  ;;  %v3143_v19 = vmul.f32 %v5898_v11, %v3140_v60 }
 0x1d1   :  { %v3145_v45 = vadd.f32 %v3141_v12, %v3133_v30  ;;  %v3189_v1 = vmul.f32 %v5899_v47, %v3188_v51  ;;  %v3166_v16 = vmul.f32 %v5882_v48, %v3164_v33  ;;  %v3155_v37 = vmul.f32 %v5883_v27, %v3152_v31  ;;  %v5901_v30 = vld [vmem:[#allocation55_spill] sm:$0xff] }
 0x1d2   :  { %v3146_v23 = vadd.f32 %v3142_v18, %v3134_v15  ;;  %v3135_v5 = vadd.f32 %v3131_v34, %v3119_v32  ;;  %v3120_v36 = vmul.f32 %v5900_v55, %v3116_v44  ;;  %v3132_v40 = vmul.f32 %v5884_v42, %v3128_v53 }
 0x1d3   :  { %v3157_v2 = vadd.f32 %v3153_v29, %v3145_v45  ;;  %v3178_v46 = vmul.f32 %v5885_v26, %v3176_v13  ;;  %v3144_v39 = vmul.f32 %v5866_v41, %v3140_v60  ;;  %v3167_v12 = vmul.f32 %v5865_v0, %v3164_v33 }
 0x1d4   :  { %v3158_v20 = vadd.f32 %v3154_v52, %v3146_v23  ;;  %v3147_v54 = vadd.f32 %v3143_v19, %v3135_v5  ;;  %v3136_v29 = vadd.f32 %v3132_v40, %v3120_v36  ;;  %v3156_v56 = vmul.f32 %v5868_v22, %v3152_v31 }
 0x1d5   :  { %v3169_v21 = vadd.f32 %v3165_v62, %v3157_v2  ;;  %v3201_v63 = vmul.f32 %v5901_v30, %v3200_v7  ;;  %v3190_v44 = vmul.f32 %v5886_v61, %v3188_v51  ;;  %v3179_v42 = vmul.f32 %v5867_v50, %v3176_v13 }
 0x1d6   :  { %v3170_v27 = vadd.f32 %v3166_v16, %v3158_v20  ;;  %v3159_v14 = vadd.f32 %v3155_v37, %v3147_v54  ;;  %v3148_v53 = vadd.f32 %v3144_v39, %v3136_v29  ;;  %v3168_v26 = vmul.f32 %v5093_v35, %v3164_v33 }
 0x1d7   :  { %v3181_v48 = vadd.f32 %v3177_v4, %v3169_v21  ;;  %v3202_v60 = vmul.f32 %v5887_v59, %v3200_v7  ;;  %v3191_v49 = vmul.f32 %v5869_v6, %v3188_v51  ;;  %v3180_v31 = vmul.f32 %v5105_v8, %v3176_v13 }
 0x1d8   :  { %v3182_v41 = vadd.f32 %v3178_v46, %v3170_v27  ;;  %v3171_v0 = vadd.f32 %v3167_v12, %v3159_v14  ;;  %v3160_v22 = vadd.f32 %v3156_v56, %v3148_v53  ;;  %v3203_v61 = vmul.f32 %v5100_v28, %v3200_v7 }
 0x1d9   :  { %v3193_v10 = vadd.f32 %v3189_v1, %v3181_v48  ;;  %v3192_v50 = vmul.f32 %v4967_v43, %v3188_v51  ;;  %v3204_v59 = vmul.f32 %v5119_v25, %v3200_v7 }
 0x1da   :  { %v3194_v18 = vadd.f32 %v3190_v44, %v3182_v41  ;;  %v3183_v38 = vadd.f32 %v3179_v42, %v3171_v0  ;;  %v3172_v62 = vadd.f32 %v3168_v26, %v3160_v22 }
 0x1db   :  { %v3205_v17 = vadd.f32 %v3201_v63, %v3193_v10 }
 0x1dc   :  { %v3206_v35 = vadd.f32 %v3202_v60, %v3194_v18  ;;  %v3195_v33 = vadd.f32 %v3191_v49, %v3183_v38  ;;  %v3184_v45 = vadd.f32 %v3180_v31, %v3172_v62 }
 0x1dd   :  { %3210 = vst [vmem:[#allocation8 + $0xe0] sm:$0xff] %v3205_v17 }
 0x1de   :  { %3211 = vst [vmem:[#allocation8 + $0xe8] sm:$0xff] %v3206_v35  ;;  %v3207_v6 = vadd.f32 %v3203_v61, %v3195_v33  ;;  %v3196_v15 = vadd.f32 %v3192_v50, %v3184_v45 }
 0x1e0   :  { %3212 = vst [vmem:[#allocation8 + $0xf0] sm:$0xff] %v3207_v6  ;;  %v3208_v8 = vadd.f32 %v3204_v59, %v3196_v15 }
 0x1e2   :  { %3213 = vst [vmem:[#allocation8 + $0xf8] sm:$0xff] %v3208_v8 }
 0x1e3   :  { %3678 = shalt.err (!%p3675_p5)
}
 0x1e4   :  { %3225 = dma.vmem_to_hbm [thread:$0]  %s3220_s2, 4096, %s5296_s3, [#allocation4], %s3695_s17, %s3695_s17, %s3696_s18  }
 0x1e5   :  { %3691 = dma.done.wait [#allocation4], 4096  }
 0x1e6   :  { %3692 = vsyncadd [#allocation4], 4294963200 }
 0x1e7   :  { %3229 = vsyncpa [#allocation3], 1 }
 0x1e8   :  { %3230 = vsyncpa [#allocation6], 1 }
 0x1e9   :  { %3231 = vsyncpa [#allocation4], 1 }

</bundles_post_ra>
